<compile_context>
chip_gen: v5e
topology: v5e:2x2
jax: 0.10.0
libtpu: 0.0.40
codegen_flags: <defaults>
</compile_context>

<pallas_src>
import functools

import jax
import jax.numpy as jnp
from jax.experimental import pallas as pl
from jax.experimental.pallas import tpu as pltpu


# ------------------------------- kernel --------------------------------------


def _fused_kernel(x_ref, w1_ref, eca_ref, s1_ref, b1_ref,
                  w2_ref, s2_ref, b2_ref, w3_ref, s3_ref, b3_ref,
                  wfc1_ref, wfc2_ref, o_ref, *, H, W):
    HW = H * W
    x = x_ref[0]                                              # (HW, Cp) bf16

    # ---- conv1 (1x1) : (HW, Cp) @ (Cp, Pp) -> f32 ----
    t = jnp.dot(x, w1_ref[...], preferred_element_type=jnp.float32)
    Pp = t.shape[1]

    # ---- ECA: global avg pool over pixels, k=3 conv over channels, sigmoid.
    # Channel conv = zero-filled +-1 lane shifts (exact Conv1d zero padding;
    # padded channels of `pooled` are exactly zero, so no wrap fix-up needed).
    pooled = jnp.mean(t, axis=0, keepdims=True)               # (1, Pp) f32
    z1 = jnp.zeros((1, 1), jnp.float32)
    left = jnp.concatenate([z1, pooled[:, :-1]], axis=1)      # pooled[c-1]
    right = jnp.concatenate([pooled[:, 1:], z1], axis=1)      # pooled[c+1]
    z = (left * eca_ref[0:1, :] + pooled * eca_ref[1:2, :]
         + right * eca_ref[2:3, :])
    att = jax.nn.sigmoid(z)                                   # (1, Pp)

    # ---- ECA scale + bn1 (folded) + relu, single cast to bf16 for the MXU ----
    t = jnp.maximum((t * att) * s1_ref[...] + b1_ref[...], 0.0)
    t_bf = t.astype(jnp.bfloat16)                             # (HW, Pp)

    # ---- conv2 (3x3, pad=1, stride=1) as 9 row-shifted matmuls ----
    # Column-boundary handling: for a tap that reads source column w-1 (kw=0)
    # only source pixels whose column is <= W-2 are ever validly read, and for
    # a tap that reads w+1 (kw=2) only columns >= 1.  Pre-masking the source
    # (2 selects) is therefore equivalent to masking the shifted output per
    # tap, but far cheaper.
    col = jax.lax.broadcasted_iota(jnp.int32, (HW, 1), 0) % W
    zero = jnp.zeros_like(t_bf)
    t_l = jnp.where(col <= W - 2, t_bf, zero)   # source for kw == 0 taps
    t_r = jnp.where(col >= 1, t_bf, zero)       # source for kw == 2 taps
    pad = W + 1
    zpad = jnp.zeros((pad, Pp), jnp.bfloat16)
    srcs = [jnp.concatenate([zpad, s, zpad], axis=0)          # (HW+2W+2, Pp)
            for s in (t_l, t_bf, t_r)]
    acc = jnp.zeros((HW, Pp), jnp.float32)
    for kh in range(3):
        for kw in range(3):
            off = (kh - 1) * W + (kw - 1)
            sh = srcs[kw][pad + off:pad + off + HW, :]        # static slice
            acc = acc + jnp.dot(sh, w2_ref[kh * 3 + kw],
                                preferred_element_type=jnp.float32)

    # ---- bn2 + relu ----
    u = jnp.maximum(acc * s2_ref[...] + b2_ref[...], 0.0)     # (HW, Pp)

    # ---- conv3 (1x1) + bn3 ----
    v = jnp.dot(u.astype(jnp.bfloat16), w3_ref[...],
                preferred_element_type=jnp.float32)           # (HW, C4p)
    v = v * s3_ref[...] + b3_ref[...]

    # ---- SE: global avg pool -> FC -> ReLU -> FC -> sigmoid -> scale ----
    pooled2 = jnp.mean(v, axis=0, keepdims=True)              # (1, C4p)
    h = jnp.maximum(
        jnp.dot(pooled2.astype(jnp.bfloat16), wfc1_ref[...],
                preferred_element_type=jnp.float32), 0.0)
    se = jax.nn.sigmoid(
        jnp.dot(h.astype(jnp.bfloat16), wfc2_ref[...],
                preferred_element_type=jnp.float32))          # (1, C4p)
    v = v * se

    # ---- residual add + relu ----
    out = jnp.maximum(v + x.astype(jnp.float32), 0.0)
    o_ref[0] = out.astype(o_ref.dtype)


# ------------------------------- wrapper --------------------------------------


def _round_up(n, m):
    return ((n + m - 1) // m) * m


def _rep_spec(arr):
    nd = arr.ndim
    return pl.BlockSpec(arr.shape, lambda b, _nd=nd: (0,) * _nd)


def _fold_bn(bn, n_pad, eps=1e-5):
    gamma, beta, mean, var = bn
    s = gamma / jnp.sqrt(var + eps)
    b = beta - mean * s
    pad = (0, n_pad - s.shape[0])
    return (jnp.pad(s, pad).reshape(1, n_pad).astype(jnp.float32),
            jnp.pad(b, pad).reshape(1, n_pad).astype(jnp.float32))


def _pad2(w, r, c):
    return jnp.pad(w, ((0, r - w.shape[0]), (0, c - w.shape[1])))


def eca_bottleneck_forward(x_nchw, params):
    B, Cin, H, W = x_nchw.shape
    P = params["w1"].shape[0]            # planes
    C4 = 4 * P
    mid = params["fc1"].shape[0]
    HW = H * W
    assert Cin == C4, "residual add (downsample=None) requires inplanes == planes*4"

    Cp = _round_up(Cin, 128)             # padded inplanes (== padded planes*4)
    Pp = _round_up(P, 128)
    Mp = _round_up(mid, 128)

    # NCHW -> (B, HW, Cp) bf16, channels zero-padded to a lane multiple.
    x = jnp.transpose(x_nchw, (0, 2, 3, 1)).reshape(B, HW, Cin)
    x = jnp.pad(x, ((0, 0), (0, 0), (0, Cp - Cin))).astype(jnp.bfloat16)

    # --- parameter massaging (glue): fold BN, zero-pad channels, bf16 weights ---
    w1 = _pad2(params["w1"].reshape(P, Cin).T, Cp, Pp).astype(jnp.bfloat16)
    eca_vecs = jnp.broadcast_to(
        params["eca_w"].reshape(3, 1).astype(jnp.float32), (3, Pp))
    s1, b1 = _fold_bn(params["bn1"], Pp)
    s2, b2 = _fold_bn(params["bn2"], Pp)
    s3, b3 = _fold_bn(params["bn3"], Cp)
    # conv2 taps: (kh*3+kw, cin, cout), zero-padded to (9, Pp, Pp)
    w2t = jnp.transpose(params["w2"], (2, 3, 1, 0)).reshape(9, P, P)
    w2t = jnp.pad(w2t, ((0, 0), (0, Pp - P), (0, Pp - P))).astype(jnp.bfloat16)
    w3 = _pad2(params["w3"].reshape(C4, P).T, Pp, Cp).astype(jnp.bfloat16)
    wfc1 = _pad2(params["fc1"].T, Cp, Mp).astype(jnp.bfloat16)
    wfc2 = _pad2(params["fc2"].T, Mp, Cp).astype(jnp.bfloat16)

    kernel = functools.partial(_fused_kernel, H=H, W=W)
    out = pl.pallas_call(
        kernel,
        out_shape=jax.ShapeDtypeStruct((B, HW, Cp), jnp.bfloat16),
        grid=(B,),
        in_specs=[
            pl.BlockSpec((1, HW, Cp), lambda b: (b, 0, 0)),
            _rep_spec(w1), _rep_spec(eca_vecs),
            _rep_spec(s1), _rep_spec(b1),
            _rep_spec(w2t), _rep_spec(s2), _rep_spec(b2),
            _rep_spec(w3), _rep_spec(s3), _rep_spec(b3),
            _rep_spec(wfc1), _rep_spec(wfc2),
        ],
        out_specs=pl.BlockSpec((1, HW, Cp), lambda b: (b, 0, 0)),
        input_output_aliases={0: 0},     # reuse the residual buffer for output
        compiler_params=pltpu.CompilerParams(
            dimension_semantics=("parallel",),
            vmem_limit_bytes=32 * 1024 * 1024),
    )(x, w1, eca_vecs, s1, b1, w2t, s2, b2, w3, s3, b3, wfc1, wfc2)

    # strip channel padding, back to NCHW f32
    out = out[..., :C4].astype(jnp.float32).reshape(B, H, W, C4)
    return jnp.transpose(out, (0, 3, 1, 2))


# --------------------------- pure-JAX reference -------------------------------


def reference_forward(x, params, eps=1e-5):
    def conv2d(t, w, padding=0):
        return jax.lax.conv_general_dilated(
            t, w, window_strides=(1, 1),
            padding=[(padding, padding), (padding, padding)],
            dimension_numbers=("NCHW", "OIHW", "NCHW"))

    def bn(t, p):
        g, b, m, v = p
        return ((t - m[None, :, None, None])
                / jnp.sqrt(v[None, :, None, None] + eps)
                * g[None, :, None, None] + b[None, :, None, None])

    relu = lambda t: jnp.maximum(t, 0.0)
    sigmoid = jax.nn.sigmoid

    out = conv2d(x, params["w1"])
    # eca
    y = jnp.mean(out, axis=(2, 3))
    wk = params["eca_w"].reshape(3)
    yp = jnp.pad(y, ((0, 0), (1, 1)))
    z = wk[0] * yp[:, :-2] + wk[1] * yp[:, 1:-1] + wk[2] * yp[:, 2:]
    out = out * sigmoid(z)[:, :, None, None]
    out = relu(bn(out, params["bn1"]))
    out = relu(bn(conv2d(out, params["w2"], padding=1), params["bn2"]))
    out = bn(conv2d(out, params["w3"]), params["bn3"])
    # SE
    y = jnp.mean(out, axis=(2, 3))
    h = relu(y @ params["fc1"].T)
    s = sigmoid(h @ params["fc2"].T)
    out = out * s[:, :, None, None]
    out = relu(out + x)
    return out


# --------------------------------- main ---------------------------------------


if __name__ == "__main__":
    B, planes, H, W = 2, 4, 16, 16
    inplanes = planes * 4           # required so residual add matches (downsample=None)
    C4 = planes * 4
    mid = C4 // 3                   # SE reduction == k_size == 3 (as in the module)

    keys = jax.random.split(jax.random.PRNGKey(0), 20)
    x = jax.random.normal(keys[0], (B, inplanes, H, W), jnp.float32)

    params = {
        "w1": jax.random.normal(keys[1], (planes, inplanes, 1, 1), jnp.float32) * 0.2,
        "eca_w": jax.random.normal(keys[2], (1, 1, 3), jnp.float32) * 0.5,
        "w2": jax.random.normal(keys[3], (planes, planes, 3, 3), jnp.float32) * 0.2,
        "w3": jax.random.normal(keys[4], (C4, planes, 1, 1), jnp.float32) * 0.2,
        "fc1": jax.random.normal(keys[5], (mid, C4), jnp.float32) * 0.3,
        "fc2": jax.random.normal(keys[6], (C4, mid), jnp.float32) * 0.3,
        "bn1": (jax.random.uniform(keys[7], (planes,), minval=0.5, maxval=1.5),
                jax.random.normal(keys[8], (planes,)) * 0.1,
                jax.random.normal(keys[9], (planes,)) * 0.1,
                jax.random.uniform(keys[10], (planes,), minval=0.5, maxval=1.5)),
        "bn2": (jax.random.uniform(keys[11], (planes,), minval=0.5, maxval=1.5),
                jax.random.normal(keys[12], (planes,)) * 0.1,
                jax.random.normal(keys[13], (planes,)) * 0.1,
                jax.random.uniform(keys[14], (planes,), minval=0.5, maxval=1.5)),
        "bn3": (jax.random.uniform(keys[15], (C4,), minval=0.5, maxval=1.5),
                jax.random.normal(keys[16], (C4,)) * 0.1,
                jax.random.normal(keys[17], (C4,)) * 0.1,
                jax.random.uniform(keys[18], (C4,), minval=0.5, maxval=1.5)),
    }

    out = jax.jit(eca_bottleneck_forward)(x, params)
    out = jax.block_until_ready(out)

    ref = reference_forward(x, params)
    assert out.shape == ref.shape == (B, C4, H, W)
    # bf16 MXU operands (f32 accumulation) -> compare against the f32
    # reference with a correspondingly looser tolerance.
    if not jnp.allclose(out, ref, rtol=5e-2, atol=5e-2):
        raise AssertionError(
            f"Pallas/reference mismatch, max abs err = {jnp.max(jnp.abs(out - ref))}")

    print("KERNEL_OK")
</pallas_src>

<mosaic_0001>
module attributes {stable_mosaic.version = 11 : i64} {
  func.func @_fused_kernel(%arg0: i32, %arg1: memref<1x256x128xbf16, #tpu.memory_space<vmem>>, %arg2: memref<128x128xbf16, #tpu.memory_space<vmem>>, %arg3: memref<3x128xf32, #tpu.memory_space<vmem>>, %arg4: memref<1x128xf32, #tpu.memory_space<vmem>>, %arg5: memref<1x128xf32, #tpu.memory_space<vmem>>, %arg6: memref<9x128x128xbf16, #tpu.memory_space<vmem>>, %arg7: memref<1x128xf32, #tpu.memory_space<vmem>>, %arg8: memref<1x128xf32, #tpu.memory_space<vmem>>, %arg9: memref<128x128xbf16, #tpu.memory_space<vmem>>, %arg10: memref<1x128xf32, #tpu.memory_space<vmem>>, %arg11: memref<1x128xf32, #tpu.memory_space<vmem>>, %arg12: memref<128x128xbf16, #tpu.memory_space<vmem>>, %arg13: memref<128x128xbf16, #tpu.memory_space<vmem>>, %arg14: memref<1x256x128xbf16, #tpu.memory_space<vmem>>) attributes {dimension_semantics = [#tpu.dimension_semantics<parallel>], iteration_bounds = array<i64: 2>, scalar_prefetch = 0 : i64, scratch_operands = 0 : i64, tpu.core_type = #tpu.core_type<tc>, window_params = [{transform_indices = @transform_0, window_bounds = array<i64: 1, 256, 128>}, {pipeline_mode = #tpu.pipeline_mode<synchronous>, transform_indices = @transform_1, window_bounds = array<i64: 128, 128>}, {pipeline_mode = #tpu.pipeline_mode<synchronous>, transform_indices = @transform_2, window_bounds = array<i64: 3, 128>}, {pipeline_mode = #tpu.pipeline_mode<synchronous>, transform_indices = @transform_3, window_bounds = array<i64: 1, 128>}, {pipeline_mode = #tpu.pipeline_mode<synchronous>, transform_indices = @transform_4, window_bounds = array<i64: 1, 128>}, {pipeline_mode = #tpu.pipeline_mode<synchronous>, transform_indices = @transform_5, window_bounds = array<i64: 9, 128, 128>}, {pipeline_mode = #tpu.pipeline_mode<synchronous>, transform_indices = @transform_6, window_bounds = array<i64: 1, 128>}, {pipeline_mode = #tpu.pipeline_mode<synchronous>, transform_indices = @transform_7, window_bounds = array<i64: 1, 128>}, {pipeline_mode = #tpu.pipeline_mode<synchronous>, transform_indices = @transform_8, window_bounds = array<i64: 128, 128>}, {pipeline_mode = #tpu.pipeline_mode<synchronous>, transform_indices = @transform_9, window_bounds = array<i64: 1, 128>}, {pipeline_mode = #tpu.pipeline_mode<synchronous>, transform_indices = @transform_10, window_bounds = array<i64: 1, 128>}, {pipeline_mode = #tpu.pipeline_mode<synchronous>, transform_indices = @transform_11, window_bounds = array<i64: 128, 128>}, {pipeline_mode = #tpu.pipeline_mode<synchronous>, transform_indices = @transform_12, window_bounds = array<i64: 128, 128>}, {transform_indices = @transform_13, window_bounds = array<i64: 1, 256, 128>}]} {
    %c0 = arith.constant 0 : index
    %c0_0 = arith.constant 0 : index
    %c0_1 = arith.constant 0 : index
    %0 = vector.load %arg1[%c0, %c0_0, %c0_1] : memref<1x256x128xbf16, #tpu.memory_space<vmem>>, vector<1x256x128xbf16>
    %1 = vector.shape_cast %0 : vector<1x256x128xbf16> to vector<256x128xbf16>
    %c0_2 = arith.constant 0 : index
    %c0_3 = arith.constant 0 : index
    %2 = vector.load %arg2[%c0_2, %c0_3] : memref<128x128xbf16, #tpu.memory_space<vmem>>, vector<128x128xbf16>
    %cst = arith.constant dense<0.000000e+00> : vector<256x128xf32>
    %3 = tpu.matmul %1, %2, %cst {dimension_numbers = #tpu.dot_dimension_numbers<[1], [0], [0], [1], [0, 0, 1, 1], [], []>} : vector<256x128xbf16>, vector<128x128xbf16>, vector<256x128xf32> -> vector<256x128xf32>
    %cst_4 = arith.constant dense<0.000000e+00> : vector<128xf32>
    %4 = vector.multi_reduction <add>, %3, %cst_4 [0] : vector<256x128xf32> to vector<128xf32>
    %5 = vector.shape_cast %4 : vector<128xf32> to vector<1x128xf32>
    %cst_5 = arith.constant 2.560000e+02 : f32
    %6 = vector.broadcast %cst_5 : f32 to vector<1x128xf32>
    %7 = arith.divf %5, %6 : vector<1x128xf32>
    %cst_6 = arith.constant 0.000000e+00 : f32
    %8 = vector.broadcast %cst_6 : f32 to vector<1x1xf32>
    %9 = vector.extract_strided_slice %7 {offsets = [0, 0], sizes = [1, 127], strides = [1, 1]} : vector<1x128xf32> to vector<1x127xf32>
    %10 = tpu.concatenate %8, %9 in 1 : vector<1x1xf32>, vector<1x127xf32> -> vector<1x128xf32>
    %11 = vector.extract_strided_slice %7 {offsets = [0, 1], sizes = [1, 127], strides = [1, 1]} : vector<1x128xf32> to vector<1x127xf32>
    %12 = tpu.concatenate %11, %8 in 1 : vector<1x127xf32>, vector<1x1xf32> -> vector<1x128xf32>
    %c0_7 = arith.constant 0 : index
    %c0_8 = arith.constant 0 : index
    %13 = vector.load %arg3[%c0_7, %c0_8] : memref<3x128xf32, #tpu.memory_space<vmem>>, vector<1x128xf32>
    %14 = arith.mulf %10, %13 : vector<1x128xf32>
    %c1 = arith.constant 1 : index
    %c0_9 = arith.constant 0 : index
    %15 = vector.load %arg3[%c1, %c0_9] : memref<3x128xf32, #tpu.memory_space<vmem>>, vector<1x128xf32>
    %16 = arith.mulf %7, %15 : vector<1x128xf32>
    %17 = arith.addf %14, %16 : vector<1x128xf32>
    %c2 = arith.constant 2 : index
    %c0_10 = arith.constant 0 : index
    %18 = vector.load %arg3[%c2, %c0_10] : memref<3x128xf32, #tpu.memory_space<vmem>>, vector<1x128xf32>
    %19 = arith.mulf %12, %18 : vector<1x128xf32>
    %20 = arith.addf %17, %19 : vector<1x128xf32>
    %21 = arith.negf %20 : vector<1x128xf32>
    %22 = math.exp %21 : vector<1x128xf32>
    %cst_11 = arith.constant 1.000000e+00 : f32
    %23 = vector.broadcast %cst_11 : f32 to vector<1x128xf32>
    %24 = arith.addf %23, %22 : vector<1x128xf32>
    %25 = arith.divf %23, %24 : vector<1x128xf32>
    %26 = vector.broadcast %25 : vector<1x128xf32> to vector<256x128xf32>
    %27 = arith.mulf %3, %26 : vector<256x128xf32>
    %c0_12 = arith.constant 0 : index
    %c0_13 = arith.constant 0 : index
    %28 = vector.load %arg4[%c0_12, %c0_13] : memref<1x128xf32, #tpu.memory_space<vmem>>, vector<1x128xf32>
    %29 = vector.broadcast %28 : vector<1x128xf32> to vector<256x128xf32>
    %30 = arith.mulf %27, %29 : vector<256x128xf32>
    %c0_14 = arith.constant 0 : index
    %c0_15 = arith.constant 0 : index
    %31 = vector.load %arg5[%c0_14, %c0_15] : memref<1x128xf32, #tpu.memory_space<vmem>>, vector<1x128xf32>
    %32 = vector.broadcast %31 : vector<1x128xf32> to vector<256x128xf32>
    %33 = arith.addf %30, %32 : vector<256x128xf32>
    %cst_16 = arith.constant 0.000000e+00 : f32
    %34 = vector.broadcast %cst_16 : f32 to vector<256x128xf32>
    %35 = arith.maximumf %33, %34 : vector<256x128xf32>
    %36 = arith.truncf %35 : vector<256x128xf32> to vector<256x128xbf16>
    %37 = tpu.iota {dimensions = array<i32: 0>} : vector<256x1xi32>
    %c16_i32 = arith.constant 16 : i32
    %c0_i32 = arith.constant 0 : i32
    %38 = arith.cmpi eq, %c16_i32, %c0_i32 : i32
    %c1_i32 = arith.constant 1 : i32
    %39 = arith.select %38, %c1_i32, %c16_i32 : i32
    %40 = vector.broadcast %39 : i32 to vector<256x1xi32>
    %41 = arith.remsi %37, %40 : vector<256x1xi32>
    %c0_i32_17 = arith.constant 0 : i32
    %42 = vector.broadcast %c0_i32_17 : i32 to vector<256x1xi32>
    %43 = arith.cmpi ne, %41, %42 : vector<256x1xi32>
    %c0_i32_18 = arith.constant 0 : i32
    %44 = vector.broadcast %c0_i32_18 : i32 to vector<256x1xi32>
    %45 = arith.cmpi slt, %41, %44 : vector<256x1xi32>
    %c0_i32_19 = arith.constant 0 : i32
    %46 = arith.cmpi slt, %39, %c0_i32_19 : i32
    %47 = vector.broadcast %46 : i1 to vector<256x1xi1>
    %48 = vector.broadcast %47 : vector<256x1xi1> to vector<256x1xi1>
    %49 = arith.xori %45, %48 : vector<256x1xi1>
    %50 = arith.andi %49, %43 : vector<256x1xi1>
    %51 = vector.broadcast %39 : i32 to vector<256x1xi32>
    %52 = arith.addi %41, %51 : vector<256x1xi32>
    %53 = arith.select %50, %52, %41 : vector<256x1xi1>, vector<256x1xi32>
    %cst_20 = arith.constant 0.000000e+00 : bf16
    %54 = vector.broadcast %cst_20 : bf16 to vector<256x128xbf16>
    %c14_i32 = arith.constant 14 : i32
    %55 = vector.broadcast %c14_i32 : i32 to vector<256x1xi32>
    %56 = arith.cmpi sle, %53, %55 : vector<256x1xi32>
    %57 = vector.shape_cast %56 : vector<256x1xi1> to vector<256x1xi1>
    %58 = vector.broadcast %57 : vector<256x1xi1> to vector<256x128xi1>
    %59 = arith.select %58, %36, %54 : vector<256x128xi1>, vector<256x128xbf16>
    %c1_i32_21 = arith.constant 1 : i32
    %60 = vector.broadcast %c1_i32_21 : i32 to vector<256x1xi32>
    %61 = arith.cmpi sge, %53, %60 : vector<256x1xi32>
    %62 = vector.shape_cast %61 : vector<256x1xi1> to vector<256x1xi1>
    %63 = vector.broadcast %62 : vector<256x1xi1> to vector<256x128xi1>
    %64 = arith.select %63, %36, %54 : vector<256x128xi1>, vector<256x128xbf16>
    %cst_22 = arith.constant 0.000000e+00 : bf16
    %65 = vector.broadcast %cst_22 : bf16 to vector<17x128xbf16>
    %66 = tpu.concatenate %65, %59, %65 in 0 : vector<17x128xbf16>, vector<256x128xbf16>, vector<17x128xbf16> -> vector<290x128xbf16>
    %67 = tpu.concatenate %65, %36, %65 in 0 : vector<17x128xbf16>, vector<256x128xbf16>, vector<17x128xbf16> -> vector<290x128xbf16>
    %68 = tpu.concatenate %65, %64, %65 in 0 : vector<17x128xbf16>, vector<256x128xbf16>, vector<17x128xbf16> -> vector<290x128xbf16>
    %cst_23 = arith.constant 0.000000e+00 : f32
    %69 = vector.broadcast %cst_23 : f32 to vector<256x128xf32>
    %70 = vector.extract_strided_slice %66 {offsets = [0, 0], sizes = [256, 128], strides = [1, 1]} : vector<290x128xbf16> to vector<256x128xbf16>
    %c0_24 = arith.constant 0 : index
    %c0_25 = arith.constant 0 : index
    %c0_26 = arith.constant 0 : index
    %71 = vector.load %arg6[%c0_24, %c0_25, %c0_26] : memref<9x128x128xbf16, #tpu.memory_space<vmem>>, vector<1x128x128xbf16>
    %72 = vector.shape_cast %71 : vector<1x128x128xbf16> to vector<128x128xbf16>
    %cst_27 = arith.constant dense<0.000000e+00> : vector<256x128xf32>
    %73 = tpu.matmul %70, %72, %cst_27 {dimension_numbers = #tpu.dot_dimension_numbers<[1], [0], [0], [1], [0, 0, 1, 1], [], []>} : vector<256x128xbf16>, vector<128x128xbf16>, vector<256x128xf32> -> vector<256x128xf32>
    %74 = arith.addf %69, %73 : vector<256x128xf32>
    %75 = vector.extract_strided_slice %67 {offsets = [1, 0], sizes = [256, 128], strides = [1, 1]} : vector<290x128xbf16> to vector<256x128xbf16>
    %c1_28 = arith.constant 1 : index
    %c0_29 = arith.constant 0 : index
    %c0_30 = arith.constant 0 : index
    %76 = vector.load %arg6[%c1_28, %c0_29, %c0_30] : memref<9x128x128xbf16, #tpu.memory_space<vmem>>, vector<1x128x128xbf16>
    %77 = vector.shape_cast %76 : vector<1x128x128xbf16> to vector<128x128xbf16>
    %cst_31 = arith.constant dense<0.000000e+00> : vector<256x128xf32>
    %78 = tpu.matmul %75, %77, %cst_31 {dimension_numbers = #tpu.dot_dimension_numbers<[1], [0], [0], [1], [0, 0, 1, 1], [], []>} : vector<256x128xbf16>, vector<128x128xbf16>, vector<256x128xf32> -> vector<256x128xf32>
    %79 = arith.addf %74, %78 : vector<256x128xf32>
    %80 = vector.extract_strided_slice %68 {offsets = [2, 0], sizes = [256, 128], strides = [1, 1]} : vector<290x128xbf16> to vector<256x128xbf16>
    %c2_32 = arith.constant 2 : index
    %c0_33 = arith.constant 0 : index
    %c0_34 = arith.constant 0 : index
    %81 = vector.load %arg6[%c2_32, %c0_33, %c0_34] : memref<9x128x128xbf16, #tpu.memory_space<vmem>>, vector<1x128x128xbf16>
    %82 = vector.shape_cast %81 : vector<1x128x128xbf16> to vector<128x128xbf16>
    %cst_35 = arith.constant dense<0.000000e+00> : vector<256x128xf32>
    %83 = tpu.matmul %80, %82, %cst_35 {dimension_numbers = #tpu.dot_dimension_numbers<[1], [0], [0], [1], [0, 0, 1, 1], [], []>} : vector<256x128xbf16>, vector<128x128xbf16>, vector<256x128xf32> -> vector<256x128xf32>
    %84 = arith.addf %79, %83 : vector<256x128xf32>
    %85 = vector.extract_strided_slice %66 {offsets = [16, 0], sizes = [256, 128], strides = [1, 1]} : vector<290x128xbf16> to vector<256x128xbf16>
    %c3 = arith.constant 3 : index
    %c0_36 = arith.constant 0 : index
    %c0_37 = arith.constant 0 : index
    %86 = vector.load %arg6[%c3, %c0_36, %c0_37] : memref<9x128x128xbf16, #tpu.memory_space<vmem>>, vector<1x128x128xbf16>
    %87 = vector.shape_cast %86 : vector<1x128x128xbf16> to vector<128x128xbf16>
    %cst_38 = arith.constant dense<0.000000e+00> : vector<256x128xf32>
    %88 = tpu.matmul %85, %87, %cst_38 {dimension_numbers = #tpu.dot_dimension_numbers<[1], [0], [0], [1], [0, 0, 1, 1], [], []>} : vector<256x128xbf16>, vector<128x128xbf16>, vector<256x128xf32> -> vector<256x128xf32>
    %89 = arith.addf %84, %88 : vector<256x128xf32>
    %90 = vector.extract_strided_slice %67 {offsets = [17, 0], sizes = [256, 128], strides = [1, 1]} : vector<290x128xbf16> to vector<256x128xbf16>
    %c4 = arith.constant 4 : index
    %c0_39 = arith.constant 0 : index
    %c0_40 = arith.constant 0 : index
    %91 = vector.load %arg6[%c4, %c0_39, %c0_40] : memref<9x128x128xbf16, #tpu.memory_space<vmem>>, vector<1x128x128xbf16>
    %92 = vector.shape_cast %91 : vector<1x128x128xbf16> to vector<128x128xbf16>
    %cst_41 = arith.constant dense<0.000000e+00> : vector<256x128xf32>
    %93 = tpu.matmul %90, %92, %cst_41 {dimension_numbers = #tpu.dot_dimension_numbers<[1], [0], [0], [1], [0, 0, 1, 1], [], []>} : vector<256x128xbf16>, vector<128x128xbf16>, vector<256x128xf32> -> vector<256x128xf32>
    %94 = arith.addf %89, %93 : vector<256x128xf32>
    %95 = vector.extract_strided_slice %68 {offsets = [18, 0], sizes = [256, 128], strides = [1, 1]} : vector<290x128xbf16> to vector<256x128xbf16>
    %c5 = arith.constant 5 : index
    %c0_42 = arith.constant 0 : index
    %c0_43 = arith.constant 0 : index
    %96 = vector.load %arg6[%c5, %c0_42, %c0_43] : memref<9x128x128xbf16, #tpu.memory_space<vmem>>, vector<1x128x128xbf16>
    %97 = vector.shape_cast %96 : vector<1x128x128xbf16> to vector<128x128xbf16>
    %cst_44 = arith.constant dense<0.000000e+00> : vector<256x128xf32>
    %98 = tpu.matmul %95, %97, %cst_44 {dimension_numbers = #tpu.dot_dimension_numbers<[1], [0], [0], [1], [0, 0, 1, 1], [], []>} : vector<256x128xbf16>, vector<128x128xbf16>, vector<256x128xf32> -> vector<256x128xf32>
    %99 = arith.addf %94, %98 : vector<256x128xf32>
    %100 = vector.extract_strided_slice %66 {offsets = [32, 0], sizes = [256, 128], strides = [1, 1]} : vector<290x128xbf16> to vector<256x128xbf16>
    %c6 = arith.constant 6 : index
    %c0_45 = arith.constant 0 : index
    %c0_46 = arith.constant 0 : index
    %101 = vector.load %arg6[%c6, %c0_45, %c0_46] : memref<9x128x128xbf16, #tpu.memory_space<vmem>>, vector<1x128x128xbf16>
    %102 = vector.shape_cast %101 : vector<1x128x128xbf16> to vector<128x128xbf16>
    %cst_47 = arith.constant dense<0.000000e+00> : vector<256x128xf32>
    %103 = tpu.matmul %100, %102, %cst_47 {dimension_numbers = #tpu.dot_dimension_numbers<[1], [0], [0], [1], [0, 0, 1, 1], [], []>} : vector<256x128xbf16>, vector<128x128xbf16>, vector<256x128xf32> -> vector<256x128xf32>
    %104 = arith.addf %99, %103 : vector<256x128xf32>
    %105 = vector.extract_strided_slice %67 {offsets = [33, 0], sizes = [256, 128], strides = [1, 1]} : vector<290x128xbf16> to vector<256x128xbf16>
    %c7 = arith.constant 7 : index
    %c0_48 = arith.constant 0 : index
    %c0_49 = arith.constant 0 : index
    %106 = vector.load %arg6[%c7, %c0_48, %c0_49] : memref<9x128x128xbf16, #tpu.memory_space<vmem>>, vector<1x128x128xbf16>
    %107 = vector.shape_cast %106 : vector<1x128x128xbf16> to vector<128x128xbf16>
    %cst_50 = arith.constant dense<0.000000e+00> : vector<256x128xf32>
    %108 = tpu.matmul %105, %107, %cst_50 {dimension_numbers = #tpu.dot_dimension_numbers<[1], [0], [0], [1], [0, 0, 1, 1], [], []>} : vector<256x128xbf16>, vector<128x128xbf16>, vector<256x128xf32> -> vector<256x128xf32>
    %109 = arith.addf %104, %108 : vector<256x128xf32>
    %110 = vector.extract_strided_slice %68 {offsets = [34, 0], sizes = [256, 128], strides = [1, 1]} : vector<290x128xbf16> to vector<256x128xbf16>
    %c8 = arith.constant 8 : index
    %c0_51 = arith.constant 0 : index
    %c0_52 = arith.constant 0 : index
    %111 = vector.load %arg6[%c8, %c0_51, %c0_52] : memref<9x128x128xbf16, #tpu.memory_space<vmem>>, vector<1x128x128xbf16>
    %112 = vector.shape_cast %111 : vector<1x128x128xbf16> to vector<128x128xbf16>
    %cst_53 = arith.constant dense<0.000000e+00> : vector<256x128xf32>
    %113 = tpu.matmul %110, %112, %cst_53 {dimension_numbers = #tpu.dot_dimension_numbers<[1], [0], [0], [1], [0, 0, 1, 1], [], []>} : vector<256x128xbf16>, vector<128x128xbf16>, vector<256x128xf32> -> vector<256x128xf32>
    %114 = arith.addf %109, %113 : vector<256x128xf32>
    %c0_54 = arith.constant 0 : index
    %c0_55 = arith.constant 0 : index
    %115 = vector.load %arg7[%c0_54, %c0_55] : memref<1x128xf32, #tpu.memory_space<vmem>>, vector<1x128xf32>
    %116 = vector.broadcast %115 : vector<1x128xf32> to vector<256x128xf32>
    %117 = arith.mulf %114, %116 : vector<256x128xf32>
    %c0_56 = arith.constant 0 : index
    %c0_57 = arith.constant 0 : index
    %118 = vector.load %arg8[%c0_56, %c0_57] : memref<1x128xf32, #tpu.memory_space<vmem>>, vector<1x128xf32>
    %119 = vector.broadcast %118 : vector<1x128xf32> to vector<256x128xf32>
    %120 = arith.addf %117, %119 : vector<256x128xf32>
    %cst_58 = arith.constant 0.000000e+00 : f32
    %121 = vector.broadcast %cst_58 : f32 to vector<256x128xf32>
    %122 = arith.maximumf %120, %121 : vector<256x128xf32>
    %123 = arith.truncf %122 : vector<256x128xf32> to vector<256x128xbf16>
    %c0_59 = arith.constant 0 : index
    %c0_60 = arith.constant 0 : index
    %124 = vector.load %arg9[%c0_59, %c0_60] : memref<128x128xbf16, #tpu.memory_space<vmem>>, vector<128x128xbf16>
    %cst_61 = arith.constant dense<0.000000e+00> : vector<256x128xf32>
    %125 = tpu.matmul %123, %124, %cst_61 {dimension_numbers = #tpu.dot_dimension_numbers<[1], [0], [0], [1], [0, 0, 1, 1], [], []>} : vector<256x128xbf16>, vector<128x128xbf16>, vector<256x128xf32> -> vector<256x128xf32>
    %c0_62 = arith.constant 0 : index
    %c0_63 = arith.constant 0 : index
    %126 = vector.load %arg10[%c0_62, %c0_63] : memref<1x128xf32, #tpu.memory_space<vmem>>, vector<1x128xf32>
    %127 = vector.broadcast %126 : vector<1x128xf32> to vector<256x128xf32>
    %128 = arith.mulf %125, %127 : vector<256x128xf32>
    %c0_64 = arith.constant 0 : index
    %c0_65 = arith.constant 0 : index
    %129 = vector.load %arg11[%c0_64, %c0_65] : memref<1x128xf32, #tpu.memory_space<vmem>>, vector<1x128xf32>
    %130 = vector.broadcast %129 : vector<1x128xf32> to vector<256x128xf32>
    %131 = arith.addf %128, %130 : vector<256x128xf32>
    %cst_66 = arith.constant dense<0.000000e+00> : vector<128xf32>
    %132 = vector.multi_reduction <add>, %131, %cst_66 [0] : vector<256x128xf32> to vector<128xf32>
    %133 = vector.shape_cast %132 : vector<128xf32> to vector<1x128xf32>
    %cst_67 = arith.constant 2.560000e+02 : f32
    %134 = vector.broadcast %cst_67 : f32 to vector<1x128xf32>
    %135 = arith.divf %133, %134 : vector<1x128xf32>
    %136 = arith.truncf %135 : vector<1x128xf32> to vector<1x128xbf16>
    %c0_68 = arith.constant 0 : index
    %c0_69 = arith.constant 0 : index
    %137 = vector.load %arg12[%c0_68, %c0_69] : memref<128x128xbf16, #tpu.memory_space<vmem>>, vector<128x128xbf16>
    %cst_70 = arith.constant dense<0.000000e+00> : vector<1x128xf32>
    %138 = tpu.matmul %136, %137, %cst_70 {dimension_numbers = #tpu.dot_dimension_numbers<[1], [0], [0], [1], [0, 0, 1, 1], [], []>} : vector<1x128xbf16>, vector<128x128xbf16>, vector<1x128xf32> -> vector<1x128xf32>
    %cst_71 = arith.constant 0.000000e+00 : f32
    %139 = vector.broadcast %cst_71 : f32 to vector<1x128xf32>
    %140 = arith.maximumf %138, %139 : vector<1x128xf32>
    %141 = arith.truncf %140 : vector<1x128xf32> to vector<1x128xbf16>
    %c0_72 = arith.constant 0 : index
    %c0_73 = arith.constant 0 : index
    %142 = vector.load %arg13[%c0_72, %c0_73] : memref<128x128xbf16, #tpu.memory_space<vmem>>, vector<128x128xbf16>
    %cst_74 = arith.constant dense<0.000000e+00> : vector<1x128xf32>
    %143 = tpu.matmul %141, %142, %cst_74 {dimension_numbers = #tpu.dot_dimension_numbers<[1], [0], [0], [1], [0, 0, 1, 1], [], []>} : vector<1x128xbf16>, vector<128x128xbf16>, vector<1x128xf32> -> vector<1x128xf32>
    %144 = arith.negf %143 : vector<1x128xf32>
    %145 = math.exp %144 : vector<1x128xf32>
    %cst_75 = arith.constant 1.000000e+00 : f32
    %146 = vector.broadcast %cst_75 : f32 to vector<1x128xf32>
    %147 = arith.addf %146, %145 : vector<1x128xf32>
    %148 = arith.divf %146, %147 : vector<1x128xf32>
    %149 = vector.broadcast %148 : vector<1x128xf32> to vector<256x128xf32>
    %150 = arith.mulf %131, %149 : vector<256x128xf32>
    %151 = arith.extf %1 : vector<256x128xbf16> to vector<256x128xf32>
    %152 = arith.addf %150, %151 : vector<256x128xf32>
    %cst_76 = arith.constant 0.000000e+00 : f32
    %153 = vector.broadcast %cst_76 : f32 to vector<256x128xf32>
    %154 = arith.maximumf %152, %153 : vector<256x128xf32>
    %155 = arith.truncf %154 : vector<256x128xf32> to vector<256x128xbf16>
    %c0_77 = arith.constant 0 : index
    %c0_78 = arith.constant 0 : index
    %c0_79 = arith.constant 0 : index
    %156 = vector.load %arg14[%c0_77, %c0_78, %c0_79] : memref<1x256x128xbf16, #tpu.memory_space<vmem>>, vector<1x256x128xbf16>
    %157 = vector.shape_cast %156 : vector<1x256x128xbf16> to vector<256x128xbf16>
    %158 = vector.shape_cast %155 : vector<256x128xbf16> to vector<1x256x128xbf16>
    tpu.vector_store %arg14[%c0_77, %c0_78, %c0_79], %158 {strides = array<i32>} : memref<1x256x128xbf16, #tpu.memory_space<vmem>>, vector<1x256x128xbf16>,
    return
  }
  func.func @transform_0(%arg0: i32) -> (i32, i32, i32) {
    %c0_i32 = arith.constant 0 : i32
    %c0_i32_0 = arith.constant 0 : i32
    %c0_i32_1 = arith.constant 0 : i32
    return %arg0, %c0_i32, %c0_i32_0 : i32, i32, i32
  }
  func.func @transform_1(%arg0: i32) -> (i32, i32) {
    %c0_i32 = arith.constant 0 : i32
    %c0_i32_0 = arith.constant 0 : i32
    %c0_i32_1 = arith.constant 0 : i32
    return %c0_i32, %c0_i32_0 : i32, i32
  }
  func.func @transform_2(%arg0: i32) -> (i32, i32) {
    %c0_i32 = arith.constant 0 : i32
    %c0_i32_0 = arith.constant 0 : i32
    %c0_i32_1 = arith.constant 0 : i32
    return %c0_i32, %c0_i32_0 : i32, i32
  }
  func.func @transform_3(%arg0: i32) -> (i32, i32) {
    %c0_i32 = arith.constant 0 : i32
    %c0_i32_0 = arith.constant 0 : i32
    %c0_i32_1 = arith.constant 0 : i32
    return %c0_i32, %c0_i32_0 : i32, i32
  }
  func.func @transform_4(%arg0: i32) -> (i32, i32) {
    %c0_i32 = arith.constant 0 : i32
    %c0_i32_0 = arith.constant 0 : i32
    %c0_i32_1 = arith.constant 0 : i32
    return %c0_i32, %c0_i32_0 : i32, i32
  }
  func.func @transform_5(%arg0: i32) -> (i32, i32, i32) {
    %c0_i32 = arith.constant 0 : i32
    %c0_i32_0 = arith.constant 0 : i32
    %c0_i32_1 = arith.constant 0 : i32
    %c0_i32_2 = arith.constant 0 : i32
    return %c0_i32, %c0_i32_0, %c0_i32_1 : i32, i32, i32
  }
  func.func @transform_6(%arg0: i32) -> (i32, i32) {
    %c0_i32 = arith.constant 0 : i32
    %c0_i32_0 = arith.constant 0 : i32
    %c0_i32_1 = arith.constant 0 : i32
    return %c0_i32, %c0_i32_0 : i32, i32
  }
  func.func @transform_7(%arg0: i32) -> (i32, i32) {
    %c0_i32 = arith.constant 0 : i32
    %c0_i32_0 = arith.constant 0 : i32
    %c0_i32_1 = arith.constant 0 : i32
    return %c0_i32, %c0_i32_0 : i32, i32
  }
  func.func @transform_8(%arg0: i32) -> (i32, i32) {
    %c0_i32 = arith.constant 0 : i32
    %c0_i32_0 = arith.constant 0 : i32
    %c0_i32_1 = arith.constant 0 : i32
    return %c0_i32, %c0_i32_0 : i32, i32
  }
  func.func @transform_9(%arg0: i32) -> (i32, i32) {
    %c0_i32 = arith.constant 0 : i32
    %c0_i32_0 = arith.constant 0 : i32
    %c0_i32_1 = arith.constant 0 : i32
    return %c0_i32, %c0_i32_0 : i32, i32
  }
  func.func @transform_10(%arg0: i32) -> (i32, i32) {
    %c0_i32 = arith.constant 0 : i32
    %c0_i32_0 = arith.constant 0 : i32
    %c0_i32_1 = arith.constant 0 : i32
    return %c0_i32, %c0_i32_0 : i32, i32
  }
  func.func @transform_11(%arg0: i32) -> (i32, i32) {
    %c0_i32 = arith.constant 0 : i32
    %c0_i32_0 = arith.constant 0 : i32
    %c0_i32_1 = arith.constant 0 : i32
    return %c0_i32, %c0_i32_0 : i32, i32
  }
  func.func @transform_12(%arg0: i32) -> (i32, i32) {
    %c0_i32 = arith.constant 0 : i32
    %c0_i32_0 = arith.constant 0 : i32
    %c0_i32_1 = arith.constant 0 : i32
    return %c0_i32, %c0_i32_0 : i32, i32
  }
  func.func @transform_13(%arg0: i32) -> (i32, i32, i32) {
    %c0_i32 = arith.constant 0 : i32
    %c0_i32_0 = arith.constant 0 : i32
    %c0_i32_1 = arith.constant 0 : i32
    return %arg0, %c0_i32, %c0_i32_0 : i32, i32, i32
  }
}

</mosaic_0001>

<bundles_post_ra>
// kernel: eca_bottleneck_forward.1
= control target key start
LH: loop header
LB: loop body
LE: loop exit
PB: predicated region body
PF: predicated region fallthrough
CT: control target
= control target key end

     0   :  { %s5974_s25 = smov 0   ;;  %s9006_s0 = inlined_call_operand.vmem [shape: bf16[2,256,128], index: 0, kind: input, shape index: {}, may-alias: {0,13}]   ;;  %s9007_s1 = inlined_call_operand.vmem [shape: bf16[128,128], index: 1, kind: input, shape index: {}]   ;;  %s9008_s2 = inlined_call_operand.vmem [shape: f32[3,128], index: 2, kind: input, shape index: {}]   ;;  %s9009_s3 = inlined_call_operand.vmem [shape: f32[1,128], index: 3, kind: input, shape index: {}]   ;;  %s9010_s4 = inlined_call_operand.vmem [shape: f32[1,128], index: 4, kind: input, shape index: {}]   ;;  %s9011_s5 = inlined_call_operand.vmem [shape: bf16[9,128,128], index: 5, kind: input, shape index: {}]   ;;  %s9012_s6 = inlined_call_operand.vmem [shape: f32[1,128], index: 6, kind: input, shape index: {}]   ;;  %s9013_s7 = inlined_call_operand.vmem [shape: f32[1,128], index: 7, kind: input, shape index: {}]   ;;  %s9014_s8 = inlined_call_operand.vmem [shape: bf16[128,128], index: 8, kind: input, shape index: {}]   ;;  %s9015_s9 = inlined_call_operand.vmem [shape: f32[1,128], index: 9, kind: input, shape index: {}]   ;;  %s9016_s10 = inlined_call_operand.vmem [shape: f32[1,128], index: 10, kind: input, shape index: {}]   ;;  %s9017_s11 = inlined_call_operand.vmem [shape: bf16[128,128], index: 11, kind: input, shape index: {}]   ;;  %s9018_s12 = inlined_call_operand.vmem [shape: bf16[128,128], index: 12, kind: input, shape index: {}]   ;;  %s9019_s13 = inlined_call_operand.vmem [shape: bf16[2,256,128], index: 13, kind: output, shape index: {}, may-alias: {0,13}]  }
   0x1 LB: > { %s5000_s26 = sadd.s32 4294967295, %s5897_s25   ;;  %p5004_p0 = scmp.ge.s32.totalorder %s5897_s25, 1  ;;  %s5897_s25 = sphi %s5974_s25, %s23_s25  }
   0x2   : > { %p387_p1 = scmp.lt.s32.totalorder %s5897_s25, 3 }
   0x4   : > { %p388_p2 = pnand %p5004_p0, %p387_p1 }
   0x6   : > { %391 = sbr.rel (%p388_p2) target bundleno = 2007 (0x7d7), region = 72 }
   0xb   : > { %v5646_v0 = vld [vmem:[%s9007_s1 + $0x38] sm:$0xff]  ;;  %v5645_v1 = vld [vmem:[%s9007_s1 + $0x30] sm:$0xff]  ;;  %v5644_v2 = vld [vmem:[%s9007_s1 + $0x28] sm:$0xff]  ;;  %p431_p3 = scmp.lt.s32.totalorder %s5000_s26, 1  ;;  %s5900_s15 = smov 1   ;;  %vm772_vm1 = vcmask 7168  }
   0xc   : > { %634 = vmatpush.bf16.msra.mxu0 %v5646_v0  ;;  %5838 = vmatpush.bf16.msra.mxu3 %v5646_v0  ;;  %v5643_v3 = vld [vmem:[%s9007_s1 + $0x20] sm:$0xff]  ;;  %v5642_v4 = vld [vmem:[%s9007_s1 + $0x18] sm:$0xff]  ;;  %v5641_v5 = vld [vmem:[%s9007_s1 + $0x10] sm:$0xff]  ;;  %s5901_s16 = smov 127   ;;  %vm777_vm2 = vcmask 1039360  }
   0xd   : > { %s9574_s26 = smov (!%p431_p3, %s5000_s26), 1  ;;  %v5640_v6 = vld [vmem:[%s9007_s1 + $0x8] sm:$0xff]  ;;  %v5639_v7 = vld [vmem:[%s9007_s1] sm:$0xff] }
   0xe   : > { %s5621_s24 = sshll.u32 %s9574_s26, 7 }
   0xf   : > { %s6014_s14 = scalar_lea.vmem %s9006_s0, %s5621_s24  ;;  %s8972_s20 = scalar_lea.vmem %s9019_s13, %s5621_s24 }
  0x10   : > { %635 = vmatpush.bf16.msra.mxu0 %v5645_v1  ;;  %5839 = vmatpush.bf16.msra.mxu3 %v5645_v1  ;;  %v5623_v8 = vld [vmem:[%s6014_s14] sm:$0xff]  ;;  %v5624_v9 = vld [vmem:[%s6014_s14 + $0x8] sm:$0xff]  ;;  %v5625_v10 = vld [vmem:[%s6014_s14 + $0x10] sm:$0xff] }
  0x11   : > { %v5626_v11 = vld [vmem:[%s6014_s14 + $0x18] sm:$0xff]  ;;  %v5627_v12 = vld [vmem:[%s6014_s14 + $0x20] sm:$0xff]  ;;  %v5628_v13 = vld [vmem:[%s6014_s14 + $0x28] sm:$0xff] }
  0x12   : > { %v5629_v14 = vld [vmem:[%s6014_s14 + $0x30] sm:$0xff]  ;;  %v5630_v15 = vld [vmem:[%s6014_s14 + $0x38] sm:$0xff]  ;;  %v5631_v16 = vld [vmem:[%s6014_s14 + $0x40] sm:$0xff] }
  0x13   : > { %v5636_v17 = vld [vmem:[%s6014_s14 + $0x68] sm:$0xff]  ;;  %v5637_v21 = vld [vmem:[%s6014_s14 + $0x70] sm:$0xff]  ;;  %v5638_v25 = vld [vmem:[%s6014_s14 + $0x78] sm:$0xff] }
  0x14   : > { %636 = vmatpush.bf16.msra.mxu0 %v5644_v2  ;;  %5840 = vmatpush.bf16.msra.mxu3 %v5644_v2  ;;  %v5632_v20 = vld [vmem:[%s6014_s14 + $0x48] sm:$0xff]  ;;  %v5633_v24 = vld [vmem:[%s6014_s14 + $0x50] sm:$0xff]  ;;  %v5634_v28 = vld [vmem:[%s6014_s14 + $0x58] sm:$0xff] }
  0x15   : > { %v5635_v31 = vld [vmem:[%s6014_s14 + $0x60] sm:$0xff] }
  0x18   : > { %637 = vmatpush.bf16.msra.mxu0 %v5643_v3  ;;  %5841 = vmatpush.bf16.msra.mxu3 %v5643_v3 }
  0x1c   : > { %638 = vmatpush.bf16.msra.mxu0 %v5642_v4  ;;  %5842 = vmatpush.bf16.msra.mxu3 %v5642_v4 }
  0x20   : > { %639 = vmatpush.bf16.msra.mxu0 %v5641_v5  ;;  %5843 = vmatpush.bf16.msra.mxu3 %v5641_v5 }
  0x24   : > { %640 = vmatpush.bf16.msra.mxu0 %v5640_v6  ;;  %5844 = vmatpush.bf16.msra.mxu3 %v5640_v6 }
  0x28   : > { %641 = vmatpush.bf16.msra.mxu0 %v5639_v7  ;;  %5845 = vmatpush.bf16.msra.mxu3 %v5639_v7 }
  0x2b   : > { %642 = vmatmul.bf16.vlgmr.msra.gmra.mxu0 %v5623_v8  ;;  %707 = vmatmul.bf16.vlgmr.msra.gmra.mxu3 %v5636_v17 }
  0x3b   : > { %647 = vmatmul.bf16.gmra.mxu0 %v5624_v9  ;;  %712 = vmatmul.bf16.gmra.mxu3 %v5637_v21 }
  0x4b   : > { %652 = vmatmul.bf16.gmra.mxu0 %v5625_v10  ;;  %717 = vmatmul.bf16.gmra.mxu3 %v5638_v25 }
  0x5b   : > { %657 = vmatmul.bf16.gmra.mxu0 %v5626_v11 }
  0x6b   : > { %662 = vmatmul.bf16.gmra.mxu0 %v5627_v12 }
  0x7b   : > { %667 = vmatmul.bf16.gmra.mxu0 %v5628_v13  ;;  %v5899_v13 = vmov 256.0  }
  0x7c   : > { %5881 = vrcp.f32 %v5899_v13 }
  0x8b   : > { %672 = vmatmul.bf16.gmra.mxu0 %v5629_v14 }
  0x9b   : > { %677 = vmatmul.bf16.gmra.mxu0 %v5630_v15 }
  0xa8   : > { %v6026_v18 = vpop.f32.mrf.mxu0 }
  0xab   : > { %682 = vmatmul.bf16.gmra.mxu0 %v5631_v16 }
  0xae   : > { %v6080_v50 = vpop.f32.mrf.mxu3 }
  0xb0   : > { %v6028_v19 = vpop.f32.mrf.mxu0 }
  0xb1   : > { %v723_v44 = vadd.f32 %v6028_v19, %v6026_v18 }
  0xb6   : > { %v6089_v57 = vpop.f32.mrf.mxu3 }
  0xb8   : > { %v6032_v22 = vpop.f32.mrf.mxu0 }
  0xb9   : > { %v724_v45 = vadd.f32 %v723_v44, %v6032_v22 }
  0xbb   : > { %687 = vmatmul.bf16.gmra.mxu0 %v5632_v20  ;;  %v5882_v20 = vpop.eup %5881 }
  0xbc   : > { %v761_v25 = vmul.f32 256.0, %v5882_v20  ;;  %vm765_vm0 = vweird.f32 %v5882_v20 }
  0xbe   : > { %v6098_v0 = vpop.f32.mrf.mxu3 }
  0xc0   : > { %v6034_v23 = vpop.f32.mrf.mxu0 }
  0xc1   : > { %v725_v46 = vadd.f32 %v724_v45, %v6034_v23  ;;  %v762_v45 = vsub.f32 1.0, %v761_v25  ;;  %v6161_v25 = vld [vmem:[%s9011_s5 + $0x20] sm:$0xff] }
  0xc2   : > { %9139 = vst [vmem:[#allocation6_spill] sm:$0xff] %v6161_v25 }
  0xc6   : > { %v6107_v7 = vpop.f32.mrf.mxu3 }
  0xc8   : > { %v6038_v26 = vpop.f32.mrf.mxu0 }
  0xc9   : > { %v726_v47 = vadd.f32 %v725_v46, %v6038_v26 }
  0xcb   : > { %692 = vmatmul.bf16.gmra.mxu0 %v5633_v24 }
  0xce   : > { %v6118_v16 = vpop.f32.mrf.mxu3 }
  0xd0   : > { %v6040_v27 = vpop.f32.mrf.mxu0 }
  0xd1   : > { %v727_v49 = vadd.f32 %v726_v47, %v6040_v27 }
  0xd6   : > { %v6125_v44 = vpop.f32.mrf.mxu3 }
  0xd8   : > { %v6043_v29 = vpop.f32.mrf.mxu0 }
  0xd9   : > { %v728_v51 = vadd.f32 %v727_v49, %v6043_v29  ;;  %v763_v49 = vmul.f32 %v5882_v20, %v762_v45 }
  0xdb   : > { %697 = vmatmul.bf16.gmra.mxu0 %v5634_v28 }
  0xe0   : > { %v6045_v30 = vpop.f32.mrf.mxu0 }
  0xe1   : > { %v729_v52 = vadd.f32 %v728_v51, %v6045_v30 }
  0xe8   : > { %v6048_v32 = vpop.f32.mrf.mxu0 }
  0xe9   : > { %v730_v53 = vadd.f32 %v729_v52, %v6048_v32 }
  0xeb   : > { %702 = vmatmul.bf16.gmra.mxu0 %v5635_v31 }
  0xf0   : > { %v6050_v33 = vpop.f32.mrf.mxu0 }
  0xf1   : > { %v731_v55 = vadd.f32 %v730_v53, %v6050_v33  ;;  %v764_v53 = vadd.f32 %v5882_v20, %v763_v49 }
  0xf8   : > { %v6052_v34 = vpop.f32.mrf.mxu0 }
  0xf9   : > { %v732_v56 = vadd.f32 %v731_v55, %v6052_v34 }
 0x100   : > { %v6054_v35 = vpop.f32.mrf.mxu0 }
 0x101   : > { %v733_v58 = vadd.f32 %v732_v56, %v6054_v35 }
 0x108   : > { %v6056_v36 = vpop.f32.mrf.mxu0 }
 0x109   : > { %v734_v59 = vadd.f32 %v733_v58, %v6056_v36  ;;  %v6128_v58 = vsel %vm765_vm0, %v5882_v20, %v764_v53  ;;  %v6155_v20 = vld [vmem:[%s9011_s5 + $0x28] sm:$0xff] }
 0x10a   : > { %9135 = vst [vmem:[#allocation2_spill] sm:$0xff] %v6128_v58 }
 0x10b   : > { %9138 = vst [vmem:[#allocation5_spill] sm:$0xff] %v6155_v20 }
 0x110   : > { %v6058_v37 = vpop.f32.mrf.mxu0 }
 0x111   : > { %v735_v61 = vadd.f32 %v734_v59, %v6058_v37 }
 0x118   : > { %v6060_v38 = vpop.f32.mrf.mxu0 }
 0x119   : > { %v736_v62 = vadd.f32 %v735_v61, %v6060_v38 }
 0x120   : > { %v6062_v39 = vpop.f32.mrf.mxu0 }
 0x121   : > { %v737_v63 = vadd.f32 %v736_v62, %v6062_v39  ;;  %v6134_v62 = vld [vmem:[%s9011_s5 + $0x38] sm:$0xff] }
 0x122   : > { %9136 = vst [vmem:[#allocation3_spill] sm:$0xff] %v6134_v62  ;;  %2730 = vmatpush.bf16.msra.mxu2 %v6134_v62 }
 0x128   : > { %v6064_v40 = vpop.f32.mrf.mxu0 }
 0x129   : > { %v738_v1 = vadd.f32 %v737_v63, %v6064_v40 }
 0x130   : > { %v6066_v41 = vpop.f32.mrf.mxu0 }
 0x131   : > { %v739_v3 = vadd.f32 %v738_v1, %v6066_v41  ;;  %v6140_v1 = vld [vmem:[%s9011_s5 + $0x30] sm:$0xff] }
 0x132   : > { %9137 = vst [vmem:[#allocation4_spill] sm:$0xff] %v6140_v1  ;;  %2731 = vmatpush.bf16.msra.mxu2 %v6140_v1 }
 0x136   : > { %2732 = vmatpush.bf16.msra.mxu2 %v6155_v20 }
 0x138   : > { %v6068_v42 = vpop.f32.mrf.mxu0 }
 0x139   : > { %v740_v4 = vadd.f32 %v739_v3, %v6068_v42  ;;  %v779_v3 = vld [vmem:[%s9008_s2] sm:$0x1] }
 0x13a   : > { %2733 = vmatpush.bf16.msra.mxu2 %v6161_v25 }
 0x140   : > { %v6070_v43 = vpop.f32.mrf.mxu0 }
 0x141   : > { %v741_v5 = vadd.f32 %v740_v4, %v6070_v43 }
 0x148   : > { %v6077_v48 = vpop.f32.mrf.mxu0 }
 0x149   : > { %v742_v6 = vadd.f32 %v741_v5, %v6077_v48  ;;  %v781_v5 = vld [vmem:[%s9008_s2 + $0x1] sm:$0x1] }
 0x150   : > { %v6085_v54 = vpop.f32.mrf.mxu0 }
 0x151   : > { %v743_v9 = vadd.f32 %v742_v6, %v6085_v54 }
 0x158   : > { %v6093_v60 = vpop.f32.mrf.mxu0 }
 0x159   : > { %v744_v10 = vadd.f32 %v743_v9, %v6093_v60  ;;  %v784_v9 = vld [vmem:[%s9008_s2 + $0x2] sm:$0x1] }
 0x160   : > { %v6101_v2 = vpop.f32.mrf.mxu0 }
 0x161   : > { %v745_v11 = vadd.f32 %v744_v10, %v6101_v2 }
 0x168   : > { %v6109_v8 = vpop.f32.mrf.mxu0 }
 0x169   : > { %v746_v12 = vadd.f32 %v745_v11, %v6109_v8 }
 0x170   : > { %v6115_v14 = vpop.f32.mrf.mxu0 }
 0x171   : > { %v747_v15 = vadd.f32 %v746_v12, %v6115_v14 }
 0x173   : > { %v748_v17 = vadd.f32 %v747_v15, %v6080_v50 }
 0x175   : > { %v749_v21 = vadd.f32 %v748_v17, %v6089_v57 }
 0x177   : > { %v750_v24 = vadd.f32 %v749_v21, %v6098_v0 }
 0x179   : > { %v751_v28 = vadd.f32 %v750_v24, %v6107_v7 }
 0x17b   : > { %v752_v31 = vadd.f32 %v751_v28, %v6118_v16  ;;  %v975_v28 = vlaneseq }
 0x17d   : > { %v753_v46 = vadd.f32 %v752_v31, %v6125_v44  ;;  %v6164_v45 = vshrl.u32 %v975_v28, 7 }
 0x17f   : > { %v754_v47 = vrot.slane %v753_v46, 4  ;;  %9140 = vst [vmem:[#allocation7_spill] sm:$0xff] %v6164_v45  ;;  %v6170_v49 = vadd.s32 32, %v6164_v45  ;;  %v6212_v28 = vadd.s32 224, %v6164_v45 }
 0x181   : > { %v755_v51 = vadd.f32 %v754_v47, %v753_v46  ;;  %v6167_v47 = vadd.s32 16, %v6164_v45  ;;  %9145 = vst [vmem:[#allocation12_spill] sm:$0xff] %v6212_v28 }
 0x183   : > { %v756_v52 = vrot.slane %v755_v51, 2 }
 0x185   : > { %v757_v55 = vadd.f32 %v756_v52, %v755_v51  ;;  %v6175_v52 = vld [vmem:[%s9011_s5 + $0x18] sm:$0xff] }
 0x186   : > { %9141 = vst [vmem:[#allocation8_spill] sm:$0xff] %v6175_v52  ;;  %2734 = vmatpush.bf16.msra.mxu2 %v6175_v52 }
 0x187   : > { %v758_v56 = vrot.slane %v757_v55, 1 }
 0x189   : > { %v759_v59 = vadd.f32 %v758_v56, %v757_v55 }
 0x18b   : > { %v767_v61 = vmul.f32 %v6128_v58, %v759_v59  ;;  %v6222_v59 = vadd.s32 200, %v6164_v45 }
 0x18d   : > { %769 = vrot.lane.b32.xlu0 %v767_v61, %s5900_s15  ;;  %v782_v10 = vmul.f32 %v781_v5, %v767_v61  ;;  %v6185_v5 = vadd.s32 64, %v6164_v45 }
 0x195   : > { %774 = vrot.lane.b32.xlu0 %v767_v61, %s5901_s16 }
 0x1ff   : > { %v770_v63 = vpop.permute.xlu0 %769 }
 0x200   : > { %v773_v4 = vsel %vm772_vm1, 0.0, %v770_v63  ;;  %v6182_v63 = vadd.s32 48, %v6164_v45 }
 0x201   : > { %v780_v6 = vmul.f32 %v779_v3, %v773_v4 }
 0x203   : > { %v783_v13 = vadd.f32 %v782_v10, %v780_v6  ;;  %v6188_v6 = vadd.s32 80, %v6164_v45  ;;  %v6194_v10 = vadd.s32 112, %v6164_v45 }
 0x207   : > { %v775_v11 = vpop.permute.xlu0 %774 }
 0x208   : > { %v778_v12 = vsel %vm777_vm2, %v775_v11, 0.0  ;;  %v6197_v11 = vadd.s32 128, %v6164_v45  ;;  %vm5902_vm2 = vmmov 1  }
 0x209   : > { %v785_v15 = vmul.f32 %v784_v9, %v778_v12  ;;  %v6191_v9 = vadd.s32 96, %v6164_v45  ;;  %v6200_v12 = vadd.s32 144, %v6164_v45 }
 0x20b   : > { %v786_v17 = vadd.f32 %v785_v15, %v783_v13  ;;  %v6203_v15 = vadd.s32 160, %v6164_v45 }
 0x20d   : > { %v5105_v21 = vmul.f32 -1.442695, %v786_v17  ;;  %9142 = vst [vmem:[#allocation9_spill] sm:$0xff] %v6203_v15  ;;  %v6206_v17 = vadd.s32 208, %v6164_v45 }
 0x20f   : > { %5883 = vpow2.f32 %v5105_v21  ;;  %9143 = vst [vmem:[#allocation10_spill] sm:$0xff] %v6206_v17  ;;  %v6209_v21 = vadd.s32 176, %v6164_v45 }
 0x211   : > { %9144 = vst [vmem:[#allocation11_spill] sm:$0xff] %v6209_v21 }
 0x215   : > { %v5884_v24 = vpop.eup %5883 }
 0x216   : > { %v790_v31 = vadd.f32 1.0, %v5884_v24 }
 0x218   : > { %5885 = vrcp.f32 %v790_v31  ;;  %v802_v61 = vand.u32 2147483648, %v790_v31  ;;  %v800_v4 = vand.u32 2147483647, %v790_v31  ;;  %vm796_vm4 = vweird.f32 %v790_v31 }
 0x21a   : > { %v803_v24 = vor.u32 1.1754944e-38, %v802_v61  ;;  %vm801_vm6 = vcmp.eq.f32.partialorder %v800_v4, 8.507059e+37 }
 0x21e   : > { %v5886_v46 = vpop.eup %5885 }
 0x21f   : > { %v792_v51 = vmul.f32 %v5886_v46, %v790_v31  ;;  %vm797_vm3 = vweird.f32 %v5886_v46 }
 0x220   : > { %vm798_vm5 = vmor %vm796_vm4, %vm797_vm3 }
 0x221   : > { %v793_v53 = vsub.f32 1.0, %v792_v51  ;;  %v6215_v51 = vadd.s32 192, %v6164_v45  ;;  %vm6479_vm3 = vmpackc.low %vm5902_vm2, %vm5902_vm2 }
 0x223   : > { %v794_v3 = vmul.f32 %v5886_v46, %v793_v53  ;;  %9146 = vst [vmem:[#allocation13_spill] sm:$0xff] %v6215_v51 }
 0x225   : > { %v795_v13 = vadd.f32 %v5886_v46, %v794_v3  ;;  %v6219_v3 = vadd.s32 240, %v6164_v45 }
 0x227   : > { %v799_v53 = vsel %vm798_vm5, %v5886_v46, %v795_v13  ;;  %9147 = vst [vmem:[#allocation14_spill] sm:$0xff] %v6219_v3 }
 0x228   : > { %v804_v56 = vsel %vm801_vm6, %v803_v24, %v799_v53 }
 0x229   : > { %v806_v52 = vperm.slane %v804_v56, 0 }
 0x22b   : > { %v807_v25 = vmul.f32 %v806_v52, %v6026_v18  ;;  %v808_v46 = vmul.f32 %v806_v52, %v6028_v19  ;;  %v809_v4 = vmul.f32 %v806_v52, %v6032_v22  ;;  %v810_v13 = vmul.f32 %v806_v52, %v6034_v23 }
 0x22c   : > { %v811_v31 = vmul.f32 %v806_v52, %v6038_v26  ;;  %v812_v20 = vmul.f32 %v806_v52, %v6040_v27  ;;  %v813_v24 = vmul.f32 %v806_v52, %v6043_v29  ;;  %v814_v53 = vmul.f32 %v806_v52, %v6045_v30  ;;  %v5875_v26 = vld [vmem:[%s9009_s3] ss:$0 sm:$0xff] }
 0x22d   : > { %v815_v61 = vmul.f32 %v806_v52, %v6048_v32  ;;  %v816_v56 = vmul.f32 %v806_v52, %v6050_v33  ;;  %v817_v18 = vmul.f32 %v806_v52, %v6052_v34  ;;  %v818_v19 = vmul.f32 %v806_v52, %v6054_v35 }
 0x22e   : > { %v819_v22 = vmul.f32 %v806_v52, %v6056_v36  ;;  %v820_v23 = vmul.f32 %v806_v52, %v6058_v37  ;;  %v821_v27 = vmul.f32 %v806_v52, %v6060_v38  ;;  %v822_v29 = vmul.f32 %v806_v52, %v6062_v39  ;;  %v5678_v37 = vld [vmem:[%s9011_s5 + $0xf8] sm:$0xff] }
 0x22f   : > { %v823_v30 = vmul.f32 %v806_v52, %v6064_v40  ;;  %v824_v32 = vmul.f32 %v806_v52, %v6066_v41  ;;  %v825_v33 = vmul.f32 %v806_v52, %v6068_v42  ;;  %v826_v34 = vmul.f32 %v806_v52, %v6070_v43  ;;  %3122 = vmatpush.bf16.msrb.mxu0 %v5678_v37 }
 0x230   : > { %v827_v35 = vmul.f32 %v806_v52, %v6077_v48  ;;  %v828_v36 = vmul.f32 %v806_v52, %v6085_v54  ;;  %v829_v38 = vmul.f32 %v806_v52, %v6093_v60  ;;  %v830_v39 = vmul.f32 %v806_v52, %v6101_v2 }
 0x231   : > { %v831_v40 = vmul.f32 %v806_v52, %v6109_v8  ;;  %v832_v41 = vmul.f32 %v806_v52, %v6115_v14  ;;  %v833_v42 = vmul.f32 %v806_v52, %v6080_v50  ;;  %v834_v43 = vmul.f32 %v806_v52, %v6089_v57 }
 0x232   : > { %v835_v48 = vmul.f32 %v806_v52, %v6098_v0  ;;  %v836_v54 = vmul.f32 %v806_v52, %v6107_v7  ;;  %v837_v58 = vmul.f32 %v806_v52, %v6118_v16  ;;  %v838_v55 = vmul.f32 %v806_v52, %v6125_v44  ;;  %v5876_v7 = vld [vmem:[%s9010_s4] ss:$0 sm:$0xff] }
 0x233   : > { %v843_v60 = vmul.f32 %v5875_v26, %v807_v25  ;;  %v844_v1 = vmul.f32 %v5875_v26, %v808_v46  ;;  %v851_v2 = vmul.f32 %v5875_v26, %v815_v61  ;;  %v852_v62 = vmul.f32 %v5875_v26, %v816_v56 }
 0x234   : > { %v853_v8 = vmul.f32 %v5875_v26, %v817_v18  ;;  %v854_v3 = vmul.f32 %v5875_v26, %v818_v19  ;;  %v855_v14 = vmul.f32 %v5875_v26, %v819_v22  ;;  %v856_v28 = vmul.f32 %v5875_v26, %v820_v23 }
 0x235   : > { %v857_v50 = vmul.f32 %v5875_v26, %v821_v27  ;;  %v858_v51 = vmul.f32 %v5875_v26, %v822_v29  ;;  %v859_v57 = vmul.f32 %v5875_v26, %v823_v30  ;;  %v860_v21 = vmul.f32 %v5875_v26, %v824_v32 }
 0x236   : > { %v861_v0 = vmul.f32 %v5875_v26, %v825_v33  ;;  %v862_v17 = vmul.f32 %v5875_v26, %v826_v34  ;;  %v845_v16 = vmul.f32 %v5875_v26, %v809_v4  ;;  %v846_v44 = vmul.f32 %v5875_v26, %v810_v13 }
 0x237   : > { %v863_v25 = vmul.f32 %v5875_v26, %v827_v35  ;;  %v864_v52 = vmul.f32 %v5875_v26, %v828_v36  ;;  %v847_v61 = vmul.f32 %v5875_v26, %v811_v31  ;;  %v848_v46 = vmul.f32 %v5875_v26, %v812_v20 }
 0x238   : > { %v849_v56 = vmul.f32 %v5875_v26, %v813_v24  ;;  %v850_v18 = vmul.f32 %v5875_v26, %v814_v53  ;;  %v865_v19 = vmul.f32 %v5875_v26, %v829_v38  ;;  %v866_v22 = vmul.f32 %v5875_v26, %v830_v39 }
 0x239   : > { %v867_v23 = vmul.f32 %v5875_v26, %v831_v40  ;;  %v868_v27 = vmul.f32 %v5875_v26, %v832_v41  ;;  %v869_v29 = vmul.f32 %v5875_v26, %v833_v42  ;;  %v870_v30 = vmul.f32 %v5875_v26, %v834_v43 }
 0x23a   : > { %v871_v32 = vmul.f32 %v5875_v26, %v835_v48  ;;  %v872_v33 = vmul.f32 %v5875_v26, %v836_v54  ;;  %v873_v34 = vmul.f32 %v5875_v26, %v837_v58  ;;  %v874_v37 = vmul.f32 %v5875_v26, %v838_v55 }
 0x23b   : > { %v6278_v15 = vadd.f32 %v5876_v7, %v843_v60  ;;  %v6280_v4 = vadd.f32 %v5876_v7, %v844_v1  ;;  %v6282_v13 = vadd.f32 %v5876_v7, %v851_v2  ;;  %v6284_v31 = vadd.f32 %v5876_v7, %v852_v62 }
 0x23c   : > { %v6286_v20 = vadd.f32 %v5876_v7, %v853_v8  ;;  %v6288_v24 = vadd.f32 %v5876_v7, %v854_v3  ;;  %v6290_v53 = vadd.f32 %v5876_v7, %v855_v14  ;;  %v6292_v35 = vadd.f32 %v5876_v7, %v856_v28 }
 0x23d   : > { %v6294_v36 = vadd.f32 %v5876_v7, %v857_v50  ;;  %v6296_v58 = vadd.f32 %v5876_v7, %v858_v51  ;;  %v6298_v55 = vadd.f32 %v5876_v7, %v859_v57  ;;  %v6300_v1 = vadd.f32 %v5876_v7, %v860_v21 }
 0x23e   : > { %v6302_v26 = vadd.f32 %v5876_v7, %v861_v0  ;;  %v6304_v62 = vadd.f32 %v5876_v7, %v862_v17  ;;  %v6306_v38 = vadd.f32 %v5876_v7, %v845_v16  ;;  %v6308_v3 = vadd.f32 %v5876_v7, %v846_v44 }
 0x23f   : > { %v6310_v39 = vadd.f32 %v5876_v7, %v863_v25  ;;  %v6312_v28 = vadd.f32 %v5876_v7, %v864_v52  ;;  %v6314_v40 = vadd.f32 %v5876_v7, %v847_v61  ;;  %v6316_v51 = vadd.f32 %v5876_v7, %v848_v46  ;;  %v5662_v46 = vld [vmem:[%s9011_s5 + $0x78] sm:$0xff] }
 0x240   : > { %v6318_v41 = vadd.f32 %v5876_v7, %v849_v56  ;;  %v6320_v21 = vadd.f32 %v5876_v7, %v850_v18  ;;  %v6322_v42 = vadd.f32 %v5876_v7, %v865_v19  ;;  %v6324_v17 = vadd.f32 %v5876_v7, %v866_v22  ;;  %2593 = vmatpush.bf16.msra.mxu1 %v5662_v46 }
 0x241   : > { %v6326_v43 = vadd.f32 %v5876_v7, %v867_v23  ;;  %v6328_v48 = vadd.f32 %v5876_v7, %v868_v27  ;;  %v9148_v54 = vand.u32 15, %v6164_v45  ;;  %v9151_v2 = vand.u32 15, %v6167_v47  ;;  %v5677_v23 = vld [vmem:[%s9011_s5 + $0xf0] sm:$0xff]  ;;  %5846 = vmatpush.bf16.msrb.mxu3 %v5662_v46 }
 0x242   : > { %v6342_v14 = vadd.f32 %v5876_v7, %v869_v29  ;;  %v6344_v50 = vadd.f32 %v5876_v7, %v870_v30  ;;  %v6346_v57 = vadd.f32 %v5876_v7, %v871_v32  ;;  %v6348_v0 = vadd.f32 %v5876_v7, %v872_v33  ;;  %3123 = vmatpush.bf16.msrb.mxu0 %v5677_v23 }
 0x243   : > { %vm6332_vm7 = vcmp.ge.s32.totalorder %v9148_v54, 1  ;;  %vm6338_vm8 = vcmp.ge.s32.totalorder %v9151_v2, 1  ;;  %v9154_v16 = vand.u32 15, %v6170_v49  ;;  %v9155_v44 = vmov 0  ;;  %v6368_v49 = vld [vmem:[%s9011_s5 + $0x10] sm:$0xff] }
 0x244   : > { %v6356_v25 = vadd.f32 %v5876_v7, %v873_v34  ;;  %v6358_v47 = vadd.f32 %v5876_v7, %v874_v37  ;;  %v911_v52 = vmax.f32 %v6278_v15, 0.0  ;;  %v912_v61 = vmax.f32 %v6280_v4, 0.0  ;;  %9157 = vst [vmem:[#allocation15_spill] sm:$0xff] %v6368_v49  ;;  %2735 = vmatpush.bf16.msra.mxu2 %v6368_v49 }
 0x245   : > { %vm6352_vm9 = vcmp.ge.s32.totalorder %v9154_v16, 1  ;;  %v9158_v56 = vand.u32 15, %v6182_v63  ;;  %v913_v7 = vmax.f32 %v6306_v38, 0.0  ;;  %v914_v15 = vmax.f32 %v6308_v3, 0.0 }
 0x246   : > { %v9156_v44 = vsel %vm6352_vm9, 4294967295, %v9155_v44  ;;  %v915_v19 = vmax.f32 %v6314_v40, 0.0  ;;  %v916_v22 = vmax.f32 %v6316_v51, 0.0  ;;  %v9161_v27 = vand.u32 15, %v6185_v5  ;;  %v5657_v51 = vld [vmem:[%s9011_s5 + $0x50] sm:$0xff] }
 0x247   : > { %vm6372_vm10 = vcmp.ge.s32.totalorder %v9158_v56, 1  ;;  %v917_v29 = vmax.f32 %v6318_v41, 0.0  ;;  %v918_v30 = vmax.f32 %v6320_v21, 0.0  ;;  %v919_v32 = vmax.f32 %v6282_v13, 0.0  ;;  %v5676_v41 = vld [vmem:[%s9011_s5 + $0xe8] sm:$0xff] }
 0x248   : > { %vm6385_vm11 = vcmp.ge.s32.totalorder %v9161_v27, 1  ;;  %v920_v33 = vmax.f32 %v6284_v31, 0.0  ;;  %v9164_v34 = vand.u32 15, %v6188_v6  ;;  %v921_v5 = vmax.f32 %v6286_v20, 0.0  ;;  %3124 = vmatpush.bf16.msrb.mxu0 %v5676_v41  ;;  %v9193_v41 = vld [vmem:[#allocation10_spill] sm:$0xff]  ;;  %v5672_v31 = vld [vmem:[%s9011_s5 + $0xc8] sm:$0xff] }
 0x249   : > { %v922_v4 = vmax.f32 %v6288_v24, 0.0  ;;  %v923_v38 = vmax.f32 %v6290_v53, 0.0  ;;  %v924_v3 = vmax.f32 %v6292_v35, 0.0  ;;  %v9167_v13 = vand.u32 15, %v6191_v9  ;;  %v5661_v53 = vld [vmem:[%s9011_s5 + $0x70] sm:$0xff]  ;;  %v6420_v9 = vld [vmem:[%s9011_s5 + $0x8] sm:$0xff] }
 0x24a   : > { %vm6396_vm12 = vcmp.ge.s32.totalorder %v9164_v34, 1  ;;  %v925_v6 = vmax.f32 %v6294_v36, 0.0  ;;  %v926_v40 = vmax.f32 %v6296_v58, 0.0  ;;  %v927_v20 = vmax.f32 %v6298_v55, 0.0  ;;  %9170 = vst [vmem:[#allocation16_spill] sm:$0xff] %v6420_v9  ;;  %2594 = vmatpush.bf16.msra.mxu1 %v5661_v53  ;;  %2736 = vmatpush.bf16.msra.mxu2 %v6420_v9 }
 0x24b   : > { %vm6406_vm13 = vcmp.ge.s32.totalorder %v9167_v13, 1  ;;  %v928_v24 = vmax.f32 %v6300_v1, 0.0  ;;  %v9171_v35 = vand.u32 15, %v6194_v10  ;;  %v929_v36 = vmax.f32 %v6302_v26, 0.0  ;;  %5847 = vmatpush.bf16.msrb.mxu3 %v5661_v53 }
 0x24c   : > { %v930_v58 = vmax.f32 %v6304_v62, 0.0  ;;  %v931_v55 = vmax.f32 %v6310_v39, 0.0  ;;  %v932_v1 = vmax.f32 %v6312_v28, 0.0  ;;  %v9174_v21 = vand.u32 15, %v6197_v11 }
 0x24d   : > { %vm6424_vm14 = vcmp.ge.s32.totalorder %v9171_v35, 1  ;;  %v933_v54 = vmax.f32 %v6322_v42, 0.0  ;;  %v934_v26 = vmax.f32 %v6324_v17, 0.0  ;;  %v935_v62 = vmax.f32 %v6326_v43, 0.0 }
 0x24e   : > { %vm6437_vm15 = vcmp.ge.s32.totalorder %v9174_v21, 1  ;;  %v936_v39 = vmax.f32 %v6328_v48, 0.0  ;;  %v9177_v28 = vand.u32 15, %v6222_v59  ;;  %v937_v11 = vmax.f32 %v6342_v14, 0.0  ;;  %v5671_v48 = vld [vmem:[%s9011_s5 + $0xc0] sm:$0xff] }
 0x24f   : > { %v938_v16 = vmax.f32 %v6344_v50, 0.0  ;;  %v939_v42 = vmax.f32 %v6346_v57, 0.0  ;;  %v940_v17 = vmax.f32 %v6348_v0, 0.0  ;;  %v9180_v43 = vand.u32 15, %v6200_v12  ;;  %v5660_v57 = vld [vmem:[%s9011_s5 + $0x68] sm:$0xff]  ;;  %v6474_v12 = vld [vmem:[%s9011_s5] sm:$0xff] }
 0x250   : > { %vm6448_vm0 = vcmp.le.s32.totalorder %v9177_v28, 14  ;;  %v941_v59 = vmax.f32 %v6356_v25, 0.0  ;;  %v6464_v56 = vpack.c.bf16 %v911_v52, %v911_v52  ;;  %v6466_v14 = vpack.c.bf16 %v912_v61, %v912_v61  ;;  %9184 = vst [vmem:[#allocation18_spill] sm:$0xff] %v6474_v12  ;;  %v5675_v25 = vld [vmem:[%s9011_s5 + $0xe0] sm:$0xff]  ;;  %v9188_v61 = vld [vmem:[#allocation9_spill] sm:$0xff]  ;;  %2595 = vmatpush.bf16.msra.mxu1 %v5660_v57  ;;  %2737 = vmatpush.bf16.msra.mxu2 %v6474_v12 }
 0x251   : > { %vm6458_vm1 = vcmp.ge.s32.totalorder %v9180_v43, 1  ;;  %v9185_v52 = vmov 0  ;;  %v9189_v23 = vand.u32 15, %v9188_v61  ;;  %v9190_v27 = vmov 0  ;;  %v9197_v43 = vld [vmem:[#allocation11_spill] sm:$0xff]  ;;  %3125 = vmatpush.bf16.msrb.mxu0 %v5675_v25  ;;  %5848 = vmatpush.bf16.msrb.mxu3 %v5660_v57 }
 0x252   : > { %9183 = vst [vmem:[#allocation17_spill] sm:$0xff] %v6464_v56  ;;  %v9186_v52 = vsel %vm6479_vm3, 4294967295, %v9185_v52  ;;  %v6489_v34 = vpack.c.bf16 %v913_v7, %v913_v7  ;;  %v6491_v13 = vpack.c.bf16 %v914_v15, %v914_v15  ;;  %v6493_v53 = vpack.c.bf16 %v915_v19, %v915_v19 }
 0x253   : > { %9187 = vst [vmem:[#allocation19_spill] sm:$0xff] %v9186_v52  ;;  %vm6485_vm4 = vcmp.ge.s32.totalorder %v9189_v23, 1  ;;  %v6495_v35 = vpack.c.bf16 %v916_v22, %v916_v22  ;;  %v9194_v21 = vand.u32 15, %v9193_v41  ;;  %v9195_v28 = vmov 0 }
 0x254   : > { %v9191_v27 = vsel %vm6485_vm4, 4294967295, %v9190_v27  ;;  %9192 = vst [vmem:[#allocation9_spill] sm:$0xff] %v6489_v34  ;;  %v6509_v7 = vpack.c.bf16 %v917_v29, %v917_v29  ;;  %v6511_v15 = vpack.c.bf16 %v918_v30, %v918_v30  ;;  %v6513_v19 = vpack.c.bf16 %v919_v32, %v919_v32  ;;  %vm9224_vm4 = vmpackc.low %vm6332_vm7, %vm6332_vm7 }
 0x255   : > { %vm6505_vm2 = vcmp.ge.s32.totalorder %v9194_v21, 1  ;;  %v6515_v22 = vpack.c.bf16 %v920_v33, %v920_v33  ;;  %v9198_v61 = vand.u32 15, %v9197_v43  ;;  %v9199_v23 = vmov 0  ;;  %v9202_v33 = vld [vmem:[#allocation13_spill] sm:$0xff] }
 0x256   : > { %v9196_v28 = vsel %vm6505_vm2, 4294967295, %v9195_v28  ;;  %v6526_v41 = vpack.c.bf16 %v921_v5, %v921_v5  ;;  %v6528_v29 = vpack.c.bf16 %v922_v4, %v922_v4  ;;  %v6530_v30 = vpack.c.bf16 %v923_v38, %v923_v38 }
 0x257   : > { %vm6522_vm6 = vcmp.ge.s32.totalorder %v9198_v61, 1  ;;  %v6532_v32 = vpack.c.bf16 %v924_v3, %v924_v3  ;;  %v9203_v21 = vand.u32 15, %v9202_v33  ;;  %v9204_v43 = vmov 0  ;;  %v9208_v61 = vld [vmem:[#allocation12_spill] sm:$0xff] }
 0x258   : > { %v9200_v23 = vsel %vm6522_vm6, 4294967295, %v9199_v23  ;;  %v6544_v5 = vpack.c.bf16 %v925_v6, %v925_v6  ;;  %v6546_v4 = vpack.c.bf16 %v926_v40, %v926_v40  ;;  %v6548_v38 = vpack.c.bf16 %v927_v20, %v927_v20 }
 0x259   : > { %9201 = vst [vmem:[#allocation10_spill] sm:$0xff] %v6532_v32  ;;  %vm6540_vm9 = vcmp.ge.s32.totalorder %v9203_v21, 1  ;;  %v6550_v3 = vpack.c.bf16 %v928_v24, %v928_v24  ;;  %v9209_v46 = vand.u32 15, %v9208_v61  ;;  %v9210_v33 = vmov 0  ;;  %v9214_v24 = vld [vmem:[#allocation14_spill] sm:$0xff] }
 0x25a   : > { %v9205_v43 = vsel %vm6540_vm9, 4294967295, %v9204_v43  ;;  %9206 = vst [vmem:[#allocation11_spill] sm:$0xff] %v6546_v4  ;;  %v6561_v21 = vpack.c.bf16 %v929_v36, %v929_v36  ;;  %v6563_v6 = vpack.c.bf16 %v930_v58, %v930_v58  ;;  %v6565_v40 = vpack.c.bf16 %v931_v55, %v931_v55  ;;  %vm1513_vm9 = vmpackc.low %vm6448_vm0, %vm6448_vm0 }
 0x25b   : > { %9207 = vst [vmem:[#allocation13_spill] sm:$0xff] %v6550_v3  ;;  %vm6557_vm5 = vcmp.ge.s32.totalorder %v9209_v46, 1  ;;  %v6567_v20 = vpack.c.bf16 %v932_v1, %v932_v1  ;;  %v9215_v25 = vand.u32 15, %v9214_v24  ;;  %v6578_v61 = vpack.c.bf16 %v933_v54, %v933_v54  ;;  %v5673_v54 = vld [vmem:[%s9011_s5 + $0xd0] sm:$0xff] }
 0x25c   : > { %v9211_v33 = vsel %vm6557_vm5, 4294967295, %v9210_v33  ;;  %9212 = vst [vmem:[#allocation12_spill] sm:$0xff] %v6563_v6  ;;  %v6580_v36 = vpack.c.bf16 %v937_v11, %v937_v11  ;;  %v6582_v58 = vpack.c.bf16 %v939_v42, %v939_v42  ;;  %v6584_v55 = vpack.c.bf16 %v941_v59, %v941_v59  ;;  %v5658_v11 = vld [vmem:[%s9011_s5 + $0x58] sm:$0xff]  ;;  %vm9225_vm5 = vmpackc.low %vm6338_vm8, %vm6338_vm8 }
 0x25d   : > { %9213 = vst [vmem:[#allocation20_spill] sm:$0xff] %v6567_v20  ;;  %vm6574_vm6 = vcmp.ge.s32.totalorder %v9215_v25, 1  ;;  %v6589_v1 = vpack.c.bf16 %v934_v26, %v934_v26  ;;  %v6591_v57 = vpack.c.bf16 %v935_v62, %v935_v62  ;;  %v6593_v24 = vpack.c.bf16 %v936_v39, %v936_v39  ;;  %v5659_v25 = vld [vmem:[%s9011_s5 + $0x60] sm:$0xff]  ;;  %vm9230_vm8 = vmpackc.low %vm6372_vm10, %vm6372_vm10 }
 0x25e   : > { %v6619_v42 = vpack.c.bf16 %v938_v16, %v938_v16  ;;  %v6624_v59 = vpack.c.bf16 %v940_v17, %v940_v17  ;;  %v9222_v50 = vmax.f32 %v6358_v47, 0.0  ;;  %v5674_v47 = vld [vmem:[%s9011_s5 + $0xd8] sm:$0xff]  ;;  %2596 = vmatpush.bf16.msra.mxu1 %v5659_v25  ;;  %v6711_v0 = vsel %vm9224_vm4, %v6464_v56, 0  ;;  %5849 = vmatpush.bf16.msrb.mxu3 %v5659_v25  ;;  %vm9232_vm4 = vmpackc.low %vm6385_vm11, %vm6385_vm11 }
 0x25f   : > { %9218 = vst [vmem:[#allocation14_spill] sm:$0xff] %v6589_v1  ;;  %3126 = vmatpush.bf16.msrb.mxu0 %v5674_v47  ;;  %v6703_v47 = vsel %vm1513_vm9, %v6593_v24, 0  ;;  %v6719_v17 = vsel %vm9225_vm5, %v6489_v34, 0  ;;  %vm9226_vm9 = vnez %v9200_v23  ;;  %vm9227_vm2 = vnez %v9156_v44  ;;  %vm9235_vm10 = vmpackc.low %vm6396_vm12, %vm6396_vm12 }
 0x260   : > { %9219 = vst [vmem:[#allocation21_spill] sm:$0xff] %v6593_v24  ;;  %v6638_v16 = vpack.c.bf16 %v9222_v50, %v9222_v50  ;;  %vm1670_vm0 = vmpackc.low %vm9226_vm9, %vm9226_vm9  ;;  %v6738_v8 = vsel %vm9230_vm8, %v6509_v7, 0  ;;  %v6746_v2 = vsel %vm9232_vm4, %v6513_v19, 0  ;;  %vm9234_vm5 = vnez %v9205_v43 }
 0x261   : > { %9220 = vst [vmem:[#allocation22_spill] sm:$0xff] %v6619_v42  ;;  %vm9228_vm7 = vmpackc.low %vm9227_vm2, %vm9227_vm2  ;;  %v6760_v18 = vsel %vm9235_vm10, %v6526_v41, 0  ;;  %vm9239_vm12 = vnez %v9211_v33  ;;  %v6844_v46 = vsel %vm1670_vm0, %v6578_v61, 0  ;;  %v5656_v33 = vld [vmem:[%s9011_s5 + $0x48] sm:$0xff]  ;;  %v1977_v63 = vunpack.c.l.b16 %v6493_v53 }
 0x262   : > { %9221 = vst [vmem:[#allocation23_spill] sm:$0xff] %v6624_v59  ;;  %v6730_v60 = vsel %vm9228_vm7, %v6493_v53, 0  ;;  %vm1672_vm2 = vmpackc.low %vm9234_vm5, %vm9234_vm5  ;;  %2597 = vmatpush.bf16.msra.mxu1 %v5658_v11  ;;  %5850 = vmatpush.bf16.msrb.mxu3 %v5658_v11  ;;  %v1978_v23 = vunpack.c.l.b16 %v6495_v35  ;;  %v1979_v26 = vunpack.c.l.b16 %v6509_v7  ;;  %v1981_v50 = vunpack.c.l.b16 %v6513_v19 }
 0x263   : > { %9223 = vst [vmem:[#allocation24_spill] sm:$0xff] %v6638_v16  ;;  %vm9237_vm11 = vmpackc.low %vm6406_vm13, %vm6406_vm13  ;;  %3127 = vmatpush.bf16.msrb.mxu0 %v5673_v54  ;;  %v1984_v12 = vunpack.c.l.b16 %v6528_v29  ;;  %v1985_v62 = vunpack.c.l.b16 %v6530_v30  ;;  %v1986_v39 = vunpack.c.l.b16 %v6532_v32  ;;  %v1987_v9 = vunpack.c.l.b16 %v6544_v5 }
 0x264   : > { %9229 = vst [vmem:[#allocation25_spill] sm:$0xff] %v6730_v60  ;;  %v6771_v25 = vsel %vm9237_vm11, %v6530_v30, 0  ;;  %vm1676_vm7 = vmpackc.low %vm9239_vm12, %vm9239_vm12  ;;  %v1989_v49 = vunpack.c.l.b16 %v6548_v38  ;;  %v1991_v56 = vunpack.c.l.b16 %v6561_v21  ;;  %v1992_v45 = vunpack.c.l.b16 %v6563_v6 }
 0x265   : > { %9231 = vst [vmem:[#allocation26_spill] sm:$0xff] %v6738_v8  ;;  %vm9240_vm8 = vmpackc.low %vm6424_vm14, %vm6424_vm14  ;;  %v6871_v43 = vsel %vm1676_vm7, %v6582_v58, 0  ;;  %v2002_v6 = vunpack.c.l.b16 %v6624_v59  ;;  %v5686_v59 = vld [vmem:[%s9011_s5 + $0x138] sm:$0xff]  ;;  %vm1792_vm9 = vsmask.f32 256  ;;  %vm1937_vm0 = vcmask 1040384  }
 0x266   : > { %9233 = vst [vmem:[#allocation27_spill] sm:$0xff] %v6746_v2  ;;  %v6785_v37 = vsel %vm9240_vm8, %v6544_v5, 0  ;;  %vm9242_vm13 = vmpackc.low %vm6437_vm15, %vm6437_vm15  ;;  %2598 = vmatpush.bf16.msra.mxu1 %v5657_v51  ;;  %5851 = vmatpush.bf16.msrb.mxu3 %v5657_v51  ;;  %v1988_v51 = vunpack.c.l.b16 %v6546_v4  ;;  %v9256_v4 = vsel %vm6479_vm3, %v6489_v34, 0  ;;  %vm2396_vm8 = vsmask.f32 7424 }
 0x267   : > { %9236 = vst [vmem:[#allocation28_spill] sm:$0xff] %v6760_v18  ;;  %v6796_v44 = vsel %vm9242_vm13, %v6548_v38, 0  ;;  %vm1678_vm14 = vmpackc.low %vm6574_vm6, %vm6574_vm6  ;;  %vm9246_vm6 = vnez %v9191_v27  ;;  %v6852_v27 = vsel %vm1672_vm2, %v6591_v57, 0  ;;  %3128 = vmatpush.bf16.msrb.mxu0 %v5672_v31  ;;  %v1980_v31 = vunpack.c.l.b16 %v6511_v15 }
 0x268   : > { %9238 = vst [vmem:[#allocation29_spill] sm:$0xff] %v6771_v25  ;;  %vm9244_vm15 = vmpackc.low %vm6458_vm1, %vm6458_vm1  ;;  %vm9251_vm1 = vnez %v9196_v28  ;;  %v6877_v28 = vsel %vm1678_vm14, %v6584_v55, 0  ;;  %v9330_v25 = vunpack.c.l.b16 %v6591_v57 }
 0x269   : > { %9241 = vst [vmem:[#allocation30_spill] sm:$0xff] %v6785_v37  ;;  %v6819_v54 = vsel %vm9244_vm15, %v6561_v21, 0  ;;  %vm9247_vm4 = vmpackc.low %vm9246_vm6, %vm9246_vm6  ;;  %v2001_v37 = vunpack.c.l.b16 %v6582_v58 }
 0x26a   : > { %9243 = vst [vmem:[#allocation31_spill] sm:$0xff] %v6796_v44  ;;  %v6833_v10 = vsel %vm9247_vm4, %v6565_v40, 0  ;;  %vm9252_vm10 = vmpackc.low %vm9251_vm1, %vm9251_vm1  ;;  %2599 = vmatpush.bf16.msra.mxu1 %v5656_v33  ;;  %5852 = vmatpush.bf16.msrb.mxu3 %v5656_v33  ;;  %v5655_v33 = vld [vmem:[%s9011_s5 + $0x40] sm:$0xff]  ;;  %v6927_v44 = vunpack.c.l.b16 %v9256_v4  ;;  %v9261_v4 = vsel %vm6479_vm3, %v6513_v19, 0 }
 0x26b   : > { %9245 = vst [vmem:[#allocation32_spill] sm:$0xff] %v6819_v54  ;;  %v6860_v11 = vsel %vm9252_vm10, %v6580_v36, 0  ;;  %3129 = vmatpush.bf16.msrb.mxu0 %v5671_v48  ;;  %v1996_v54 = vunpack.c.l.b16 %v6589_v1  ;;  %v2000_v48 = vunpack.c.l.b16 %v6619_v42  ;;  %v2004_v1 = vunpack.c.l.b16 %v6638_v16  ;;  %vm7178_vm7 = vmand %vm1937_vm0, %vm1792_vm9 }
 0x26c   : > { %9248 = vst [vmem:[#allocation33_spill] sm:$0xff] %v6833_v10  ;;  %v1995_v10 = vunpack.c.l.b16 %v6578_v61  ;;  %v9258_v42 = vsel %vm6479_vm3, %v6493_v53, 0  ;;  %v9260_v16 = vsel %vm6479_vm3, %v6509_v7, 0  ;;  %v9262_v53 = vsel %vm6479_vm3, %v6526_v41, 0 }
 0x26d   : > { %9249 = vst [vmem:[#allocation34_spill] sm:$0xff] %v6844_v46  ;;  %v1994_v46 = vunpack.c.l.b16 %v6567_v20  ;;  %v2003_v20 = vunpack.c.l.b16 %v6584_v55  ;;  %v6933_v24 = vunpack.c.l.b16 %v9258_v42  ;;  %v6942_v32 = vunpack.c.l.b16 %v9260_v16 }
 0x26e   : > { %9250 = vst [vmem:[#allocation35_spill] sm:$0xff] %v6852_v27  ;;  %v1993_v27 = vunpack.c.l.b16 %v6565_v40  ;;  %v6954_v42 = vunpack.c.l.b16 %v9262_v53  ;;  %2600 = vmatpush.bf16.msra.mxu1 %v5655_v33  ;;  %5853 = vmatpush.bf16.msrb.mxu3 %v5655_v33  ;;  %v9264_v7 = vsel %vm6479_vm3, %v6544_v5, 0  ;;  %v9269_v33 = vsel %vm6479_vm3, %v6565_v40, 0  ;;  %v9271_v5 = vld [vmem:[#allocation3_spill] sm:$0xff] }
 0x26f   : > { %9253 = vst [vmem:[#allocation36_spill] sm:$0xff] %v6860_v11  ;;  %v1990_v11 = vunpack.c.l.b16 %v6550_v3  ;;  %v1999_v3 = vunpack.c.l.b16 %v6580_v36  ;;  %v6966_v19 = vunpack.c.l.b16 %v9264_v7  ;;  %v9274_v40 = vsel %vm6479_vm3, %v6580_v36, 0 }
 0x270   : > { %9254 = vst [vmem:[#allocation37_spill] sm:$0xff] %v6871_v43  ;;  %v1983_v43 = vunpack.c.l.b16 %v6526_v41  ;;  %v9265_v41 = vsel %vm6479_vm3, %v6548_v38, 0  ;;  %v9272_v38 = vsel %vm6479_vm3, %v6578_v61, 0  ;;  %v9275_v61 = vsel %vm6479_vm3, %v6582_v58, 0 }
 0x271   : > { %9255 = vst [vmem:[#allocation38_spill] sm:$0xff] %v6877_v28  ;;  %v1982_v28 = vunpack.c.l.b16 %v6515_v22  ;;  %v6972_v16 = vunpack.c.l.b16 %v9265_v41  ;;  %v6991_v53 = vunpack.c.l.b16 %v9272_v38  ;;  %v7018_v38 = vpack.c.b16 %v1978_v23, %v1977_v63  ;;  %v9281_v63 = vld [vmem:[#allocation4_spill] sm:$0xff] }
 0x272   : > { %9257 = vst [vmem:[#allocation39_spill] sm:$0xff] %v6927_v44  ;;  %v6948_v44 = vunpack.c.l.b16 %v9261_v4  ;;  %v6984_v4 = vunpack.c.l.b16 %v9269_v33  ;;  %3317 = vmatpush.bf16.msrb.mxu1 %v5686_v59  ;;  %5854 = vmatpush.bf16.msra.mxu3 %v9271_v5  ;;  %v7004_v59 = vunpack.c.l.b16 %v9274_v40  ;;  %v9276_v33 = vsel %vm6479_vm3, %v6584_v55, 0 }
 0x273   : > { %9259 = vst [vmem:[#allocation40_spill] sm:$0xff] %v6933_v24  ;;  %v9263_v24 = vsel %vm6479_vm3, %v6530_v30, 0  ;;  %v9267_v30 = vsel %vm6479_vm3, %v6561_v21, 0  ;;  %v9273_v21 = vsel %vm6479_vm3, %v6591_v57, 0  ;;  %v7016_v5 = vunpack.c.l.b16 %v9276_v33  ;;  %v9332_v57 = vld [vmem:[#allocation8_spill] sm:$0xff] }
 0x274   : > { %v6960_v34 = vunpack.c.l.b16 %v9263_v24  ;;  %9266 = vst [vmem:[#allocation41_spill] sm:$0xff] %v6972_v16  ;;  %v6978_v24 = vunpack.c.l.b16 %v9267_v30  ;;  %v6997_v7 = vunpack.c.l.b16 %v9273_v21  ;;  %v7010_v30 = vunpack.c.l.b16 %v9275_v61 }
 0x275   : > { %9270 = vst [vmem:[#allocation43_spill] sm:$0xff] %v6984_v4  ;;  %v7020_v21 = vpack.c.b16 %v1980_v31, %v1979_v26  ;;  %v7022_v41 = vpack.c.b16 %v1982_v28, %v1981_v50  ;;  %v7024_v36 = vpack.c.b16 %v1984_v12, %v1983_v43  ;;  %v7026_v40 = vpack.c.b16 %v1986_v39, %v1985_v62  ;;  %v9292_v31 = vld [vmem:[#allocation5_spill] sm:$0xff] }
 0x276   : > { %9268 = vst [vmem:[#allocation42_spill] sm:$0xff] %v6978_v24  ;;  %v7028_v4 = vpack.c.b16 %v1988_v51, %v1987_v9  ;;  %v7030_v58 = vpack.c.b16 %v1990_v11, %v1989_v49  ;;  %v7032_v61 = vpack.c.b16 %v1992_v45, %v1991_v56  ;;  %v7034_v24 = vpack.c.b16 %v1994_v46, %v1993_v27  ;;  %v9293_v51 = vld [vmem:[#allocation10_spill] sm:$0xff]  ;;  %v9301_v28 = vld [vmem:[#allocation13_spill] sm:$0xff] }
 0x277   : > { %9277 = vst [vmem:[#allocation3_spill] sm:$0xff] %v7016_v5  ;;  %v7036_v55 = vpack.c.b16 %v1996_v54, %v1995_v10  ;;  %5855 = vmatpush.bf16.msra.mxu3 %v9281_v63  ;;  %v7039_v26 = vpack.c.b16 %v2000_v48, %v1999_v3  ;;  %v7041_v50 = vpack.c.b16 %v2002_v6, %v2001_v37  ;;  %v9282_v49 = vsel %vm6479_vm3, %v6466_v14, 0 }
 0x278   : > { %9278 = vst [vmem:[#allocation44_spill] sm:$0xff] %v7032_v61  ;;  %v7043_v12 = vpack.c.b16 %v2004_v1, %v2003_v20  ;;  %v7050_v45 = vunpack.c.l.b16 %v9282_v49  ;;  %v9283_v56 = vsel %vm6479_vm3, %v6491_v13, 0  ;;  %v9284_v20 = vsel %vm6479_vm3, %v6495_v35, 0 }
 0x279   : > { %9279 = vst [vmem:[#allocation45_spill] sm:$0xff] %v7034_v24  ;;  %v7057_v3 = vunpack.c.l.b16 %v9283_v56  ;;  %v7064_v1 = vunpack.c.l.b16 %v9284_v20  ;;  %v9286_v37 = vsel %vm6479_vm3, %v6511_v15, 0  ;;  %v9288_v46 = vsel %vm6479_vm3, %v6515_v22, 0  ;;  %v9297_v56 = vld [vmem:[#allocation11_spill] sm:$0xff]  ;;  %v9333_v24 = vld [vmem:[#allocation9_spill] sm:$0xff] }
 0x27a   : > { %9280 = vst [vmem:[#allocation46_spill] sm:$0xff] %v7036_v55  ;;  %v7071_v10 = vunpack.c.l.b16 %v9286_v37  ;;  %v7078_v27 = vunpack.c.l.b16 %v9288_v46  ;;  %v9290_v23 = vsel %vm6479_vm3, %v6528_v29, 0  ;;  %v9294_v48 = vsel %vm6479_vm3, %v9293_v51, 0  ;;  %v9322_v46 = vld [vmem:[#allocation6_spill] sm:$0xff] }
 0x27b   : > { %9285 = vst [vmem:[#allocation4_spill] sm:$0xff] %v7064_v1  ;;  %v7085_v43 = vunpack.c.l.b16 %v9290_v23  ;;  %5856 = vmatpush.bf16.msra.mxu3 %v9292_v31  ;;  %v7093_v33 = vunpack.c.l.b16 %v9294_v48  ;;  %v9298_v20 = vsel %vm6479_vm3, %v9297_v56, 0  ;;  %v9302_v31 = vsel %vm6479_vm3, %v9301_v28, 0  ;;  %v9305_v48 = vld [vmem:[#allocation12_spill] sm:$0xff] }
 0x27c   : > { %9287 = vst [vmem:[#allocation47_spill] sm:$0xff] %v7071_v10  ;;  %v7100_v37 = vunpack.c.l.b16 %v9298_v20  ;;  %v7107_v11 = vunpack.c.l.b16 %v9302_v31  ;;  %v9306_v49 = vsel %vm6479_vm3, %v9305_v48, 0  ;;  %v9309_v20 = vld [vmem:[#allocation20_spill] sm:$0xff]  ;;  %v9313_v31 = vld [vmem:[#allocation14_spill] sm:$0xff]  ;;  %v9334_v48 = vunpack.c.l.b16 %v9333_v24 }
 0x27d   : > { %9289 = vst [vmem:[#allocation48_spill] sm:$0xff] %v7078_v27  ;;  %v7114_v6 = vunpack.c.l.b16 %v9306_v49  ;;  %v9310_v23 = vsel %vm6479_vm3, %v9309_v20, 0  ;;  %v9314_v39 = vsel %vm6479_vm3, %v9313_v31, 0  ;;  %v9317_v49 = vld [vmem:[#allocation21_spill] sm:$0xff]  ;;  %v9329_v20 = vunpack.c.l.b16 %v6466_v14 }
 0x27e   : > { %9291 = vst [vmem:[#allocation49_spill] sm:$0xff] %v7085_v43  ;;  %v7121_v5 = vunpack.c.l.b16 %v9310_v23  ;;  %v7128_v54 = vunpack.c.l.b16 %v9314_v39  ;;  %v9318_v62 = vsel %vm6479_vm3, %v9317_v49, 0  ;;  %v9321_v23 = vld [vmem:[#allocation17_spill] sm:$0xff]  ;;  %v9324_v39 = vld [vmem:[#allocation22_spill] sm:$0xff]  ;;  %v9338_v24 = vmov 0 }
 0x27f   : > { %9295 = vst [vmem:[#allocation5_spill] sm:$0xff] %v7093_v33  ;;  %v7135_v9 = vunpack.c.l.b16 %v9318_v62  ;;  %5857 = vmatpush.bf16.msra.mxu3 %v9322_v46  ;;  %v9325_v63 = vsel %vm6479_vm3, %v9324_v39, 0  ;;  %v9328_v18 = vunpack.c.l.b16 %v9321_v23  ;;  %v9339_v24 = vsel %vm7178_vm7, 4294967295, %v9338_v24 }
 0x280   : > { %9299 = vst [vmem:[#allocation10_spill] sm:$0xff] %v7100_v37  ;;  %v1520_v37 = vsel %vm6479_vm3, %v9321_v23, 0  ;;  %v2136_v60 = vshll.u32 %v7041_v50, 16 }
 0x281   : > { %9303 = vst [vmem:[#allocation11_spill] sm:$0xff] %v7107_v11  ;;  %v7147_v11 = vunpack.c.l.b16 %v9325_v63  ;;  %v1744_v62 = vunpack.c.l.b16 %v1520_v37  ;;  %v2005_v46 = vpack.c.b16 %v9329_v20, %v9328_v18  ;;  %v2109_v63 = vshrl.u32 %v7036_v55, 16 }
 0x282   : > { %9307 = vst [vmem:[#allocation50_spill] sm:$0xff] %v7114_v6  ;;  %v9320_v6 = vld [vmem:[#allocation7_spill] sm:$0xff]  ;;  %v2128_v18 = vshll.u32 %v7039_v26, 16 }
 0x283   : > { %9311 = vst [vmem:[#allocation51_spill] sm:$0xff] %v7121_v5  ;;  %v977_v33 = vadd.s32 8, %v9320_v6  ;;  %v9331_v5 = vunpack.c.l.b16 %v9317_v49  ;;  %v2022_v37 = vshrl.u32 %v2005_v46, 16  ;;  %5858 = vmatpush.bf16.msra.mxu3 %v9332_v57  ;;  %v7172_v61 = vrot.slane %v2109_v63, 7 }
 0x284   : > { %9315 = vst [vmem:[#allocation14_spill] sm:$0xff] %v7128_v54  ;;  %v5903_v54 = vmov 0  }
 0x285   : > { %9319 = vst [vmem:[#allocation21_spill] sm:$0xff] %v7135_v9  ;;  %v7149_v43 = vrot.slane %v5903_v54, 1  ;;  %2738 = vmatmul.bf16.vlgmr.msra.gmra.mxu2 %v5903_v54  ;;  %v1019_v9 = vand.u32 15, %v977_v33  ;;  %v2017_v52 = vpack.c.b16 %v9331_v5, %v9330_v25  ;;  %v979_v54 = vadd.s32 24, %v9320_v6  ;;  %v5685_v33 = vld [vmem:[%s9011_s5 + $0x130] sm:$0xff] }
 0x286   : > { %9326 = vst [vmem:[#allocation7_spill] sm:$0xff] %v7147_v11  ;;  %v2125_v11 = vshrl.u32 %v7039_v26, 16  ;;  %v2025_v25 = vshll.u32 %v2005_v46, 16  ;;  %3318 = vmatpush.bf16.msrb.mxu1 %v5685_v33  ;;  %v2024_v27 = vrot.slane %v2022_v37, 7 }
 0x287   : > { %9327 = vst [vmem:[#allocation17_spill] sm:$0xff] %v7149_v43  ;;  %vm1393_vm5 = vcmp.le.s32.totalorder %v1019_v9, 14  ;;  %v2117_v23 = vshrl.u32 %v2017_v52, 16  ;;  %v2120_v5 = vshll.u32 %v2017_v52, 16  ;;  %v1033_v49 = vand.u32 15, %v979_v54  ;;  %v9337_v54 = vld [vmem:[#allocation15_spill] sm:$0xff] }
 0x288   : > { %vm1489_vm2 = vmpackc.low %vm1393_vm5, %vm1393_vm5  ;;  %v2127_v20 = vrot.slane %v2125_v11, 7  ;;  %v9335_v9 = vunpack.c.l.b16 %v6491_v13  ;;  %9336 = vst [vmem:[#allocation6_spill] sm:$0xff] %v7172_v61  ;;  %v2027_v57 = vor.u32 %v2025_v25, %v2024_v27  ;;  %v2133_v11 = vshrl.u32 %v7041_v50, 16  ;;  %5859 = vmatpush.bf16.msra.mxu3 %v9337_v54 }
 0x289   : > { %v1521_v55 = vsel %vm1489_vm2, %v6466_v14, 0  ;;  %v2119_v2 = vrot.slane %v2117_v23, 7  ;;  %vm1395_vm11 = vcmp.le.s32.totalorder %v1033_v49, 14  ;;  %9340 = vst [vmem:[#allocation22_spill] sm:$0xff] %v9339_v24  ;;  %v9341_v49 = vld [vmem:[#allocation39_spill] sm:$0xff] }
 0x28a   : > { %v2006_v10 = vpack.c.b16 %v9335_v9, %v9334_v48  ;;  %v1745_v8 = vunpack.c.l.b16 %v1521_v55  ;;  %v2130_v26 = vor.u32 %v2128_v18, %v2127_v20  ;;  %vm1491_vm12 = vmpackc.low %vm1395_vm11, %vm1395_vm11  ;;  %v2150_v63 = vsel %vm7178_vm7, 0, %v2027_v57 }
 0x28b   : > { %v2122_v46 = vor.u32 %v2120_v5, %v2119_v2  ;;  %v1523_v48 = vsel %vm1491_vm12, %v6491_v13, 0  ;;  %v7189_v16 = vrot.slane %v2133_v11, 7  ;;  %v2409_v11 = vshrl.u32 %v2150_v63, 16 }
 0x28c   : > { %v2029_v52 = vshrl.u32 %v2006_v10, 16  ;;  %v1776_v14 = vpack.c.b16 %v1745_v8, %v1744_v62  ;;  %v2131_v55 = vsel %vm1792_vm9, %v2119_v2, %v2130_v26  ;;  %v1747_v23 = vunpack.c.l.b16 %v1523_v48  ;;  %v9342_v2 = vld [vmem:[#allocation16_spill] sm:$0xff] }
 0x28d   : > { %v2123_v33 = vsel %vm1792_vm9, %v7172_v61, %v2122_v46  ;;  %v2509_v37 = vshll.u32 %v2131_v55, 16  ;;  %v2405_v62 = vshll.u32 %v2150_v63, 16  ;;  %v2032_v25 = vshll.u32 %v2006_v10, 16  ;;  %5860 = vmatpush.bf16.msra.mxu3 %v9342_v2 }
 0x28e   : > { %v1794_v8 = vshrl.u32 %v1776_v14, 16  ;;  %v2501_v18 = vshll.u32 %v2123_v33, 16  ;;  %v1797_v5 = vshll.u32 %v1776_v14, 16  ;;  %v1777_v9 = vpack.c.b16 %v1747_v23, %v9341_v49 }
 0x28f   : > { %v2031_v54 = vrot.slane %v2029_v52, 7  ;;  %v2407_v26 = vrot.slane %v2405_v62, 1  ;;  %v2505_v1 = vshrl.u32 %v2123_v33, 16  ;;  %v2511_v46 = vrot.slane %v2509_v37, 1  ;;  %v9343_v37 = vld [vmem:[#allocation18_spill] sm:$0xff] }
 0x290   : > { %v1796_v13 = vrot.slane %v1794_v8, 7  ;;  %v7192_v57 = vrot.slane %v2501_v18, 1  ;;  %v1801_v61 = vshrl.u32 %v1777_v9, 16  ;;  %v1804_v23 = vshll.u32 %v1777_v9, 16 }
 0x291   : > { %v2034_v48 = vor.u32 %v2032_v25, %v2031_v54  ;;  %v2408_v10 = vsel %vm2396_vm8, %v7149_v43, %v2407_v26  ;;  %v2138_v33 = vor.u32 %v2136_v60, %v7189_v16  ;;  %5861 = vmatpush.bf16.msra.mxu3 %v9343_v37  ;;  %v2411_v18 = vor.u32 %v2409_v11, %v2407_v26 }
 0x292   : > { %v1799_v28 = vor.u32 %v1797_v5, %v1796_v13  ;;  %v2507_v52 = vor.u32 %v2505_v1, %v7192_v57  ;;  %2601 = vmatmul.bf16.vlgmr.msra.gmra.mxu1 %v2408_v10  ;;  %v7198_v14 = vrot.slane %v1801_v61, 7  ;;  %v2513_v63 = vshrl.u32 %v2131_v55, 16 }
 0x293   : > { %v2035_v8 = vsel %vm1792_vm9, %v2024_v27, %v2034_v48  ;;  %v2139_v1 = vsel %vm1792_vm9, %v2127_v20, %v2138_v33  ;;  %v981_v27 = vadd.s32 40, %v9320_v6  ;;  %v2040_v26 = vshll.u32 %v7018_v38, 16 }
 0x294   : > { %v1939_v50 = vsel %vm7178_vm7, 0, %v1799_v28  ;;  %v7206_v62 = vsel %vm2396_vm8, %v2507_v52, %v2511_v46  ;;  %v2413_v25 = vshll.u32 %v2035_v8, 16  ;;  %v1806_v61 = vor.u32 %v1804_v23, %v7198_v14 }
 0x295   : > { %9344 = vst [vmem:[#allocation8_spill] sm:$0xff] %v7206_v62  ;;  %2743 = vmatmul.bf16.gmra.mxu2 %v1939_v50  ;;  %3130 = vmatmul.bf16.vlgmr.msrb.gmra.mxu0 %v1939_v50  ;;  %v2417_v5 = vshrl.u32 %v2035_v8, 16  ;;  %v2517_v49 = vshll.u32 %v2139_v1, 16  ;;  %v2037_v28 = vshrl.u32 %v7018_v38, 16  ;;  %v2515_v9 = vor.u32 %v2513_v63, %v2511_v46 }
 0x296   : > { %2666 = vmatmul.bf16.vlgmr.msrb.gmra.mxu3 %v7206_v62  ;;  %v2415_v60 = vrot.slane %v2413_v25, 1  ;;  %v1047_v2 = vand.u32 15, %v981_v27  ;;  %v2141_v48 = vshrl.u32 %v7043_v12, 16  ;;  %v7216_v10 = vsel %vm1792_vm9, %v1796_v13, %v1806_v61 }
 0x297   : > { %9345 = vst [vmem:[#allocation9_spill] sm:$0xff] %v7216_v10  ;;  %v2039_v55 = vrot.slane %v2037_v28, 7  ;;  %v2144_v52 = vshll.u32 %v7043_v12, 16  ;;  %v2519_v11 = vrot.slane %v2517_v49, 1  ;;  %v983_v46 = vadd.s32 56, %v9320_v6 }
 0x298   : > { %v7219_v20 = vsel %vm2396_vm8, %v2411_v18, %v2415_v60  ;;  %vm1397_vm13 = vcmp.le.s32.totalorder %v1047_v2, 14  ;;  %v7222_v23 = vrot.slane %v2141_v48, 7  ;;  %v2419_v38 = vor.u32 %v2417_v5, %v2415_v60 }
 0x299   : > { %vm1493_vm14 = vmpackc.low %vm1397_vm13, %vm1397_vm13  ;;  %v2042_v8 = vor.u32 %v2040_v26, %v2039_v55  ;;  %v2521_v33 = vshrl.u32 %v2139_v1, 16  ;;  %v2045_v37 = vshrl.u32 %v7020_v21, 16  ;;  %v1061_v18 = vand.u32 15, %v983_v46 }
 0x29a   : > { %9346 = vst [vmem:[#allocation15_spill] sm:$0xff] %v7222_v23  ;;  %v1525_v13 = vsel %vm1493_vm14, %v6495_v35, 0  ;;  %v2146_v50 = vor.u32 %v2144_v52, %v7222_v23  ;;  %v2048_v25 = vshll.u32 %v7020_v21, 16  ;;  %v999_v27 = vadd.s32 184, %v9320_v6  ;;  %v9349_v35 = vld [vmem:[#allocation40_spill] sm:$0xff]  ;;  %v9399_v23 = vld [vmem:[#allocation5_spill] sm:$0xff] }
 0x29b   : > { %v1749_v12 = vunpack.c.l.b16 %v1525_v13  ;;  %v2043_v61 = vsel %vm1792_vm9, %v2031_v54, %v2042_v8  ;;  %v7230_v63 = vrot.slane %v2045_v37, 7  ;;  %v7234_v49 = vsel %vm2396_vm8, %v2515_v9, %v2519_v11 }
 0x29c   : > { %9347 = vst [vmem:[#allocation39_spill] sm:$0xff] %v7234_v49  ;;  %v2421_v1 = vshll.u32 %v2043_v61, 16  ;;  %v7238_v60 = vsel %vm1792_vm9, %v7189_v16, %v2146_v50  ;;  %vm1399_vm15 = vcmp.le.s32.totalorder %v1061_v18, 14  ;;  %v1173_v28 = vand.u32 15, %v999_v27 }
 0x29d   : > { %9348 = vst [vmem:[#allocation16_spill] sm:$0xff] %v7238_v60  ;;  %v1778_v5 = vpack.c.b16 %v1749_v12, %v9349_v35  ;;  %v2525_v21 = vshll.u32 %v7238_v60, 16  ;;  %vm1495_vm6 = vmpackc.low %vm1399_vm15, %vm1399_vm15  ;;  %v2050_v54 = vor.u32 %v2048_v25, %v7230_v63  ;;  %v9350_v9 = vunpack.c.l.b16 %v6703_v47 }
 0x29e   : > { %v2423_v2 = vrot.slane %v2421_v1, 1  ;;  %v1527_v26 = vsel %vm1495_vm6, %v6511_v15, 0  ;;  %v985_v52 = vadd.s32 72, %v9320_v6  ;;  %v2523_v46 = vor.u32 %v2521_v33, %v2519_v11 }
 0x29f   : > { %v1788_v48 = vpack.c.b16 %v9350_v9, %v6997_v7  ;;  %v1809_v16 = vshrl.u32 %v1778_v5, 16  ;;  %v1751_v8 = vunpack.c.l.b16 %v1527_v26  ;;  %v2425_v37 = vshrl.u32 %v2043_v61, 16 }
 0x2a0   : > { %v1812_v13 = vshll.u32 %v1778_v5, 16  ;;  %v7248_v50 = vrot.slane %v2525_v21, 1  ;;  %v2051_v18 = vsel %vm1792_vm9, %v2039_v55, %v2050_v54  ;;  %vm1415_vm4 = vcmp.le.s32.totalorder %v1173_v28, 14 }
 0x2a1   : > { %v1811_v25 = vrot.slane %v1809_v16, 7  ;;  %v7252_v12 = vsel %vm2396_vm8, %v2419_v38, %v2423_v2  ;;  %v1779_v15 = vpack.c.b16 %v1751_v8, %v6942_v32  ;;  %v2429_v47 = vshll.u32 %v2051_v18, 16  ;;  %vm1511_vm1 = vmpackc.low %vm1415_vm4, %vm1415_vm4 }
 0x2a2   : > { %9351 = vst [vmem:[#allocation18_spill] sm:$0xff] %v7248_v50  ;;  %2606 = vmatmul.bf16.gmra.mxu1 %v7219_v20  ;;  %v2427_v7 = vor.u32 %v2425_v37, %v2423_v2  ;;  %v1543_v11 = vsel %vm1511_vm1, %v9313_v31, 0  ;;  %v1889_v33 = vshrl.u32 %v1788_v48, 16  ;;  %v1075_v61 = vand.u32 15, %v985_v52  ;;  %v5684_v2 = vld [vmem:[%s9011_s5 + $0x128] sm:$0xff] }
 0x2a3   : > { %v1814_v27 = vor.u32 %v1812_v13, %v1811_v25  ;;  %v7259_v55 = vsel %vm2396_vm8, %v2523_v46, %v7248_v50  ;;  %v1817_v1 = vshrl.u32 %v1779_v15, 16  ;;  %v1892_v35 = vshll.u32 %v1788_v48, 16  ;;  %3319 = vmatpush.bf16.msrb.mxu1 %v5684_v2 }
 0x2a4   : > { %9352 = vst [vmem:[#allocation40_spill] sm:$0xff] %v7259_v55  ;;  %v1767_v32 = vunpack.c.l.b16 %v1543_v11  ;;  %v7263_v38 = vrot.slane %v1889_v33, 7  ;;  %vm1401_vm10 = vcmp.le.s32.totalorder %v1075_v61, 14  ;;  %v2053_v5 = vshrl.u32 %v7022_v41, 16 }
 0x2a5   : > { %2748 = vmatmul.bf16.gmra.mxu2 %v7216_v10  ;;  %3135 = vmatmul.bf16.gmra.mxu0 %v7216_v10  ;;  %v7269_v31 = vsel %vm1792_vm9, %v7198_v14, %v1814_v27  ;;  %v1819_v21 = vrot.slane %v1817_v1, 7  ;;  %v1820_v54 = vshll.u32 %v1779_v15, 16  ;;  %v2431_v28 = vrot.slane %v2429_v47, 1  ;;  %vm1497_vm0 = vmpackc.low %vm1401_vm10, %vm1401_vm10  ;;  %v9424_v10 = vld [vmem:[#allocation3_spill] sm:$0xff] }
 0x2a6   : > { %2671 = vmatmul.bf16.gmra.mxu3 %v7234_v49  ;;  %9353 = vst [vmem:[#allocation52_spill] sm:$0xff] %v7269_v31  ;;  %v7275_v26 = vpack.c.b16 %v1767_v32, %v6991_v53  ;;  %v1529_v9 = vsel %vm1497_vm0, %v6515_v22, 0  ;;  %v2055_v48 = vrot.slane %v2053_v5, 7  ;;  %v2056_v52 = vshll.u32 %v7022_v41, 16 }
 0x2a7   : > { %v1822_v16 = vor.u32 %v1820_v54, %v1819_v21  ;;  %v7280_v14 = vsel %vm2396_vm8, %v2427_v7, %v2431_v28  ;;  %v1753_v46 = vunpack.c.l.b16 %v1529_v9  ;;  %v1003_v8 = vadd.s32 216, %v9320_v6 }
 0x2a8   : > { %9354 = vst [vmem:[#allocation53_spill] sm:$0xff] %v7280_v14  ;;  %v7284_v37 = vor.u32 %v1892_v35, %v7263_v38  ;;  %v2058_v13 = vor.u32 %v2056_v52, %v2055_v48  ;;  %v987_v53 = vadd.s32 88, %v9320_v6  ;;  %v2061_v15 = vshrl.u32 %v7024_v36, 16 }
 0x2a9   : > { %v1881_v22 = vshrl.u32 %v7275_v26, 16  ;;  %v1780_v41 = vpack.c.b16 %v1753_v46, %v6948_v44  ;;  %v2433_v47 = vshrl.u32 %v2051_v18, 16  ;;  %v1201_v11 = vand.u32 15, %v1003_v8 }
 0x2aa   : > { %v7291_v7 = vsel %vm1792_vm9, %v1811_v25, %v1822_v16  ;;  %v2059_v33 = vsel %vm1792_vm9, %v7230_v63, %v2058_v13  ;;  %v1089_v61 = vand.u32 15, %v987_v53  ;;  %v7295_v27 = vrot.slane %v2061_v15, 7 }
 0x2ab   : > { %9355 = vst [vmem:[#allocation54_spill] sm:$0xff] %v7291_v7  ;;  %v1825_v1 = vshrl.u32 %v1780_v41, 16  ;;  %v2435_v35 = vor.u32 %v2433_v47, %v2431_v28  ;;  %v2437_v32 = vshll.u32 %v2059_v33, 16  ;;  %vm1419_vm5 = vcmp.le.s32.totalorder %v1201_v11, 14 }
 0x2ac   : > { %v1828_v5 = vshll.u32 %v1780_v41, 16  ;;  %vm1515_vm2 = vmpackc.low %vm1419_vm5, %vm1419_vm5  ;;  %vm1403_vm11 = vcmp.le.s32.totalorder %v1089_v61, 14  ;;  %v2064_v44 = vshll.u32 %v7024_v36, 16  ;;  %v2441_v18 = vshrl.u32 %v2059_v33, 16 }
 0x2ad   : > { %v1827_v54 = vrot.slane %v1825_v1, 7  ;;  %v2439_v2 = vrot.slane %v2437_v32, 1  ;;  %v1547_v25 = vsel %vm1515_vm2, %v9324_v39, 0  ;;  %vm1499_vm12 = vmpackc.low %vm1403_vm11, %vm1403_vm11  ;;  %v1005_v63 = vadd.s32 232, %v9320_v6 }
 0x2ae   : > { %v1771_v9 = vunpack.c.l.b16 %v1547_v25  ;;  %v1531_v52 = vsel %vm1499_vm12, %v6528_v29, 0  ;;  %v2066_v28 = vor.u32 %v2064_v44, %v7295_v27  ;;  %v989_v16 = vadd.s32 104, %v9320_v6 }
 0x2af   : > { %v1830_v46 = vor.u32 %v1828_v5, %v1827_v54  ;;  %v7304_v8 = vsel %vm2396_vm8, %v2435_v35, %v2439_v2  ;;  %v1755_v36 = vunpack.c.l.b16 %v1531_v52  ;;  %v2443_v13 = vor.u32 %v2441_v18, %v2439_v2  ;;  %v5670_v2 = vld [vmem:[%s9011_s5 + $0xb8] sm:$0xff] }
 0x2b0   : > { %9356 = vst [vmem:[#allocation55_spill] sm:$0xff] %v7304_v8  ;;  %v1789_v53 = vpack.c.b16 %v1771_v9, %v7004_v59  ;;  %v2067_v39 = vsel %vm1792_vm9, %v2055_v48, %v2066_v28  ;;  %v1215_v15 = vand.u32 15, %v1005_v63  ;;  %v1103_v41 = vand.u32 15, %v989_v16  ;;  %2936 = vmatpush.bf16.msrb.mxu3 %v5670_v2 }
 0x2b1   : > { %v7309_v47 = vsel %vm1792_vm9, %v1819_v21, %v1830_v46  ;;  %v1781_v29 = vpack.c.b16 %v1755_v36, %v6954_v42  ;;  %v2445_v11 = vshll.u32 %v2067_v39, 16  ;;  %v2069_v33 = vshrl.u32 %v7026_v40, 16  ;;  %v5669_v36 = vld [vmem:[%s9011_s5 + $0xb0] sm:$0xff] }
 0x2b2   : > { %9357 = vst [vmem:[#allocation56_spill] sm:$0xff] %v7309_v47  ;;  %2611 = vmatmul.bf16.gmra.mxu1 %v7252_v12  ;;  %v7314_v61 = vrot.slane %v1881_v22, 7  ;;  %v1897_v1 = vshrl.u32 %v1789_v53, 16  ;;  %vm1421_vm13 = vcmp.le.s32.totalorder %v1215_v15, 14  ;;  %vm7316_vm14 = vcmp.le.s32.totalorder %v1103_v41, 14  ;;  %v9360_v22 = vld [vmem:[#allocation23_spill] sm:$0xff] }
 0x2b3   : > { %v1900_v48 = vshll.u32 %v1789_v53, 16  ;;  %v1833_v35 = vshrl.u32 %v1781_v29, 16  ;;  %v2447_v32 = vrot.slane %v2445_v11, 1  ;;  %vm1517_vm15 = vmpackc.low %vm1421_vm13, %vm1421_vm13  ;;  %v7320_v21 = vrot.slane %v2069_v33, 7 }
 0x2b4   : > { %v1899_v42 = vrot.slane %v1897_v1, 7  ;;  %v1836_v5 = vshll.u32 %v1781_v29, 16  ;;  %v1549_v44 = vsel %vm1517_vm15, %v9360_v22, 0  ;;  %vm1501_vm6 = vmpackc.low %vm7316_vm14, %vm7316_vm14  ;;  %v2072_v18 = vshll.u32 %v7026_v40, 16  ;;  %2937 = vmatpush.bf16.msrb.mxu3 %v5669_v36 }
 0x2b5   : > { %2753 = vmatmul.bf16.gmra.mxu2 %v7269_v31  ;;  %3140 = vmatmul.bf16.gmra.mxu0 %v7269_v31  ;;  %v1835_v25 = vrot.slane %v1833_v35, 7  ;;  %v7334_v63 = vsel %vm2396_vm8, %v2443_v13, %v2447_v32  ;;  %v1773_v9 = vunpack.c.l.b16 %v1549_v44  ;;  %v1533_v52 = vsel %vm1501_vm6, %v9293_v51, 0 }
 0x2b6   : > { %2676 = vmatmul.bf16.gmra.mxu3 %v7259_v55  ;;  %9361 = vst [vmem:[#allocation23_spill] sm:$0xff] %v7334_v63  ;;  %v7340_v28 = vsel %vm1792_vm9, %v7314_v61, %v7284_v37  ;;  %v1902_v16 = vor.u32 %v1900_v48, %v1899_v42  ;;  %v1757_v40 = vunpack.c.l.b16 %v1533_v52  ;;  %v2074_v46 = vor.u32 %v2072_v18, %v7320_v21 }
 0x2b7   : > { %9362 = vst [vmem:[#allocation57_spill] sm:$0xff] %v7340_v28  ;;  %v1838_v53 = vor.u32 %v1836_v5, %v1835_v25  ;;  %v1790_v13 = vpack.c.b16 %v1773_v9, %v7010_v30  ;;  %v2449_v15 = vshrl.u32 %v2067_v39, 16  ;;  %v9363_v51 = vunpack.c.l.b16 %v6711_v0 }
 0x2b8   : > { %v7352_v37 = vsel %vm1792_vm9, %v7263_v38, %v1902_v16  ;;  %v1782_v29 = vpack.c.b16 %v1757_v40, %v6960_v34  ;;  %v2075_v11 = vsel %vm1792_vm9, %v7295_v27, %v2074_v46  ;;  %v991_v33 = vadd.s32 120, %v9320_v6  ;;  %v5668_v34 = vld [vmem:[%s9011_s5 + $0xa8] sm:$0xff] }
 0x2b9   : > { %v2216_v41 = vpack.c.b16 %v7050_v45, %v9363_v51  ;;  %9364 = vst [vmem:[#allocation58_spill] sm:$0xff] %v7352_v37  ;;  %v7359_v1 = vsel %vm1792_vm9, %v1827_v54, %v1838_v53  ;;  %v1905_v30 = vshrl.u32 %v1790_v13, 16  ;;  %v2451_v39 = vor.u32 %v2449_v15, %v2447_v32  ;;  %2938 = vmatpush.bf16.msrb.mxu3 %v5668_v34 }
 0x2ba   : > { %9365 = vst [vmem:[#allocation59_spill] sm:$0xff] %v7359_v1  ;;  %v2453_v59 = vshll.u32 %v2075_v11, 16  ;;  %v1908_v0 = vshll.u32 %v1790_v13, 16  ;;  %v1841_v48 = vshrl.u32 %v1782_v29, 16  ;;  %v1844_v45 = vshll.u32 %v1782_v29, 16 }
 0x2bb   : > { %v2233_v35 = vshrl.u32 %v2216_v41, 16  ;;  %v7364_v38 = vrot.slane %v1905_v30, 7  ;;  %v1117_v5 = vand.u32 15, %v991_v33  ;;  %v2077_v44 = vshrl.u32 %v7028_v4, 16 }
 0x2bc   : > { %v2455_v27 = vrot.slane %v2453_v59, 1  ;;  %v7367_v54 = vrot.slane %v1841_v48, 7  ;;  %v2236_v32 = vshll.u32 %v2216_v41, 16  ;;  %v2080_v2 = vshll.u32 %v7028_v4, 16 }
 0x2bd   : > { %v2235_v18 = vrot.slane %v2233_v35, 7  ;;  %v1910_v9 = vor.u32 %v1908_v0, %v7364_v38  ;;  %vm1407_vm4 = vcmp.le.s32.totalorder %v1117_v5, 14  ;;  %v2079_v16 = vrot.slane %v2077_v44, 7 }
 0x2be   : > { %v7372_v52 = vsel %vm2396_vm8, %v2451_v39, %v2455_v27  ;;  %v1846_v40 = vor.u32 %v1844_v45, %v7367_v54  ;;  %vm1503_vm1 = vmpackc.low %vm1407_vm4, %vm1407_vm4  ;;  %v2457_v36 = vshrl.u32 %v2075_v11, 16  ;;  %v9366_v53 = vunpack.c.l.b16 %v6719_v17 }
 0x2bf   : > { %v2238_v46 = vor.u32 %v2236_v32, %v2235_v18  ;;  %v7379_v15 = vsel %vm1792_vm9, %v1899_v42, %v1910_v9  ;;  %v1535_v4 = vsel %vm1503_vm1, %v9297_v56, 0  ;;  %v2082_v51 = vor.u32 %v2080_v2, %v2079_v16  ;;  %v9370_v9 = vld [vmem:[#allocation25_spill] sm:$0xff] }
 0x2c0   : > { %v2217_v13 = vpack.c.b16 %v7057_v3, %v9366_v53  ;;  %9367 = vst [vmem:[#allocation60_spill] sm:$0xff] %v7379_v15  ;;  %v993_v41 = vadd.s32 136, %v9320_v6  ;;  %v7384_v29 = vsel %vm1792_vm9, %v1835_v25, %v1846_v40  ;;  %vm2838_vm10 = vcmask 1046528  }
 0x2c1   : > { %9368 = vst [vmem:[#allocation61_spill] sm:$0xff] %v7384_v29  ;;  %v2361_v33 = vsel %vm7178_vm7, 0, %v2238_v46  ;;  %v1759_v11 = vunpack.c.l.b16 %v1535_v4  ;;  %v2083_v3 = vsel %vm1792_vm9, %v7320_v21, %v2082_v51  ;;  %v2459_v30 = vor.u32 %v2457_v36, %v2455_v27  ;;  %v5683_v21 = vld [vmem:[%s9011_s5 + $0x120] sm:$0xff]  ;;  %v9372_v46 = vld [vmem:[#allocation4_spill] sm:$0xff] }
 0x2c2   : > { %v2240_v17 = vshrl.u32 %v2217_v13, 16  ;;  %v2243_v42 = vshll.u32 %v2217_v13, 16  ;;  %v1131_v39 = vand.u32 15, %v993_v41  ;;  %2616 = vmatmul.bf16.gmra.mxu1 %v7280_v14  ;;  %v2461_v59 = vshll.u32 %v2083_v3, 16  ;;  %v5666_v13 = vld [vmem:[%s9011_s5 + $0x98] sm:$0xff] }
 0x2c3   : > { %v1783_v56 = vpack.c.b16 %v1759_v11, %v6966_v19  ;;  %v2085_v25 = vshrl.u32 %v7030_v58, 16  ;;  %v7393_v48 = vrot.slane %v2361_v33, 1  ;;  %v2088_v45 = vshll.u32 %v7030_v58, 16  ;;  %v5667_v19 = vld [vmem:[%s9011_s5 + $0xa0] sm:$0xff]  ;;  %v9369_v58 = vld [vmem:[#allocation13_spill] sm:$0xff]  ;;  %3320 = vmatpush.bf16.msrb.mxu1 %v5683_v21 }
 0x2c4   : > { %v2242_v0 = vrot.slane %v2240_v17, 7  ;;  %vm1409_vm0 = vcmp.le.s32.totalorder %v1131_v39, 14  ;;  %v2465_v35 = vshrl.u32 %v2083_v3, 16  ;;  %v2463_v5 = vrot.slane %v2461_v59, 1  ;;  %2939 = vmatpush.bf16.msrb.mxu3 %v5667_v19  ;;  %v9427_v14 = vld [vmem:[#allocation21_spill] sm:$0xff] }
 0x2c5   : > { %2758 = vmatmul.bf16.gmra.mxu2 %v7291_v7  ;;  %3145 = vmatmul.bf16.gmra.mxu0 %v7291_v7  ;;  %v1849_v34 = vshrl.u32 %v1783_v56, 16  ;;  %v1852_v27 = vshll.u32 %v1783_v56, 16  ;;  %vm1505_vm5 = vmpackc.low %vm1409_vm0, %vm1409_vm0  ;;  %v2087_v2 = vrot.slane %v2085_v25, 7  ;;  %v9371_v40 = vunpack.c.l.b16 %v9370_v9  ;;  %v9373_v56 = vld [vmem:[#allocation41_spill] sm:$0xff] }
 0x2c6   : > { %v2245_v44 = vor.u32 %v2243_v42, %v2242_v0  ;;  %2803 = vmatmul.bf16.vlgmr.msra.gmra.mxu3 %v7340_v28  ;;  %v1537_v32 = vsel %vm1505_vm5, %v9369_v58, 0  ;;  %v995_v53 = vadd.s32 152, %v9320_v6  ;;  %v7414_v51 = vsel %vm2396_vm8, %v2459_v30, %v2463_v5  ;;  %v9374_v58 = vld [vmem:[#allocation44_spill] sm:$0xff] }
 0x2c7   : > { %v2218_v36 = vpack.c.b16 %v9372_v46, %v9371_v40  ;;  %v1851_v4 = vrot.slane %v1849_v34, 7  ;;  %v1761_v33 = vunpack.c.l.b16 %v1537_v32  ;;  %v2090_v17 = vor.u32 %v2088_v45, %v2087_v2 }
 0x2c8   : > { %v2246_v41 = vsel %vm1792_vm9, %v2235_v18, %v2245_v44  ;;  %v2467_v3 = vor.u32 %v2465_v35, %v2463_v5  ;;  %v1145_v21 = vand.u32 15, %v995_v53  ;;  %v2093_v9 = vshrl.u32 %v9374_v58, 16  ;;  %2940 = vmatpush.bf16.msrb.mxu3 %v5666_v13  ;;  %v5665_v18 = vld [vmem:[%s9011_s5 + $0x90] sm:$0xff]  ;;  %v9376_v53 = vld [vmem:[#allocation26_spill] sm:$0xff] }
 0x2c9   : > { %v2842_v11 = vrot.slane %v2246_v41, 1  ;;  %v2248_v42 = vshrl.u32 %v2218_v36, 16  ;;  %v1854_v39 = vor.u32 %v1852_v27, %v1851_v4  ;;  %v1784_v59 = vpack.c.b16 %v1761_v33, %v9373_v56  ;;  %v9378_v41 = vld [vmem:[#allocation47_spill] sm:$0xff] }
 0x2ca   : > { %v2251_v25 = vshll.u32 %v2218_v36, 16  ;;  %v2091_v34 = vsel %vm1792_vm9, %v2079_v16, %v2090_v17  ;;  %vm1411_vm2 = vcmp.le.s32.totalorder %v1145_v21, 14  ;;  %v2095_v32 = vrot.slane %v2093_v9, 7 }
 0x2cb   : > { %v7420_v19 = vsel %vm2838_vm10, %v7393_v48, %v2842_v11  ;;  %v2250_v30 = vrot.slane %v2248_v42, 7  ;;  %v7429_v45 = vsel %vm1792_vm9, %v7367_v54, %v1854_v39  ;;  %v1857_v35 = vshrl.u32 %v1784_v59, 16  ;;  %vm1507_vm11 = vmpackc.low %vm1411_vm2, %vm1411_vm2  ;;  %v9379_v54 = vld [vmem:[#allocation12_spill] sm:$0xff] }
 0x2cc   : > { %9375 = vst [vmem:[#allocation13_spill] sm:$0xff] %v7429_v45  ;;  %v1860_v27 = vshll.u32 %v1784_v59, 16  ;;  %v2469_v5 = vshll.u32 %v2091_v34, 16  ;;  %v2096_v16 = vshll.u32 %v9374_v58, 16  ;;  %v2473_v36 = vshrl.u32 %v2091_v34, 16  ;;  %2941 = vmatpush.bf16.msrb.mxu3 %v5665_v18  ;;  %v5664_v59 = vld [vmem:[%s9011_s5 + $0x88] sm:$0xff] }
 0x2cd   : > { %v2253_v44 = vor.u32 %v2251_v25, %v2250_v30  ;;  %v1859_v40 = vrot.slane %v1857_v35, 7  ;;  %v9377_v13 = vunpack.c.l.b16 %v9376_v53  ;;  %v1539_v42 = vsel %vm1507_vm11, %v9379_v54, 0 }
 0x2ce   : > { %v2471_v46 = vrot.slane %v2469_v5, 1  ;;  %v2098_v39 = vor.u32 %v2096_v16, %v2095_v32  ;;  %v997_v56 = vadd.s32 168, %v9320_v6  ;;  %v1763_v58 = vunpack.c.l.b16 %v1539_v42  ;;  %v9382_v16 = vld [vmem:[#allocation42_spill] sm:$0xff]  ;;  %v9384_v42 = vld [vmem:[#allocation27_spill] sm:$0xff] }
 0x2cf   : > { %v2219_v33 = vpack.c.b16 %v9378_v41, %v9377_v13  ;;  %v2254_v17 = vsel %vm1792_vm9, %v2242_v0, %v2253_v44  ;;  %v1862_v25 = vor.u32 %v1860_v27, %v1859_v40 }
 0x2d0   : > { %v7442_v21 = vsel %vm2396_vm8, %v2467_v3, %v2471_v46  ;;  %v2844_v34 = vrot.slane %v2254_v17, 1  ;;  %v2099_v9 = vsel %vm1792_vm9, %v2087_v2, %v2098_v39  ;;  %v2475_v35 = vor.u32 %v2473_v36, %v2471_v46  ;;  %v9383_v3 = vld [vmem:[#allocation45_spill] sm:$0xff]  ;;  %2942 = vmatpush.bf16.msrb.mxu3 %v5664_v59 }
 0x2d1   : > { %v2256_v0 = vshrl.u32 %v2219_v33, 16  ;;  %v2259_v5 = vshll.u32 %v2219_v33, 16  ;;  %v7446_v44 = vsel %vm1792_vm9, %v1851_v4, %v1862_v25  ;;  %v1785_v53 = vpack.c.b16 %v1763_v58, %v9382_v16  ;;  %v9386_v25 = vld [vmem:[#allocation48_spill] sm:$0xff]  ;;  %v5682_v16 = vld [vmem:[%s9011_s5 + $0x118] sm:$0xff] }
 0x2d2   : > { %9380 = vst [vmem:[#allocation25_spill] sm:$0xff] %v7446_v44  ;;  %v7449_v18 = vsel %vm2838_vm10, %v2842_v11, %v2844_v34  ;;  %v2477_v13 = vshll.u32 %v2099_v9, 16  ;;  %v1159_v41 = vand.u32 15, %v997_v56  ;;  %v2101_v54 = vshrl.u32 %v9383_v3, 16  ;;  %2621 = vmatmul.bf16.gmra.mxu1 %v7304_v8  ;;  %v5663_v56 = vld [vmem:[%s9011_s5 + $0x80] sm:$0xff] }
 0x2d3   : > { %9381 = vst [vmem:[#allocation4_spill] sm:$0xff] %v7449_v18  ;;  %v2258_v27 = vrot.slane %v2256_v0, 7  ;;  %v2104_v17 = vshll.u32 %v9383_v3, 16  ;;  %v1865_v2 = vshrl.u32 %v1785_v53, 16  ;;  %v1868_v46 = vshll.u32 %v1785_v53, 16  ;;  %3321 = vmatpush.bf16.msrb.mxu1 %v5682_v16  ;;  %v9393_v16 = vld [vmem:[#allocation6_spill] sm:$0xff] }
 0x2d4   : > { %v2479_v36 = vrot.slane %v2477_v13, 1  ;;  %v2481_v4 = vshrl.u32 %v2099_v9, 16  ;;  %vm1413_vm12 = vcmp.le.s32.totalorder %v1159_v41, 14  ;;  %v2103_v11 = vrot.slane %v2101_v54, 7  ;;  %v9387_v13 = vld [vmem:[#allocation20_spill] sm:$0xff]  ;;  %2943 = vmatpush.bf16.msrb.mxu3 %v5663_v56  ;;  %v9392_v56 = vld [vmem:[#allocation37_spill] sm:$0xff] }
 0x2d5   : > { %v2261_v33 = vor.u32 %v2259_v5, %v2258_v27  ;;  %v9385_v39 = vunpack.c.l.b16 %v9384_v42  ;;  %2763 = vmatmul.bf16.gmra.mxu2 %v7309_v47  ;;  %3150 = vmatmul.bf16.gmra.mxu0 %v7309_v47  ;;  %v1867_v59 = vrot.slane %v1865_v2, 7  ;;  %vm1509_vm13 = vmpackc.low %vm1413_vm12, %vm1413_vm12  ;;  %v1884_v5 = vshll.u32 %v7275_v26, 16 }
 0x2d6   : > { %v7464_v0 = vsel %vm2396_vm8, %v2475_v35, %v2479_v36  ;;  %v2483_v9 = vor.u32 %v2481_v4, %v2479_v36  ;;  %2808 = vmatmul.bf16.gmra.mxu3 %v7352_v37  ;;  %v1541_v41 = vsel %vm1509_vm13, %v9387_v13, 0  ;;  %v2106_v3 = vor.u32 %v2104_v17, %v2103_v11  ;;  %v9391_v17 = vld [vmem:[#allocation43_spill] sm:$0xff] }
 0x2d7   : > { %v2220_v58 = vpack.c.b16 %v9386_v25, %v9385_v39  ;;  %v2262_v53 = vsel %vm1792_vm9, %v2250_v30, %v2261_v33  ;;  %v1870_v2 = vor.u32 %v1868_v46, %v1867_v59  ;;  %v1765_v42 = vunpack.c.l.b16 %v1541_v41  ;;  %v9388_v25 = vld [vmem:[#allocation46_spill] sm:$0xff] }
 0x2d8   : > { %v2846_v35 = vrot.slane %v2262_v53, 1  ;;  %v2107_v26 = vsel %vm1792_vm9, %v2095_v32, %v2106_v3  ;;  %v1886_v4 = vor.u32 %v1884_v5, %v7314_v61  ;;  %v2112_v50 = vshll.u32 %v9388_v25, 16  ;;  %v9394_v32 = vld [vmem:[#allocation28_spill] sm:$0xff]  ;;  %v9396_v3 = vld [vmem:[#allocation49_spill] sm:$0xff] }
 0x2d9   : > { %v2264_v54 = vshrl.u32 %v2220_v58, 16  ;;  %v2267_v39 = vshll.u32 %v2220_v58, 16  ;;  %v7477_v60 = vsel %vm1792_vm9, %v1859_v40, %v1870_v2  ;;  %v1786_v33 = vpack.c.b16 %v1765_v42, %v9391_v17  ;;  %v9397_v40 = vld [vmem:[#allocation29_spill] sm:$0xff] }
 0x2da   : > { %9389 = vst [vmem:[#allocation41_spill] sm:$0xff] %v7477_v60  ;;  %v7480_v30 = vsel %vm2838_vm10, %v2844_v34, %v2846_v35  ;;  %v2485_v46 = vshll.u32 %v2107_v26, 16  ;;  %v2114_v13 = vor.u32 %v2112_v50, %v9393_v16  ;;  %v9395_v41 = vunpack.c.l.b16 %v9394_v32 }
 0x2db   : > { %v2266_v36 = vrot.slane %v2264_v54, 7  ;;  %9390 = vst [vmem:[#allocation44_spill] sm:$0xff] %v7480_v30  ;;  %v1873_v5 = vshrl.u32 %v1786_v33, 16  ;;  %v2489_v25 = vshrl.u32 %v2107_v26, 16  ;;  %v9398_v2 = vunpack.c.l.b16 %v9397_v40 }
 0x2dc   : > { %v2221_v61 = vpack.c.b16 %v9396_v3, %v9395_v41  ;;  %v2487_v54 = vrot.slane %v2485_v46, 1  ;;  %v1876_v55 = vshll.u32 %v1786_v33, 16  ;;  %v7493_v17 = vsel %vm1792_vm9, %v2103_v11, %v2114_v13  ;;  %v9402_v13 = vld [vmem:[#allocation30_spill] sm:$0xff] }
 0x2dd   : > { %v2269_v58 = vor.u32 %v2267_v39, %v2266_v36  ;;  %v2222_v34 = vpack.c.b16 %v9399_v23, %v9398_v2  ;;  %v1875_v53 = vrot.slane %v1873_v5, 7  ;;  %v2493_v26 = vshll.u32 %v7493_v17, 16  ;;  %v9406_v2 = vld [vmem:[#allocation31_spill] sm:$0xff] }
 0x2de   : > { %v2272_v39 = vshrl.u32 %v2221_v61, 16  ;;  %v7496_v50 = vsel %vm2396_vm8, %v2483_v9, %v2487_v54  ;;  %v2275_v32 = vshll.u32 %v2221_v61, 16  ;;  %v2491_v41 = vor.u32 %v2489_v25, %v2487_v54  ;;  %v9404_v61 = vld [vmem:[#allocation10_spill] sm:$0xff] }
 0x2df   : > { %v2270_v42 = vsel %vm1792_vm9, %v2258_v27, %v2269_v58  ;;  %v2280_v3 = vshrl.u32 %v2222_v34, 16  ;;  %v1878_v40 = vor.u32 %v1876_v55, %v1875_v53  ;;  %v7503_v27 = vsel %vm1792_vm9, %v1875_v53, %v1886_v4  ;;  %v9409_v4 = vld [vmem:[#allocation32_spill] sm:$0xff] }
 0x2e0   : > { %v2848_v16 = vrot.slane %v2270_v42, 1  ;;  %v2274_v46 = vrot.slane %v2272_v39, 7  ;;  %9401 = vst [vmem:[#allocation47_spill] sm:$0xff] %v7503_v27  ;;  %v2283_v11 = vshll.u32 %v2222_v34, 16  ;;  %v7505_v33 = vrot.slane %v2493_v26, 1  ;;  %v9408_v42 = vld [vmem:[#allocation11_spill] sm:$0xff] }
 0x2e1   : > { %v2282_v9 = vrot.slane %v2280_v3, 7  ;;  %v9403_v5 = vunpack.c.l.b16 %v9402_v13  ;;  %v7511_v25 = vsel %vm1792_vm9, %v1867_v59, %v1878_v40  ;;  %v9407_v55 = vunpack.c.l.b16 %v9406_v2  ;;  %v9411_v34 = vld [vmem:[#allocation50_spill] sm:$0xff] }
 0x2e2   : > { %v7500_v23 = vsel %vm2838_vm10, %v2846_v35, %v2848_v16  ;;  %v2277_v58 = vor.u32 %v2275_v32, %v2274_v46  ;;  %9405 = vst [vmem:[#allocation12_spill] sm:$0xff] %v7511_v25  ;;  %v1007_v39 = vadd.s32 248, %v9320_v6  ;;  %v9410_v53 = vunpack.c.l.b16 %v9409_v4  ;;  %2626 = vmatmul.bf16.gmra.mxu1 %v7334_v63 }
 0x2e3   : > { %9400 = vst [vmem:[#allocation26_spill] sm:$0xff] %v7500_v23  ;;  %v2223_v54 = vpack.c.b16 %v9404_v61, %v9403_v5  ;;  %v2224_v35 = vpack.c.b16 %v9408_v42, %v9407_v55  ;;  %v9413_v32 = vsel %vm6479_vm3, %v9360_v22, 0  ;;  %v7528_v59 = vsel %vm2396_vm8, %v2491_v41, %v7505_v33  ;;  %v9414_v5 = vld [vmem:[#allocation38_spill] sm:$0xff] }
 0x2e4   : > { %v2225_v26 = vpack.c.b16 %v9411_v34, %v9410_v53  ;;  %v7524_v3 = vunpack.c.l.b16 %v9413_v32  ;;  %v2278_v40 = vsel %vm1792_vm9, %v2266_v36, %v2277_v58  ;;  %v2285_v13 = vor.u32 %v2283_v11, %v2282_v9 }
 0x2e5   : > { %v2850_v6 = vrot.slane %v2278_v40, 1  ;;  %v2288_v2 = vshrl.u32 %v2223_v54, 16  ;;  %v2296_v55 = vshrl.u32 %v2224_v35, 16  ;;  %v2291_v4 = vshll.u32 %v2223_v54, 16  ;;  %2768 = vmatmul.bf16.gmra.mxu2 %v7359_v1  ;;  %3155 = vmatmul.bf16.gmra.mxu0 %v7359_v1  ;;  %v9416_v40 = vld [vmem:[#allocation33_spill] sm:$0xff]  ;;  %v9418_v54 = vld [vmem:[#allocation51_spill] sm:$0xff] }
 0x2e6   : > { %v2286_v42 = vsel %vm1792_vm9, %v2274_v46, %v2285_v13  ;;  %v2299_v22 = vshll.u32 %v2224_v35, 16  ;;  %v1229_v53 = vand.u32 15, %v1007_v39  ;;  %2813 = vmatmul.bf16.gmra.mxu3 %v7379_v15  ;;  %v2304_v34 = vshrl.u32 %v2225_v26, 16 }
 0x2e7   : > { %v7537_v41 = vsel %vm2838_vm10, %v2848_v16, %v2850_v6  ;;  %v2852_v36 = vrot.slane %v2286_v42, 1  ;;  %v2290_v11 = vrot.slane %v2288_v2, 7  ;;  %v2298_v58 = vrot.slane %v2296_v55, 7  ;;  %v9420_v16 = vld [vmem:[#allocation34_spill] sm:$0xff]  ;;  %v9423_v55 = vld [vmem:[#allocation24_spill] sm:$0xff] }
 0x2e8   : > { %9415 = vst [vmem:[#allocation42_spill] sm:$0xff] %v7537_v41  ;;  %vm1423_vm14 = vcmp.le.s32.totalorder %v1229_v53, 14  ;;  %v2307_v32 = vshll.u32 %v2225_v26, 16  ;;  %v9417_v46 = vunpack.c.l.b16 %v9416_v40  ;;  %v9421_v1 = vunpack.c.l.b16 %v9420_v16  ;;  %v9422_v42 = vld [vmem:[#allocation14_spill] sm:$0xff] }
 0x2e9   : > { %v7544_v39 = vsel %vm2838_vm10, %v2850_v6, %v2852_v36  ;;  %v2293_v13 = vor.u32 %v2291_v4, %v2290_v11  ;;  %v2301_v61 = vor.u32 %v2299_v22, %v2298_v58  ;;  %vm1519_vm15 = vmpackc.low %vm1423_vm14, %vm1423_vm14  ;;  %v2306_v62 = vrot.slane %v2304_v34, 7 }
 0x2ea   : > { %v2226_v35 = vpack.c.b16 %v9418_v54, %v9417_v46  ;;  %9419 = vst [vmem:[#allocation45_spill] sm:$0xff] %v7544_v39  ;;  %v2227_v2 = vpack.c.b16 %v9422_v42, %v9421_v1  ;;  %v1551_v47 = vsel %vm1519_vm15, %v9423_v55, 0  ;;  %v9425_v1 = vld [vmem:[#allocation35_spill] sm:$0xff] }
 0x2eb   : > { %v2294_v26 = vsel %vm1792_vm9, %v2282_v9, %v2293_v13  ;;  %v2302_v40 = vsel %vm1792_vm9, %v2290_v11, %v2301_v61  ;;  %v1775_v46 = vunpack.c.l.b16 %v1551_v47  ;;  %v2309_v4 = vor.u32 %v2307_v32, %v2306_v62 }
 0x2ec   : > { %v2312_v53 = vshrl.u32 %v2226_v35, 16  ;;  %v2315_v7 = vshll.u32 %v2226_v35, 16  ;;  %v2320_v54 = vshrl.u32 %v2227_v2, 16  ;;  %v2854_v6 = vrot.slane %v2294_v26, 1 }
 0x2ed   : > { %v2856_v31 = vrot.slane %v2302_v40, 1  ;;  %v1791_v63 = vpack.c.b16 %v1775_v46, %v9424_v10  ;;  %v2323_v8 = vshll.u32 %v2227_v2, 16  ;;  %v9426_v42 = vunpack.c.l.b16 %v9425_v1  ;;  %v9433_v46 = vld [vmem:[#allocation7_spill] sm:$0xff] }
 0x2ee   : > { %v2314_v22 = vrot.slane %v2312_v53, 7  ;;  %v2322_v16 = vrot.slane %v2320_v54, 7  ;;  %v7557_v35 = vsel %vm2838_vm10, %v2852_v36, %v2854_v6  ;;  %v2310_v47 = vsel %vm1792_vm9, %v2298_v58, %v2309_v4  ;;  %v9431_v36 = vld [vmem:[#allocation36_spill] sm:$0xff] }
 0x2ef   : > { %v2228_v34 = vpack.c.b16 %v9427_v14, %v9426_v42  ;;  %9428 = vst [vmem:[#allocation27_spill] sm:$0xff] %v7557_v35  ;;  %v7560_v9 = vsel %vm2838_vm10, %v2854_v6, %v2856_v31  ;;  %v9430_v11 = vsel %vm6479_vm3, %v9423_v55, 0  ;;  %v1913_v32 = vshrl.u32 %v1791_v63, 16 }
 0x2f0   : > { %9429 = vst [vmem:[#allocation48_spill] sm:$0xff] %v7560_v9  ;;  %v2317_v61 = vor.u32 %v2315_v7, %v2314_v22  ;;  %v2215_v10 = vunpack.c.l.b16 %v9430_v11  ;;  %v2858_v13 = vrot.slane %v2310_v47, 1  ;;  %v2325_v2 = vor.u32 %v2323_v8, %v2322_v16 }
 0x2f1   : > { %v1916_v53 = vshll.u32 %v1791_v63, 16  ;;  %v2328_v26 = vshrl.u32 %v2228_v34, 16  ;;  %v9432_v40 = vunpack.c.l.b16 %v9431_v36  ;;  %v7571_v6 = vrot.slane %v1913_v32, 7 }
 0x2f2   : > { %v2318_v14 = vsel %vm1792_vm9, %v2306_v62, %v2317_v61  ;;  %v7574_v7 = vsel %vm2838_vm10, %v2856_v31, %v2858_v13  ;;  %v2326_v58 = vsel %vm1792_vm9, %v2314_v22, %v2325_v2  ;;  %v2331_v1 = vshll.u32 %v2228_v34, 16  ;;  %2631 = vmatmul.bf16.gmra.mxu1 %v7372_v52 }
 0x2f3   : > { %v2229_v54 = vpack.c.b16 %v9433_v46, %v9432_v40  ;;  %9434 = vst [vmem:[#allocation20_spill] sm:$0xff] %v7571_v6  ;;  %v2860_v49 = vrot.slane %v2318_v14, 1  ;;  %v2862_v55 = vrot.slane %v2326_v58, 1  ;;  %v2330_v4 = vrot.slane %v2328_v26, 7 }
 0x2f4   : > { %9435 = vst [vmem:[#allocation46_spill] sm:$0xff] %v7574_v7  ;;  %v1918_v63 = vor.u32 %v1916_v53, %v7571_v6  ;;  %v9436_v42 = vunpack.c.l.b16 %v9392_v56  ;;  %v9437_v61 = vunpack.c.l.b16 %v9414_v5  ;;  %v2841_v56 = vsel %vm2838_vm10, %v7149_v43, %v7393_v48 }
 0x2f5   : > { %v2336_v8 = vshrl.u32 %v2229_v54, 16  ;;  %v7579_v62 = vsel %vm2838_vm10, %v2858_v13, %v2860_v49  ;;  %v7587_v11 = vsel %vm2838_vm10, %v2860_v49, %v2862_v55  ;;  %v2333_v22 = vor.u32 %v2331_v1, %v2330_v4  ;;  %2773 = vmatmul.bf16.gmra.mxu2 %v7384_v29  ;;  %3160 = vmatmul.bf16.gmra.mxu0 %v7384_v29 }
 0x2f6   : > { %v2230_v47 = vpack.c.b16 %v7524_v3, %v9436_v42  ;;  %v2231_v31 = vpack.c.b16 %v2215_v10, %v9437_v61  ;;  %v2339_v2 = vshll.u32 %v2229_v54, 16  ;;  %v7592_v34 = vsel %vm1792_vm9, %v7364_v38, %v1918_v63  ;;  %2944 = vmatmul.bf16.vlgmr.msrb.gmra.mxu3 %v2841_v56 }
 0x2f7   : > { %v2338_v32 = vrot.slane %v2336_v8, 7  ;;  %9438 = vst [vmem:[#allocation43_spill] sm:$0xff] %v7592_v34  ;;  %v2334_v3 = vsel %vm1792_vm9, %v2322_v16, %v2333_v22 }
 0x2f8   : > { %v2344_v13 = vshrl.u32 %v2230_v47, 16  ;;  %v2352_v53 = vshrl.u32 %v2231_v31, 16  ;;  %v2347_v10 = vshll.u32 %v2230_v47, 16  ;;  %v2864_v14 = vrot.slane %v2334_v3, 1 }
 0x2f9   : > { %v2341_v5 = vor.u32 %v2339_v2, %v2338_v32  ;;  %v2355_v40 = vshll.u32 %v2231_v31, 16  ;;  %v5694_v2 = vld [vmem:[%s9011_s5 + $0x178] sm:$0xff] }
 0x2fa   : > { %v2346_v26 = vrot.slane %v2344_v13, 7  ;;  %v2354_v36 = vrot.slane %v2352_v53, 7  ;;  %v7602_v46 = vsel %vm2838_vm10, %v2862_v55, %v2864_v14  ;;  %3507 = vmatpush.bf16.msrb.mxu2 %v5694_v2 }
 0x2fb   : > { %v2342_v38 = vsel %vm1792_vm9, %v2330_v4, %v2341_v5  ;;  %v5681_v4 = vld [vmem:[%s9011_s5 + $0x110] sm:$0xff]  ;;  %v5680_v5 = vld [vmem:[%s9011_s5 + $0x108] sm:$0xff] }
 0x2fc   : > { %v2866_v54 = vrot.slane %v2342_v38, 1  ;;  %v2349_v48 = vor.u32 %v2347_v10, %v2346_v26  ;;  %v2357_v49 = vor.u32 %v2355_v40, %v2354_v36  ;;  %v2362_v16 = vsel %vm7178_vm7, %v2354_v36, 0  ;;  %3322 = vmatpush.bf16.msrb.mxu1 %v5681_v4  ;;  %v5693_v38 = vld [vmem:[%s9011_s5 + $0x170] sm:$0xff]  ;;  %v5690_v4 = vld [vmem:[%s9011_s5 + $0x158] sm:$0xff] }
 0x2fd   : > { %v3456_v63 = vrot.slane %v2362_v16, 1 }
 0x2fe   : > { %v7607_v58 = vsel %vm2838_vm10, %v2864_v14, %v2866_v54  ;;  %v2350_v1 = vsel %vm1792_vm9, %v2338_v32, %v2349_v48  ;;  %v2358_v8 = vsel %vm1792_vm9, %v2346_v26, %v2357_v49  ;;  %3508 = vmatpush.bf16.msrb.mxu2 %v5693_v38 }
 0x2ff   : > { %9439 = vst [vmem:[#allocation37_spill] sm:$0xff] %v7607_v58  ;;  %v2868_v55 = vrot.slane %v2350_v1, 1  ;;  %v2870_v42 = vrot.slane %v2358_v8, 1  ;;  %v7616_v47 = vsel %vm2838_vm10, %v3456_v63, %v7149_v43 }
 0x300   : > { %9440 = vst [vmem:[#allocation6_spill] sm:$0xff] %v7616_v47  ;;  %3323 = vmatpush.bf16.msrb.mxu1 %v5680_v5  ;;  %v5679_v5 = vld [vmem:[%s9011_s5 + $0x100] sm:$0xff] }
 0x301   : > { %v7619_v61 = vsel %vm2838_vm10, %v2866_v54, %v2868_v55  ;;  %v7622_v31 = vsel %vm2838_vm10, %v2868_v55, %v2870_v42  ;;  %v7625_v22 = vsel %vm2838_vm10, %v2870_v42, %v3456_v63  ;;  %v5692_v54 = vld [vmem:[%s9011_s5 + $0x168] sm:$0xff]  ;;  %v5691_v63 = vld [vmem:[%s9011_s5 + $0x160] sm:$0xff] }
 0x302   : > { %9441 = vst [vmem:[#allocation28_spill] sm:$0xff] %v7619_v61  ;;  %2636 = vmatmul.bf16.gmra.mxu1 %v7414_v51  ;;  %3509 = vmatpush.bf16.msrb.mxu2 %v5692_v54 }
 0x303   : > { %9442 = vst [vmem:[#allocation49_spill] sm:$0xff] %v7622_v31 }
 0x304   : > { %9443 = vst [vmem:[#allocation29_spill] sm:$0xff] %v7625_v22  ;;  %3324 = vmatpush.bf16.msrb.mxu1 %v5679_v5 }
 0x305   : > { %2778 = vmatmul.bf16.gmra.mxu2 %v7429_v45  ;;  %3165 = vmatmul.bf16.gmra.mxu0 %v7429_v45 }
 0x306   : > { %2949 = vmatmul.bf16.gmra.mxu3 %v7420_v19  ;;  %3510 = vmatpush.bf16.msrb.mxu2 %v5691_v63  ;;  %v5687_v63 = vld [vmem:[%s9011_s5 + $0x140] sm:$0xff] }
 0x308   : > { %v2739_v32 = vpop.f32.mrf.mxu2 }
 0x30a   : > { %3511 = vmatpush.bf16.msrb.mxu2 %v5690_v4 }
 0x30f   : > { %v2602_v53 = vpop.f32.mrf.mxu1 }
 0x310   : > { %v2741_v13 = vpop.f32.mrf.mxu2  ;;  %v7634_v56 = vadd.f32 %v2739_v32, %v2602_v53  ;;  %v5689_v53 = vld [vmem:[%s9011_s5 + $0x150] sm:$0xff] }
 0x311   : > { %3512 = vmatpush.bf16.msrb.mxu2 %v5689_v53 }
 0x312   : > { %v7636_v3 = vpop.f32.mrf.mxu0  ;;  %2641 = vmatmul.bf16.gmra.mxu1 %v7442_v21 }
 0x315   : > { %2783 = vmatmul.bf16.gmra.mxu2 %v7446_v44  ;;  %3170 = vmatmul.bf16.gmra.mxu0 %v7446_v44  ;;  %v2497_v44 = vshrl.u32 %v7493_v17, 16 }
 0x316   : > { %2954 = vmatmul.bf16.gmra.mxu3 %v7449_v18 }
 0x317   : > { %v2604_v14 = vpop.f32.mrf.mxu1  ;;  %v2499_v45 = vor.u32 %v2497_v44, %v7505_v33 }
 0x318   : > { %v2744_v10 = vpop.f32.mrf.mxu2  ;;  %v7645_v26 = vadd.f32 %v2741_v13, %v2604_v14 }
 0x319   : > { %v7647_v36 = vpop.f32.mrf.mxu3 }
 0x31a   : > { %v7649_v40 = vpop.f32.mrf.mxu0 }
 0x31f   : > { %v2607_v49 = vpop.f32.mrf.mxu1 }
 0x320   : > { %v2746_v48 = vpop.f32.mrf.mxu2  ;;  %v7657_v16 = vadd.f32 %v2744_v10, %v2607_v49  ;;  %v5688_v10 = vld [vmem:[%s9011_s5 + $0x148] sm:$0xff] }
 0x321   : > { %v7659_v1 = vpop.f32.mrf.mxu3  ;;  %3513 = vmatpush.bf16.msrb.mxu2 %v5688_v10  ;;  %v5702_v10 = vld [vmem:[%s9011_s5 + $0x1b8] sm:$0xff] }
 0x322   : > { %v7661_v8 = vpop.f32.mrf.mxu0  ;;  %2646 = vmatmul.bf16.gmra.mxu1 %v7464_v0  ;;  %3693 = vmatpush.bf16.msra.mxu3 %v5702_v10  ;;  %v5718_v10 = vld [vmem:[%s9011_s5 + $0x238] sm:$0xff] }
 0x323   : > { %4072 = vmatpush.bf16.msra.mxu1 %v5718_v10 }
 0x325   : > { %2788 = vmatmul.bf16.gmra.mxu2 %v7477_v60  ;;  %3175 = vmatmul.bf16.gmra.mxu0 %v7477_v60 }
 0x326   : > { %2959 = vmatmul.bf16.gmra.mxu3 %v7480_v30  ;;  %3514 = vmatpush.bf16.msrb.mxu2 %v5687_v63 }
 0x327   : > { %v2609_v42 = vpop.f32.mrf.mxu1 }
 0x328   : > { %v2749_v55 = vpop.f32.mrf.mxu2  ;;  %v7673_v32 = vadd.f32 %v2746_v48, %v2609_v42 }
 0x329   : > { %v7675_v2 = vpop.f32.mrf.mxu3 }
 0x32a   : > { %v7677_v13 = vpop.f32.mrf.mxu0 }
 0x32f   : > { %v2612_v38 = vpop.f32.mrf.mxu1 }
 0x330   : > { %v2751_v14 = vpop.f32.mrf.mxu2  ;;  %v7688_v54 = vadd.f32 %v2749_v55, %v2612_v38 }
 0x331   : > { %v7690_v48 = vpop.f32.mrf.mxu3 }
 0x332   : > { %v7692_v49 = vpop.f32.mrf.mxu0  ;;  %2651 = vmatmul.bf16.gmra.mxu1 %v7496_v50 }
 0x335   : > { %2793 = vmatmul.bf16.gmra.mxu2 %v7511_v25  ;;  %3180 = vmatmul.bf16.gmra.mxu0 %v7511_v25 }
 0x336   : > { %2964 = vmatmul.bf16.gmra.mxu3 %v7500_v23 }
 0x337   : > { %v2614_v55 = vpop.f32.mrf.mxu1 }
 0x338   : > { %v2754_v4 = vpop.f32.mrf.mxu2  ;;  %v7701_v42 = vadd.f32 %v2751_v14, %v2614_v55  ;;  %v5710_v14 = vld [vmem:[%s9011_s5 + $0x1f8] sm:$0xff] }
 0x339   : > { %v7703_v53 = vpop.f32.mrf.mxu3  ;;  %3884 = vmatpush.bf16.msra.mxu0 %v5710_v14 }
 0x33a   : > { %v7705_v5 = vpop.f32.mrf.mxu0 }
 0x33f   : > { %v2617_v63 = vpop.f32.mrf.mxu1 }
 0x340   : > { %v2756_v38 = vpop.f32.mrf.mxu2  ;;  %v7710_v47 = vadd.f32 %v2754_v4, %v2617_v63 }
 0x341   : > { %v7712_v6 = vpop.f32.mrf.mxu3 }
 0x342   : > { %v7714_v25 = vpop.f32.mrf.mxu0  ;;  %2656 = vmatmul.bf16.gmra.mxu1 %v7528_v59 }
 0x343   : > { %9444 = vst [vmem:[#allocation5_spill] sm:$0xff] %v7714_v25 }
 0x345   : > { %2798 = vmatmul.bf16.gmra.mxu2 %v7503_v27  ;;  %3185 = vmatmul.bf16.gmra.mxu0 %v7503_v27 }
 0x346   : > { %2969 = vmatmul.bf16.gmra.mxu3 %v7537_v41 }
 0x347   : > { %v2619_v4 = vpop.f32.mrf.mxu1 }
 0x348   : > { %v2759_v55 = vpop.f32.mrf.mxu2  ;;  %v7726_v63 = vadd.f32 %v2756_v38, %v2619_v4  ;;  %v7744_v4 = vsel %vm2396_vm8, %v2499_v45, %v7192_v57  ;;  %v5709_v57 = vld [vmem:[%s9011_s5 + $0x1f0] sm:$0xff]  ;;  %v5708_v45 = vld [vmem:[%s9011_s5 + $0x1e8] sm:$0xff] }
 0x349   : > { %v2804_v43 = vpop.f32.mrf.mxu3  ;;  %3885 = vmatpush.bf16.msra.mxu0 %v5709_v57  ;;  %v5717_v57 = vld [vmem:[%s9011_s5 + $0x230] sm:$0xff] }
 0x34a   : > { %v7728_v60 = vpop.f32.mrf.mxu0  ;;  %v7731_v27 = vadd.f32 %v2804_v43, %v7647_v36  ;;  %4073 = vmatpush.bf16.msra.mxu1 %v5717_v57  ;;  %v5703_v57 = vld [vmem:[%s9011_s5 + $0x1c0] sm:$0xff] }
 0x34c   : > { %9445 = vst [vmem:[#allocation30_spill] sm:$0xff] %v7731_v27 }
 0x34d   : > { %3886 = vmatpush.bf16.msra.mxu0 %v5708_v45 }
 0x34f   : > { %v2622_v24 = vpop.f32.mrf.mxu1 }
 0x350   : > { %v2761_v14 = vpop.f32.mrf.mxu2  ;;  %v7735_v29 = vadd.f32 %v2759_v55, %v2622_v24 }
 0x351   : > { %v2806_v22 = vpop.f32.mrf.mxu3 }
 0x352   : > { %v7737_v25 = vpop.f32.mrf.mxu0  ;;  %v7740_v38 = vadd.f32 %v2806_v22, %v7659_v1  ;;  %2661 = vmatmul.bf16.gmra.mxu1 %v7744_v4 }
 0x354   : > { %9446 = vst [vmem:[#allocation10_spill] sm:$0xff] %v7740_v38 }
 0x355   : > { %3190 = vmatmul.bf16.gmra.mxu0 %v7340_v28  ;;  %3515 = vmatmul.bf16.vlgmr.msrb.gmra.mxu2 %v7420_v19  ;;  %v5701_v19 = vld [vmem:[%s9011_s5 + $0x1b0] sm:$0xff] }
 0x356   : > { %2974 = vmatmul.bf16.gmra.mxu3 %v7544_v39 }
 0x357   : > { %v2624_v24 = vpop.f32.mrf.mxu1  ;;  %3694 = vmatpush.bf16.msra.mxu3 %v5701_v19 }
 0x358   : > { %v2764_v43 = vpop.f32.mrf.mxu2  ;;  %v7750_v44 = vadd.f32 %v2761_v14, %v2624_v24  ;;  %v5707_v14 = vld [vmem:[%s9011_s5 + $0x1e0] sm:$0xff] }
 0x359   : > { %v2809_v17 = vpop.f32.mrf.mxu3  ;;  %3887 = vmatpush.bf16.msra.mxu0 %v5707_v14 }
 0x35a   : > { %v7752_v33 = vpop.f32.mrf.mxu0  ;;  %v7755_v22 = vadd.f32 %v2809_v17, %v7675_v2 }
 0x35c   : > { %9447 = vst [vmem:[#allocation31_spill] sm:$0xff] %v7755_v22  ;;  %v9453_v22 = vld [vmem:[#allocation55_spill] sm:$0xff] }
 0x35f   : > { %v2627_v1 = vpop.f32.mrf.mxu1 }
 0x360   : > { %v2766_v36 = vpop.f32.mrf.mxu2  ;;  %v7766_v55 = vadd.f32 %v2764_v43, %v2627_v1  ;;  %v5706_v43 = vld [vmem:[%s9011_s5 + $0x1d8] sm:$0xff]  ;;  %v5705_v1 = vld [vmem:[%s9011_s5 + $0x1d0] sm:$0xff] }
 0x361   : > { %v2811_v2 = vpop.f32.mrf.mxu3  ;;  %3888 = vmatpush.bf16.msra.mxu0 %v5706_v43 }
 0x362   : > { %v7769_v10 = vadd.f32 %v2811_v2, %v7690_v48  ;;  %v7774_v24 = vpop.f32.mrf.mxu0  ;;  %3325 = vmatmul.bf16.vlgmr.msrb.gmra.mxu1 %v7219_v20  ;;  %v5704_v2 = vld [vmem:[%s9011_s5 + $0x1c8] sm:$0xff] }
 0x364   : > { %9448 = vst [vmem:[#allocation11_spill] sm:$0xff] %v7769_v10 }
 0x365   : > { %3195 = vmatmul.bf16.gmra.mxu0 %v7352_v37  ;;  %3520 = vmatmul.bf16.gmra.mxu2 %v7449_v18 }
 0x366   : > { %2979 = vmatmul.bf16.gmra.mxu3 %v7557_v35  ;;  %3889 = vmatpush.bf16.msra.mxu0 %v5705_v1 }
 0x367   : > { %v2629_v17 = vpop.f32.mrf.mxu1 }
 0x368   : > { %v2769_v48 = vpop.f32.mrf.mxu2  ;;  %v7786_v19 = vadd.f32 %v2766_v36, %v2629_v17 }
 0x369   : > { %v2814_v20 = vpop.f32.mrf.mxu3 }
 0x36a   : > { %v7789_v45 = vadd.f32 %v2814_v20, %v7703_v53  ;;  %v7797_v14 = vpop.f32.mrf.mxu0  ;;  %3890 = vmatpush.bf16.msra.mxu0 %v5704_v2 }
 0x36c   : > { %9449 = vst [vmem:[#allocation32_spill] sm:$0xff] %v7789_v45 }
 0x36e   : > { %3891 = vmatpush.bf16.msra.mxu0 %v5703_v57 }
 0x36f   : > { %v2632_v37 = vpop.f32.mrf.mxu1 }
 0x370   : > { %v2771_v43 = vpop.f32.mrf.mxu2  ;;  %v7799_v36 = vadd.f32 %v2769_v48, %v2632_v37 }
 0x371   : > { %v2816_v17 = vpop.f32.mrf.mxu3 }
 0x372   : > { %v7802_v53 = vadd.f32 %v2816_v17, %v7712_v6  ;;  %3330 = vmatmul.bf16.gmra.mxu1 %v7252_v12  ;;  %v7811_v20 = vpop.f32.mrf.mxu0  ;;  %v5700_v17 = vld [vmem:[%s9011_s5 + $0x1a8] sm:$0xff] }
 0x373   : > { %3695 = vmatpush.bf16.msra.mxu3 %v5700_v17 }
 0x374   : > { %9450 = vst [vmem:[#allocation50_spill] sm:$0xff] %v7802_v53 }
 0x375   : > { %3200 = vmatmul.bf16.gmra.mxu0 %v7379_v15  ;;  %3525 = vmatmul.bf16.gmra.mxu2 %v7480_v30 }
 0x376   : > { %2984 = vmatmul.bf16.gmra.mxu3 %v7560_v9 }
 0x377   : > { %v2634_v48 = vpop.f32.mrf.mxu1 }
 0x378   : > { %v2774_v37 = vpop.f32.mrf.mxu2  ;;  %v7813_v1 = vadd.f32 %v2771_v43, %v2634_v48  ;;  %v9451_v43 = vld [vmem:[#allocation53_spill] sm:$0xff] }
 0x379   : > { %v2945_v6 = vpop.f32.mrf.mxu3 }
 0x37a   : > { %v7816_v2 = vadd.f32 %v2945_v6, %v7634_v56  ;;  %v7821_v28 = vpop.f32.mrf.mxu0  ;;  %v5716_v6 = vld [vmem:[%s9011_s5 + $0x228] sm:$0xff] }
 0x37b   : > { %4074 = vmatpush.bf16.msra.mxu1 %v5716_v6 }
 0x37f   : > { %v2637_v15 = vpop.f32.mrf.mxu1 }
 0x380   : > { %v2776_v57 = vpop.f32.mrf.mxu2  ;;  %v7823_v30 = vadd.f32 %v2774_v37, %v2637_v15 }
 0x381   : > { %v2947_v53 = vpop.f32.mrf.mxu3 }
 0x382   : > { %v7826_v45 = vadd.f32 %v2947_v53, %v7645_v26  ;;  %3335 = vmatmul.bf16.gmra.mxu1 %v9451_v43  ;;  %v7840_v53 = vpop.f32.mrf.mxu0 }
 0x383   : > { %9452 = vst [vmem:[#allocation19_spill] sm:$0xff] %v7840_v53 }
 0x385   : > { %3205 = vmatmul.bf16.gmra.mxu0 %v7592_v34  ;;  %3530 = vmatmul.bf16.gmra.mxu2 %v7500_v23 }
 0x386   : > { %2989 = vmatmul.bf16.gmra.mxu3 %v7574_v7 }
 0x387   : > { %v2639_v48 = vpop.f32.mrf.mxu1 }
 0x388   : > { %v2779_v56 = vpop.f32.mrf.mxu2  ;;  %v7835_v15 = vadd.f32 %v2776_v57, %v2639_v48 }
 0x389   : > { %v2950_v37 = vpop.f32.mrf.mxu3 }
 0x38a   : > { %v7838_v26 = vadd.f32 %v2950_v37, %v7657_v16  ;;  %v7848_v38 = vpop.f32.mrf.mxu0 }
 0x38b   : > { %9454 = vst [vmem:[#allocation38_spill] sm:$0xff] %v7848_v38 }
 0x38f   : > { %v2642_v34 = vpop.f32.mrf.mxu1 }
 0x390   : > { %v2781_v17 = vpop.f32.mrf.mxu2  ;;  %v7842_v23 = vadd.f32 %v2779_v56, %v2642_v34 }
 0x391   : > { %v2952_v18 = vpop.f32.mrf.mxu3 }
 0x392   : > { %v7845_v10 = vadd.f32 %v2952_v18, %v7673_v32  ;;  %3340 = vmatmul.bf16.gmra.mxu1 %v9453_v22  ;;  %v5699_v18 = vld [vmem:[%s9011_s5 + $0x1a0] sm:$0xff]  ;;  %v7861_v32 = vpop.f32.mrf.mxu0 }
 0x393   : > { %3696 = vmatpush.bf16.msra.mxu3 %v5699_v18  ;;  %9455 = vst [vmem:[#allocation33_spill] sm:$0xff] %v7861_v32 }
 0x395   : > { %3535 = vmatmul.bf16.gmra.mxu2 %v7537_v41  ;;  %3892 = vmatmul.bf16.vlgmr.msra.gmra.mxu0 %v7252_v12 }
 0x396   : > { %2994 = vmatmul.bf16.gmra.mxu3 %v7579_v62 }
 0x397   : > { %v2644_v57 = vpop.f32.mrf.mxu1 }
 0x398   : > { %v2784_v16 = vpop.f32.mrf.mxu2  ;;  %v7853_v48 = vadd.f32 %v2781_v17, %v2644_v57  ;;  %v9456_v17 = vld [vmem:[#allocation23_spill] sm:$0xff] }
 0x399   : > { %v2955_v34 = vpop.f32.mrf.mxu3 }
 0x39a   : > { %v7856_v56 = vadd.f32 %v2955_v34, %v7688_v54  ;;  %v5715_v34 = vld [vmem:[%s9011_s5 + $0x220] sm:$0xff] }
 0x39b   : > { %4075 = vmatpush.bf16.msra.mxu1 %v5715_v34 }
 0x39f   : > { %v2647_v37 = vpop.f32.mrf.mxu1 }
 0x3a0   : > { %v2786_v6 = vpop.f32.mrf.mxu2  ;;  %v7863_v12 = vadd.f32 %v2784_v16, %v2647_v37  ;;  %v7875_v16 = vpop.f32.mrf.mxu0 }
 0x3a1   : > { %v2957_v41 = vpop.f32.mrf.mxu3 }
 0x3a2   : > { %v7866_v38 = vadd.f32 %v2957_v41, %v7701_v42  ;;  %3345 = vmatmul.bf16.gmra.mxu1 %v9456_v17 }
 0x3a5   : > { %3540 = vmatmul.bf16.gmra.mxu2 %v7544_v39  ;;  %3897 = vmatmul.bf16.gmra.mxu0 %v9451_v43 }
 0x3a6   : > { %2999 = vmatmul.bf16.gmra.mxu3 %v7587_v11 }
 0x3a7   : > { %v2649_v57 = vpop.f32.mrf.mxu1 }
 0x3a8   : > { %v2789_v54 = vpop.f32.mrf.mxu2  ;;  %v7877_v18 = vadd.f32 %v2786_v6, %v2649_v57  ;;  %v7887_v27 = vpop.f32.mrf.mxu0 }
 0x3a9   : > { %v2960_v41 = vpop.f32.mrf.mxu3  ;;  %9457 = vst [vmem:[#allocation51_spill] sm:$0xff] %v7887_v27 }
 0x3aa   : > { %v7880_v42 = vadd.f32 %v2960_v41, %v7710_v47 }
 0x3af   : > { %v2652_v39 = vpop.f32.mrf.mxu1 }
 0x3b0   : > { %v2791_v37 = vpop.f32.mrf.mxu2  ;;  %v7882_v43 = vadd.f32 %v2789_v54, %v2652_v39 }
 0x3b1   : > { %v2962_v32 = vpop.f32.mrf.mxu3 }
 0x3b2   : > { %v7885_v53 = vadd.f32 %v2962_v32, %v7726_v63  ;;  %3350 = vmatmul.bf16.gmra.mxu1 %v7372_v52  ;;  %v5698_v63 = vld [vmem:[%s9011_s5 + $0x198] sm:$0xff]  ;;  %v7901_v32 = vpop.f32.mrf.mxu0 }
 0x3b3   : > { %3697 = vmatpush.bf16.msra.mxu3 %v5698_v63  ;;  %9458 = vst [vmem:[#allocation34_spill] sm:$0xff] %v7901_v32 }
 0x3b5   : > { %3545 = vmatmul.bf16.gmra.mxu2 %v7557_v35  ;;  %3902 = vmatmul.bf16.gmra.mxu0 %v9453_v22 }
 0x3b6   : > { %3004 = vmatmul.bf16.gmra.mxu3 %v7602_v46 }
 0x3b7   : > { %v2654_v47 = vpop.f32.mrf.mxu1 }
 0x3b8   : > { %v7893_v6 = vadd.f32 %v2791_v37, %v2654_v47  ;;  %v2794_v39 = vpop.f32.mrf.mxu2 }
 0x3b9   : > { %v2965_v57 = vpop.f32.mrf.mxu3 }
 0x3ba   : > { %v7896_v54 = vadd.f32 %v2965_v57, %v7735_v29  ;;  %v7912_v29 = vpop.f32.mrf.mxu0  ;;  %v5714_v57 = vld [vmem:[%s9011_s5 + $0x218] sm:$0xff] }
 0x3bb   : > { %9459 = vst [vmem:[#allocation14_spill] sm:$0xff] %v7912_v29  ;;  %4076 = vmatpush.bf16.msra.mxu1 %v5714_v57 }
 0x3bf   : > { %v2657_v34 = vpop.f32.mrf.mxu1 }
 0x3c0   : > { %v7903_v41 = vadd.f32 %v2794_v39, %v2657_v34  ;;  %v2796_v37 = vpop.f32.mrf.mxu2 }
 0x3c1   : > { %v2967_v22 = vpop.f32.mrf.mxu3 }
 0x3c2   : > { %v7906_v35 = vadd.f32 %v2967_v22, %v7750_v44  ;;  %3355 = vmatmul.bf16.gmra.mxu1 %v7414_v51 }
 0x3c5   : > { %3550 = vmatmul.bf16.gmra.mxu2 %v7560_v9  ;;  %3907 = vmatmul.bf16.gmra.mxu0 %v9456_v17  ;;  %v5697_v17 = vld [vmem:[%s9011_s5 + $0x190] sm:$0xff]  ;;  %v7925_v9 = vpop.f32.mrf.mxu0 }
 0x3c6   : > { %3009 = vmatmul.bf16.gmra.mxu3 %v7607_v58  ;;  %9460 = vst [vmem:[#allocation24_spill] sm:$0xff] %v7925_v9 }
 0x3c7   : > { %v2659_v47 = vpop.f32.mrf.mxu1  ;;  %3698 = vmatpush.bf16.msra.mxu3 %v5697_v17 }
 0x3c8   : > { %v7917_v39 = vadd.f32 %v2796_v37, %v2659_v47  ;;  %v2799_v34 = vpop.f32.mrf.mxu2 }
 0x3c9   : > { %v2970_v44 = vpop.f32.mrf.mxu3 }
 0x3ca   : > { %v7920_v63 = vadd.f32 %v2970_v44, %v7766_v55  ;;  %v5696_v55 = vld [vmem:[%s9011_s5 + $0x188] sm:$0xff] }
 0x3cb   : > { %3699 = vmatpush.bf16.msra.mxu3 %v5696_v55 }
 0x3cf   : > { %v2662_v22 = vpop.f32.mrf.mxu1 }
 0x3d0   : > { %v7927_v29 = vadd.f32 %v2799_v34, %v2662_v22  ;;  %v2801_v37 = vpop.f32.mrf.mxu2  ;;  %v3211_v22 = vadd.f32 %v7636_v3, %v7816_v2  ;;  %v3212_v3 = vadd.f32 %v7649_v40, %v7826_v45  ;;  %v5713_v2 = vld [vmem:[%s9011_s5 + $0x210] sm:$0xff] }
 0x3d1   : > { %v2972_v32 = vpop.f32.mrf.mxu3  ;;  %4077 = vmatpush.bf16.msra.mxu1 %v5713_v2  ;;  %v3215_v2 = vadd.f32 %v7692_v49, %v7856_v56  ;;  %v3216_v49 = vadd.f32 %v7705_v5, %v7866_v38 }
 0x3d2   : > { %v7930_v27 = vadd.f32 %v2972_v32, %v7786_v19  ;;  %3360 = vmatmul.bf16.gmra.mxu1 %v7442_v21  ;;  %v5695_v19 = vld [vmem:[%s9011_s5 + $0x180] sm:$0xff]  ;;  %v5726_v32 = vld [vmem:[%s9014_s8 + $0x38] sm:$0xff] }
 0x3d3   : > { %4377 = vmatpush.bf16.msra.mxu2 %v5726_v32  ;;  %3700 = vmatpush.bf16.msra.mxu3 %v5695_v19 }
 0x3d5   : > { %3555 = vmatmul.bf16.gmra.mxu2 %v7574_v7  ;;  %3912 = vmatmul.bf16.gmra.mxu0 %v7372_v52  ;;  %v7950_v52 = vpop.f32.mrf.mxu0 }
 0x3d6   : > { %3014 = vmatmul.bf16.gmra.mxu3 %v7619_v61 }
 0x3d7   : > { %v2664_v47 = vpop.f32.mrf.mxu1 }
 0x3d8   : > { %v7945_v57 = vadd.f32 %v2801_v37, %v2664_v47 }
 0x3d9   : > { %v2975_v44 = vpop.f32.mrf.mxu3 }
 0x3da   : > { %v7948_v34 = vadd.f32 %v2975_v44, %v7799_v36 }
 0x3dd   : > { %v7960_v37 = vpop.f32.mrf.mxu0 }
 0x3df   : > { %v3326_v17 = vpop.f32.mrf.mxu1 }
 0x3e0   : > { %v7954_v7 = vadd.f32 %v3326_v17, %v3211_v22  ;;  %v3214_v17 = vadd.f32 %v7677_v13, %v7845_v10 }
 0x3e1   : > { %v2977_v55 = vpop.f32.mrf.mxu3 }
 0x3e2   : > { %v7957_v9 = vadd.f32 %v2977_v55, %v7813_v1  ;;  %3365 = vmatmul.bf16.gmra.mxu1 %v7464_v0 }
 0x3e5   : > { %3560 = vmatmul.bf16.gmra.mxu2 %v7579_v62  ;;  %3917 = vmatmul.bf16.gmra.mxu0 %v7414_v51  ;;  %v7975_v32 = vpop.f32.mrf.mxu0  ;;  %v3213_v51 = vadd.f32 %v7661_v8, %v7838_v26  ;;  %v5725_v8 = vld [vmem:[%s9014_s8 + $0x30] sm:$0xff] }
 0x3e6   : > { %3019 = vmatmul.bf16.gmra.mxu3 %v7622_v31  ;;  %4378 = vmatpush.bf16.msra.mxu2 %v5725_v8  ;;  %v9463_v8 = vld [vmem:[#allocation5_spill] sm:$0xff] }
 0x3e7   : > { %v3328_v36 = vpop.f32.mrf.mxu1 }
 0x3e8   : > { %v7970_v47 = vadd.f32 %v3328_v36, %v3212_v3 }
 0x3e9   : > { %v2980_v1 = vpop.f32.mrf.mxu3 }
 0x3ea   : > { %v7973_v19 = vadd.f32 %v2980_v1, %v7823_v30  ;;  %v9461_v30 = vld [vmem:[#allocation9_spill] sm:$0xff] }
 0x3ed   : > { %v7993_v26 = vpop.f32.mrf.mxu0 }
 0x3ef   : > { %v3331_v44 = vpop.f32.mrf.mxu1 }
 0x3f0   : > { %v7979_v40 = vadd.f32 %v3331_v44, %v3213_v51 }
 0x3f1   : > { %v2982_v22 = vpop.f32.mrf.mxu3 }
 0x3f2   : > { %v7982_v45 = vadd.f32 %v2982_v22, %v7835_v15  ;;  %3370 = vmatmul.bf16.gmra.mxu1 %v7496_v50  ;;  %v5712_v22 = vld [vmem:[%s9011_s5 + $0x208] sm:$0xff] }
 0x3f3   : > { %4078 = vmatpush.bf16.msra.mxu1 %v5712_v22 }
 0x3f5   : > { %3565 = vmatmul.bf16.gmra.mxu2 %v7587_v11  ;;  %3922 = vmatmul.bf16.gmra.mxu0 %v7442_v21  ;;  %v8000_v21 = vpop.f32.mrf.mxu2  ;;  %v8009_v44 = vpop.f32.mrf.mxu0 }
 0x3f6   : > { %3701 = vmatmul.bf16.vlgmr.msra.gmra.mxu3 %v9461_v30 }
 0x3f7   : > { %v3333_v55 = vpop.f32.mrf.mxu1 }
 0x3f8   : > { %v7995_v3 = vadd.f32 %v3333_v55, %v3214_v17 }
 0x3f9   : > { %v2985_v15 = vpop.f32.mrf.mxu3 }
 0x3fa   : > { %v7998_v36 = vadd.f32 %v2985_v15, %v7842_v23  ;;  %v9462_v23 = vld [vmem:[#allocation52_spill] sm:$0xff]  ;;  %v3217_v15 = vadd.f32 %v9463_v8, %v7880_v42  ;;  %v3218_v42 = vadd.f32 %v7728_v60, %v7885_v53  ;;  %v3219_v8 = vadd.f32 %v7737_v25, %v7896_v54 }
 0x3fb   : > { %v3220_v25 = vadd.f32 %v7752_v33, %v7906_v35 }
 0x3ff   : > { %v3336_v13 = vpop.f32.mrf.mxu1 }
 0x400   : > { %v8004_v1 = vadd.f32 %v3336_v13, %v3215_v2 }
 0x401   : > { %v2987_v10 = vpop.f32.mrf.mxu3 }
 0x402   : > { %v8007_v51 = vadd.f32 %v2987_v10, %v7853_v48  ;;  %3375 = vmatmul.bf16.gmra.mxu1 %v7528_v59  ;;  %v8020_v48 = vpop.f32.mrf.mxu2 }
 0x405   : > { %3570 = vmatmul.bf16.gmra.mxu2 %v7602_v46  ;;  %3927 = vmatmul.bf16.gmra.mxu0 %v7464_v0  ;;  %v8027_v0 = vpop.f32.mrf.mxu0 }
 0x406   : > { %3706 = vmatmul.bf16.gmra.mxu3 %v9462_v23 }
 0x407   : > { %v3338_v56 = vpop.f32.mrf.mxu1 }
 0x408   : > { %v8022_v17 = vadd.f32 %v3338_v56, %v3216_v49 }
 0x409   : > { %v2990_v30 = vpop.f32.mrf.mxu3 }
 0x40a   : > { %v8025_v55 = vadd.f32 %v2990_v30, %v7863_v12  ;;  %v8036_v10 = vpop.f32.mrf.mxu2  ;;  %v9464_v12 = vld [vmem:[#allocation54_spill] sm:$0xff] }
 0x40d   : > { %v8042_v23 = vpop.f32.mrf.mxu0 }
 0x40f   : > { %v3341_v5 = vpop.f32.mrf.mxu1 }
 0x410   : > { %v8031_v2 = vadd.f32 %v3341_v5, %v3217_v15 }
 0x411   : > { %v2992_v38 = vpop.f32.mrf.mxu3 }
 0x412   : > { %v8034_v13 = vadd.f32 %v2992_v38, %v7877_v18  ;;  %3380 = vmatmul.bf16.gmra.mxu1 %v7744_v4  ;;  %v5724_v18 = vld [vmem:[%s9014_s8 + $0x28] sm:$0xff] }
 0x413   : > { %4379 = vmatpush.bf16.msra.mxu2 %v5724_v18 }
 0x415   : > { %3575 = vmatmul.bf16.gmra.mxu2 %v7607_v58  ;;  %3932 = vmatmul.bf16.gmra.mxu0 %v7496_v50  ;;  %v8054_v50 = vpop.f32.mrf.mxu2  ;;  %v8058_v5 = vpop.f32.mrf.mxu0 }
 0x416   : > { %3711 = vmatmul.bf16.gmra.mxu3 %v9464_v12  ;;  %v9467_v12 = vld [vmem:[#allocation8_spill] sm:$0xff] }
 0x417   : > { %v3343_v49 = vpop.f32.mrf.mxu1 }
 0x418   : > { %v8049_v22 = vadd.f32 %v3343_v49, %v3218_v42  ;;  %v5711_v49 = vld [vmem:[%s9011_s5 + $0x200] sm:$0xff] }
 0x419   : > { %v2995_v56 = vpop.f32.mrf.mxu3  ;;  %4079 = vmatpush.bf16.msra.mxu1 %v5711_v49  ;;  %v5723_v49 = vld [vmem:[%s9014_s8 + $0x20] sm:$0xff] }
 0x41a   : > { %9465 = vst [vmem:[#allocation3_spill] sm:$0xff] %v8049_v22  ;;  %v8052_v30 = vadd.f32 %v2995_v56, %v7882_v43  ;;  %v9468_v43 = vld [vmem:[#allocation56_spill] sm:$0xff]  ;;  %4380 = vmatpush.bf16.msra.mxu2 %v5723_v49  ;;  %v9478_v49 = vld [vmem:[#allocation61_spill] sm:$0xff] }
 0x41b   : > { %v9495_v22 = vld [vmem:[#allocation4_spill] sm:$0xff] }
 0x41d   : > { %v8069_v42 = vpop.f32.mrf.mxu2 }
 0x41f   : > { %v3346_v15 = vpop.f32.mrf.mxu1 }
 0x420   : > { %v8060_v53 = vadd.f32 %v3346_v15, %v3219_v8  ;;  %v3221_v8 = vadd.f32 %v7774_v24, %v7920_v63  ;;  %v3222_v24 = vadd.f32 %v7797_v14, %v7930_v27 }
 0x421   : > { %v2997_v60 = vpop.f32.mrf.mxu3 }
 0x422   : > { %9466 = vst [vmem:[#allocation35_spill] sm:$0xff] %v8060_v53  ;;  %v8063_v38 = vadd.f32 %v2997_v60, %v7893_v6  ;;  %3385 = vmatmul.bf16.gmra.mxu1 %v9467_v12 }
 0x425   : > { %3580 = vmatmul.bf16.gmra.mxu2 %v7619_v61  ;;  %3937 = vmatmul.bf16.gmra.mxu0 %v7528_v59  ;;  %v8081_v59 = vpop.f32.mrf.mxu0  ;;  %v8085_v60 = vpop.f32.mrf.mxu2 }
 0x426   : > { %3716 = vmatmul.bf16.gmra.mxu3 %v9468_v43 }
 0x427   : > { %v3348_v54 = vpop.f32.mrf.mxu1 }
 0x428   : > { %v8076_v18 = vadd.f32 %v3348_v54, %v3220_v25  ;;  %v9471_v25 = vld [vmem:[#allocation39_spill] sm:$0xff] }
 0x429   : > { %v3000_v6 = vpop.f32.mrf.mxu3 }
 0x42a   : > { %9469 = vst [vmem:[#allocation21_spill] sm:$0xff] %v8076_v18  ;;  %v8079_v56 = vadd.f32 %v3000_v6, %v7903_v41  ;;  %v9472_v41 = vld [vmem:[#allocation59_spill] sm:$0xff] }
 0x42d   : > { %v8093_v54 = vpop.f32.mrf.mxu0 }
 0x42f   : > { %v3351_v15 = vpop.f32.mrf.mxu1 }
 0x430   : > { %v8087_v33 = vadd.f32 %v3351_v15, %v3221_v8  ;;  %v8108_v15 = vpop.f32.mrf.mxu2 }
 0x431   : > { %v3002_v35 = vpop.f32.mrf.mxu3 }
 0x432   : > { %9470 = vst [vmem:[#allocation36_spill] sm:$0xff] %v8087_v33  ;;  %v8090_v43 = vadd.f32 %v3002_v35, %v7917_v39  ;;  %3390 = vmatmul.bf16.gmra.mxu1 %v9471_v25  ;;  %v3223_v35 = vadd.f32 %v7811_v20, %v7948_v34  ;;  %v3224_v20 = vadd.f32 %v7821_v28, %v7957_v9  ;;  %v9485_v28 = vld [vmem:[#allocation19_spill] sm:$0xff] }
 0x433   : > { %v3225_v9 = vadd.f32 %v9485_v28, %v7973_v19 }
 0x435   : > { %3585 = vmatmul.bf16.gmra.mxu2 %v7622_v31  ;;  %3942 = vmatmul.bf16.gmra.mxu0 %v7744_v4  ;;  %v8110_v4 = vpop.f32.mrf.mxu0 }
 0x436   : > { %3721 = vmatmul.bf16.gmra.mxu3 %v9472_v41 }
 0x437   : > { %v3353_v63 = vpop.f32.mrf.mxu1 }
 0x438   : > { %v8103_v6 = vadd.f32 %v3353_v63, %v3222_v24  ;;  %v9475_v24 = vld [vmem:[#allocation40_spill] sm:$0xff]  ;;  %v8120_v63 = vpop.f32.mrf.mxu2 }
 0x439   : > { %v3005_v39 = vpop.f32.mrf.mxu3  ;;  %9476 = vst [vmem:[#allocation55_spill] sm:$0xff] %v8120_v63 }
 0x43a   : > { %9473 = vst [vmem:[#allocation7_spill] sm:$0xff] %v8103_v6  ;;  %v8106_v8 = vadd.f32 %v3005_v39, %v7927_v29  ;;  %v9477_v29 = vld [vmem:[#allocation29_spill] sm:$0xff]  ;;  %v9482_v6 = vld [vmem:[#allocation30_spill] sm:$0xff] }
 0x43d   : > { %v8127_v39 = vpop.f32.mrf.mxu0 }
 0x43f   : > { %v3356_v27 = vpop.f32.mrf.mxu1 }
 0x440   : > { %v8114_v41 = vadd.f32 %v3356_v27, %v3223_v35 }
 0x441   : > { %v3007_v14 = vpop.f32.mrf.mxu3 }
 0x442   : > { %9474 = vst [vmem:[#allocation53_spill] sm:$0xff] %v8114_v41  ;;  %v8117_v31 = vadd.f32 %v3007_v14, %v7945_v57  ;;  %3395 = vmatmul.bf16.gmra.mxu1 %v9475_v24  ;;  %v9480_v57 = vld [vmem:[#allocation15_spill] sm:$0xff] }
 0x443   : > { %v2151_v41 = vsel %vm7178_vm7, %v9480_v57, 0 }
 0x444   : > { %v3264_v61 = vshll.u32 %v2151_v41, 16 }
 0x445   : > { %3590 = vmatmul.bf16.gmra.mxu2 %v9477_v29  ;;  %3947 = vmatmul.bf16.gmra.mxu0 %v9467_v12  ;;  %v9483_v29 = vld [vmem:[#allocation16_spill] sm:$0xff] }
 0x446   : > { %3726 = vmatmul.bf16.gmra.mxu3 %v9478_v49  ;;  %v3260_v12 = vshrl.u32 %v9483_v29, 16  ;;  %v9484_v49 = vld [vmem:[#allocation18_spill] sm:$0xff]  ;;  %v3266_v58 = vrot.slane %v3264_v61, 1  ;;  %v9488_v29 = vld [vmem:[#allocation13_spill] sm:$0xff] }
 0x447   : > { %v3358_v34 = vpop.f32.mrf.mxu1  ;;  %v5722_v61 = vld [vmem:[%s9014_s8 + $0x18] sm:$0xff] }
 0x448   : > { %v8129_v27 = vadd.f32 %v3358_v34, %v3224_v20  ;;  %v3262_v18 = vor.u32 %v3260_v12, %v9484_v49  ;;  %v9487_v34 = vld [vmem:[#allocation10_spill] sm:$0xff]  ;;  %v9491_v49 = vld [vmem:[#allocation31_spill] sm:$0xff]  ;;  %4381 = vmatpush.bf16.msra.mxu2 %v5722_v61  ;;  %v3228_v61 = vadd.f32 %v7875_v16, %v8007_v51  ;;  %v9501_v16 = vld [vmem:[#allocation44_spill] sm:$0xff] }
 0x449   : > { %v3010_v35 = vpop.f32.mrf.mxu3  ;;  %v9502_v51 = vld [vmem:[#allocation41_spill] sm:$0xff] }
 0x44a   : > { %9479 = vst [vmem:[#allocation23_spill] sm:$0xff] %v8129_v27  ;;  %v8135_v33 = vadd.f32 %v3010_v35, %v9482_v6  ;;  %v3267_v57 = vsel %vm2396_vm8, %v3262_v18, %v3266_v58  ;;  %v8147_v6 = vpop.f32.mrf.mxu0  ;;  %v9489_v35 = vld [vmem:[#allocation38_spill] sm:$0xff] }
 0x44b   : > { %v3226_v19 = vadd.f32 %v9489_v35, %v7982_v45  ;;  %v9494_v35 = vld [vmem:[#allocation11_spill] sm:$0xff] }
 0x44f   : > { %v3361_v53 = vpop.f32.mrf.mxu1 }
 0x450   : > { %v8141_v20 = vadd.f32 %v3361_v53, %v3225_v9 }
 0x451   : > { %v3012_v63 = vpop.f32.mrf.mxu3 }
 0x452   : > { %9486 = vst [vmem:[#allocation9_spill] sm:$0xff] %v8141_v20  ;;  %v8144_v27 = vadd.f32 %v3012_v63, %v9487_v34  ;;  %3400 = vmatmul.bf16.gmra.mxu1 %v3267_v57  ;;  %v8161_v28 = vpop.f32.mrf.mxu0 }
 0x455   : > { %3952 = vmatmul.bf16.gmra.mxu0 %v9471_v25  ;;  %v9492_v25 = vld [vmem:[#allocation33_spill] sm:$0xff] }
 0x456   : > { %3731 = vmatmul.bf16.gmra.mxu3 %v9488_v29  ;;  %v3227_v9 = vadd.f32 %v9492_v25, %v7998_v36  ;;  %v9497_v25 = vld [vmem:[#allocation32_spill] sm:$0xff] }
 0x457   : > { %v3363_v12 = vpop.f32.mrf.mxu1 }
 0x458   : > { %v8156_v63 = vadd.f32 %v3363_v12, %v3226_v19  ;;  %v9496_v19 = vld [vmem:[#allocation25_spill] sm:$0xff] }
 0x459   : > { %v3015_v53 = vpop.f32.mrf.mxu3 }
 0x45a   : > { %9490 = vst [vmem:[#allocation52_spill] sm:$0xff] %v8156_v63  ;;  %v8159_v18 = vadd.f32 %v3015_v53, %v9491_v49  ;;  %v8173_v12 = vpop.f32.mrf.mxu0 }
 0x45f   : > { %v3366_v34 = vpop.f32.mrf.mxu1 }
 0x460   : > { %v8165_v45 = vadd.f32 %v3366_v34, %v3227_v9  ;;  %v9498_v34 = vld [vmem:[#allocation51_spill] sm:$0xff] }
 0x461   : > { %v3017_v29 = vpop.f32.mrf.mxu3 }
 0x462   : > { %9493 = vst [vmem:[#allocation5_spill] sm:$0xff] %v8165_v45  ;;  %v8168_v20 = vadd.f32 %v3017_v29, %v9494_v35  ;;  %4080 = vmatmul.bf16.vlgmr.msra.gmra.mxu1 %v9495_v22  ;;  %v3229_v29 = vadd.f32 %v9498_v34, %v8025_v55  ;;  %v8184_v35 = vpop.f32.mrf.mxu0  ;;  %v9500_v45 = vld [vmem:[#allocation50_spill] sm:$0xff]  ;;  %v5721_v55 = vld [vmem:[%s9014_s8 + $0x10] sm:$0xff] }
 0x463   : > { %4382 = vmatpush.bf16.msra.mxu2 %v5721_v55  ;;  %v8214_v55 = vpop.f32.mrf.mxu2 }
 0x465   : > { %3957 = vmatmul.bf16.gmra.mxu0 %v9475_v24 }
 0x466   : > { %3736 = vmatmul.bf16.gmra.mxu3 %v9496_v19 }
 0x467   : > { %v3368_v53 = vpop.f32.mrf.mxu1 }
 0x468   : > { %v8177_v49 = vadd.f32 %v3368_v53, %v3228_v61  ;;  %v9503_v61 = vld [vmem:[#allocation34_spill] sm:$0xff] }
 0x469   : > { %v3020_v36 = vpop.f32.mrf.mxu3  ;;  %v3230_v53 = vadd.f32 %v9503_v61, %v8034_v13  ;;  %v9506_v13 = vld [vmem:[#allocation17_spill] sm:$0xff] }
 0x46a   : > { %v8180_v9 = vadd.f32 %v3020_v36, %v9497_v25  ;;  %v8200_v34 = vpop.f32.mrf.mxu0 }
 0x46f   : > { %v3371_v22 = vpop.f32.mrf.mxu1 }
 0x470   : > { %v8186_v19 = vadd.f32 %v3371_v22, %v3229_v29  ;;  %v9504_v29 = vld [vmem:[#allocation14_spill] sm:$0xff] }
 0x471   : > { %v3022_v24 = vpop.f32.mrf.mxu3  ;;  %v3231_v22 = vadd.f32 %v9504_v29, %v8052_v30 }
 0x472   : > { %9499 = vst [vmem:[#allocation54_spill] sm:$0xff] %v8186_v19  ;;  %v8189_v63 = vadd.f32 %v3022_v24, %v9500_v45  ;;  %4085 = vmatmul.bf16.gmra.mxu1 %v9501_v16  ;;  %v3831_v45 = vshrl.u32 %v2151_v41, 16  ;;  %v8209_v19 = vpop.f32.mrf.mxu0 }
 0x475   : > { %3962 = vmatmul.bf16.gmra.mxu0 %v3267_v57  ;;  %v3833_v57 = vor.u32 %v3831_v45, %v3266_v58  ;;  %v3233_v45 = vadd.f32 %v7950_v52, %v8079_v56 }
 0x476   : > { %3741 = vmatmul.bf16.gmra.mxu3 %v9502_v51  ;;  %v9505_v51 = vld [vmem:[#allocation26_spill] sm:$0xff] }
 0x477   : > { %v3373_v36 = vpop.f32.mrf.mxu1  ;;  %v3834_v61 = vsel %vm2396_vm8, %v3833_v57, %v9506_v13  ;;  %v8222_v57 = vpop.f32.mrf.mxu2 }
 0x478   : > { %v8198_v25 = vadd.f32 %v3373_v36, %v3230_v53  ;;  %v9507_v53 = vld [vmem:[#allocation12_spill] sm:$0xff] }
 0x479   : > { %v9508_v36 = vld [vmem:[#allocation24_spill] sm:$0xff]  ;;  %v3702_v52 = vpop.f32.mrf.mxu3 }
 0x47a   : > { %v3232_v41 = vadd.f32 %v9508_v36, %v8063_v38  ;;  %v3234_v38 = vadd.f32 %v7960_v37, %v8090_v43  ;;  %v3235_v36 = vadd.f32 %v7975_v32, %v8106_v8  ;;  %v3237_v32 = vadd.f32 %v8009_v44, %v8135_v33 }
 0x47f   : > { %v3376_v24 = vpop.f32.mrf.mxu1  ;;  %v8233_v56 = vpop.f32.mrf.mxu2 }
 0x480   : > { %v8204_v16 = vadd.f32 %v3376_v24, %v3231_v22  ;;  %v9509_v24 = vld [vmem:[#allocation42_spill] sm:$0xff] }
 0x481   : > { %v3704_v37 = vpop.f32.mrf.mxu3 }
 0x482   : > { %4090 = vmatmul.bf16.gmra.mxu1 %v9505_v51  ;;  %v9510_v51 = vld [vmem:[#allocation47_spill] sm:$0xff] }
 0x485   : > { %3967 = vmatmul.bf16.gmra.mxu0 %v3834_v61  ;;  %v5720_v61 = vld [vmem:[%s9014_s8 + $0x8] sm:$0xff] }
 0x486   : > { %3746 = vmatmul.bf16.gmra.mxu3 %v9507_v53  ;;  %4383 = vmatpush.bf16.msra.mxu2 %v5720_v61 }
 0x487   : > { %v3378_v30 = vpop.f32.mrf.mxu1  ;;  %v8240_v43 = vpop.f32.mrf.mxu2 }
 0x488   : > { %v8216_v58 = vadd.f32 %v3378_v30, %v3232_v41 }
 0x48f   : > { %v3381_v29 = vpop.f32.mrf.mxu1  ;;  %v8249_v8 = vpop.f32.mrf.mxu2 }
 0x490   : > { %v8220_v22 = vadd.f32 %v3381_v29, %v3233_v45  ;;  %v9511_v45 = vld [vmem:[#allocation45_spill] sm:$0xff] }
 0x491   : > { %v9512_v29 = vld [vmem:[#allocation57_spill] sm:$0xff] }
 0x492   : > { %4095 = vmatmul.bf16.gmra.mxu1 %v9509_v24  ;;  %v3236_v24 = vadd.f32 %v7993_v26, %v8117_v31  ;;  %v9515_v31 = vld [vmem:[#allocation58_spill] sm:$0xff]  ;;  %v3238_v26 = vadd.f32 %v8027_v0, %v8144_v27  ;;  %v3240_v0 = vadd.f32 %v8058_v5, %v8168_v20  ;;  %v3242_v5 = vadd.f32 %v8093_v54, %v8189_v63 }
 0x496   : > { %3751 = vmatmul.bf16.gmra.mxu3 %v9510_v51 }
 0x497   : > { %v3383_v13 = vpop.f32.mrf.mxu1  ;;  %v8262_v33 = vpop.f32.mrf.mxu2 }
 0x498   : > { %v8231_v53 = vadd.f32 %v3383_v13, %v3234_v38  ;;  %v3707_v13 = vpop.f32.mrf.mxu3 }
 0x49f   : > { %v3386_v41 = vpop.f32.mrf.mxu1 }
 0x4a0   : > { %v8237_v30 = vadd.f32 %v3386_v41, %v3235_v36  ;;  %v9514_v41 = vld [vmem:[#allocation27_spill] sm:$0xff] }
 0x4a2   : > { %4100 = vmatmul.bf16.gmra.mxu1 %v9511_v45  ;;  %v5719_v45 = vld [vmem:[%s9014_s8] sm:$0xff] }
 0x4a3   : > { %4384 = vmatpush.bf16.msra.mxu2 %v5719_v45  ;;  %v9517_v45 = vld [vmem:[#allocation48_spill] sm:$0xff] }
 0x4a6   : > { %3756 = vmatmul.bf16.gmra.mxu3 %v9512_v29  ;;  %v3709_v29 = vpop.f32.mrf.mxu3 }
 0x4a7   : > { %v3388_v51 = vpop.f32.mrf.mxu1 }
 0x4a8   : > { %v8245_v38 = vadd.f32 %v3388_v51, %v3236_v24  ;;  %v3239_v51 = vadd.f32 %v8042_v23, %v8159_v18  ;;  %v3241_v18 = vadd.f32 %v8081_v59, %v8180_v9  ;;  %v3596_v59 = vadd.f32 %v8000_v21, %v7954_v7  ;;  %v9522_v7 = vld [vmem:[#allocation20_spill] sm:$0xff] }
 0x4a9   : > { %v1940_v21 = vsel %vm7178_vm7, %v9522_v7, 0  ;;  %v8330_v7 = vpop.f32.mrf.mxu0 }
 0x4aa   : > { %v3782_v9 = vadd.f32 %v3702_v52, %v3596_v59 }
 0x4af   : > { %v3391_v61 = vpop.f32.mrf.mxu1 }
 0x4b0   : > { %v8251_v36 = vadd.f32 %v3391_v61, %v3237_v32 }
 0x4b2   : > { %9513 = vst [vmem:[#allocation8_spill] sm:$0xff] %v8251_v36  ;;  %4105 = vmatmul.bf16.gmra.mxu1 %v9514_v41  ;;  %v8268_v41 = vpop.f32.mrf.mxu3  ;;  %v9518_v36 = vld [vmem:[#allocation60_spill] sm:$0xff] }
 0x4b6   : > { %3761 = vmatmul.bf16.gmra.mxu3 %v9515_v31  ;;  %v8271_v31 = vpop.f32.mrf.mxu2 }
 0x4b7   : > { %v3393_v24 = vpop.f32.mrf.mxu1 }
 0x4b8   : > { %v8260_v44 = vadd.f32 %v3393_v24, %v3238_v26 }
 0x4ba   : > { %v8278_v24 = vpop.f32.mrf.mxu3 }
 0x4be   : > { %v8280_v23 = vpop.f32.mrf.mxu2 }
 0x4bf   : > { %v3396_v32 = vpop.f32.mrf.mxu1 }
 0x4c0   : > { %v8266_v61 = vadd.f32 %v3396_v32, %v3239_v51 }
 0x4c2   : > { %9516 = vst [vmem:[#allocation56_spill] sm:$0xff] %v8266_v61  ;;  %4110 = vmatmul.bf16.gmra.mxu1 %v9517_v45  ;;  %v9520_v45 = vld [vmem:[#allocation46_spill] sm:$0xff]  ;;  %v8287_v61 = vpop.f32.mrf.mxu3 }
 0x4c6   : > { %3766 = vmatmul.bf16.gmra.mxu3 %v9518_v36  ;;  %v9521_v36 = vld [vmem:[#allocation43_spill] sm:$0xff]  ;;  %v8292_v20 = vpop.f32.mrf.mxu2 }
 0x4c7   : > { %v3398_v27 = vpop.f32.mrf.mxu1 }
 0x4c8   : > { %v8276_v26 = vadd.f32 %v3398_v27, %v3240_v0 }
 0x4cf   : > { %v3401_v51 = vpop.f32.mrf.mxu1 }
 0x4d0   : > { %v8284_v32 = vadd.f32 %v3401_v51, %v3241_v18  ;;  %v8298_v18 = vpop.f32.mrf.mxu3 }
 0x4d2   : > { %9519 = vst [vmem:[#allocation39_spill] sm:$0xff] %v8284_v32  ;;  %4115 = vmatmul.bf16.gmra.mxu1 %v9520_v45  ;;  %v3597_v45 = vadd.f32 %v8020_v48, %v7970_v47  ;;  %v8303_v32 = vpop.f32.mrf.mxu2  ;;  %v8318_v48 = vld [vmem:[%s9013_s7] ss:$0 sm:$0xff] }
 0x4d4   : > { %v3783_v54 = vadd.f32 %v3704_v37, %v3597_v45 }
 0x4d6   : > { %3771 = vmatmul.bf16.gmra.mxu3 %v9521_v36  ;;  %v3973_v36 = vadd.f32 %v8110_v4, %v3782_v9  ;;  %v3974_v4 = vadd.f32 %v8127_v39, %v3783_v54  ;;  %v3599_v54 = vadd.f32 %v8054_v50, %v7995_v3  ;;  %v3600_v3 = vadd.f32 %v8069_v42, %v8004_v1 }
 0x4d7   : > { %v3403_v0 = vpop.f32.mrf.mxu1 }
 0x4d8   : > { %v8294_v27 = vadd.f32 %v3403_v0, %v3242_v5  ;;  %v8308_v5 = vld [vmem:[%s9012_s6] ss:$0 sm:$0xff]  ;;  %v8321_v0 = vpop.f32.mrf.mxu3 }
 0x4da   : > { %v8327_v9 = vpop.f32.mrf.mxu2 }
 0x4df   : > { %v4081_v51 = vpop.f32.mrf.mxu1 }
 0x4e0   : > { %v4161_v63 = vadd.f32 %v4081_v51, %v3973_v36 }
 0x4e2   : > { %4120 = vmatmul.bf16.gmra.mxu1 %v7579_v62  ;;  %v4197_v47 = vmul.f32 %v8308_v5, %v4161_v63  ;;  %v3598_v62 = vadd.f32 %v8036_v10, %v7979_v40  ;;  %v3785_v10 = vadd.f32 %v3709_v29, %v3599_v54 }
 0x4e4   : > { %v4233_v14 = vadd.f32 %v8318_v48, %v4197_v47  ;;  %v3784_v51 = vadd.f32 %v3707_v13, %v3598_v62  ;;  %v8338_v13 = vpop.f32.mrf.mxu2 }
 0x4e6   : > { %3776 = vmatmul.bf16.gmra.mxu3 %v1940_v21  ;;  %v4265_v36 = vmax.f32 %v4233_v14, 0.0  ;;  %v3975_v40 = vadd.f32 %v8147_v6, %v3784_v51  ;;  %v3786_v6 = vadd.f32 %v8268_v41, %v3600_v3 }
 0x4e7   : > { %v4083_v52 = vpop.f32.mrf.mxu1 }
 0x4e8   : > { %v4162_v37 = vadd.f32 %v4083_v52, %v3974_v4  ;;  %v8336_v4 = vpop.f32.mrf.mxu3  ;;  %v3977_v1 = vadd.f32 %v8173_v12, %v3786_v6  ;;  %v9524_v6 = vld [vmem:[#allocation55_spill] sm:$0xff] }
 0x4ea   : > { %v4198_v59 = vmul.f32 %v8308_v5, %v4162_v37  ;;  %v3976_v37 = vadd.f32 %v8161_v28, %v3785_v10 }
 0x4ec   : > { %v4234_v45 = vadd.f32 %v8318_v48, %v4198_v59  ;;  %v8342_v59 = vpop.f32.mrf.mxu0  ;;  %v8352_v28 = vpop.f32.mrf.mxu2 }
 0x4ee   : > { %v4266_v63 = vmax.f32 %v4234_v45, 0.0 }
 0x4ef   : > { %v4086_v39 = vpop.f32.mrf.mxu1 }
 0x4f0   : > { %v4297_v21 = vpack.c.bf16 %v4266_v63, %v4265_v36  ;;  %v4163_v47 = vadd.f32 %v4086_v39, %v3975_v40  ;;  %v8350_v51 = vpop.f32.mrf.mxu3  ;;  %v3601_v39 = vadd.f32 %v8085_v60, %v8022_v17  ;;  %v3602_v60 = vadd.f32 %v8108_v15, %v8031_v2 }
 0x4f2   : > { %4125 = vmatmul.bf16.gmra.mxu1 %v7587_v11  ;;  %4385 = vmatmul.bf16.vlgmr.msra.gmra.mxu2 %v4297_v21  ;;  %v4199_v52 = vmul.f32 %v8308_v5, %v4163_v47  ;;  %v3787_v54 = vadd.f32 %v8278_v24, %v3601_v39  ;;  %v3788_v24 = vadd.f32 %v8287_v61, %v3602_v60  ;;  %v9525_v39 = vld [vmem:[#allocation37_spill] sm:$0xff] }
 0x4f4   : > { %v4235_v50 = vadd.f32 %v8318_v48, %v4199_v52  ;;  %v8359_v41 = vpop.f32.mrf.mxu0  ;;  %v3978_v10 = vadd.f32 %v8184_v35, %v3787_v54  ;;  %v8365_v17 = vpop.f32.mrf.mxu2 }
 0x4f6   : > { %v4267_v45 = vmax.f32 %v4235_v50, 0.0 }
 0x4f7   : > { %v4088_v62 = vpop.f32.mrf.mxu1 }
 0x4f8   : > { %v4164_v14 = vadd.f32 %v4088_v62, %v3976_v37  ;;  %v8363_v47 = vpop.f32.mrf.mxu3 }
 0x4fa   : > { %v4200_v11 = vmul.f32 %v8308_v5, %v4164_v14 }
 0x4fc   : > { %v4236_v29 = vadd.f32 %v8318_v48, %v4200_v11  ;;  %v3920_v14 = vpop.f32.mrf.mxu0  ;;  %v9523_v11 = vld [vmem:[#allocation3_spill] sm:$0xff]  ;;  %v8380_v61 = vpop.f32.mrf.mxu2 }
 0x4fe   : > { %v4268_v36 = vmax.f32 %v4236_v29, 0.0  ;;  %v3603_v29 = vadd.f32 %v9524_v6, %v9523_v11 }
 0x4ff   : > { %v4091_v63 = vpop.f32.mrf.mxu1 }
 0x500   : > { %v4298_v42 = vpack.c.bf16 %v4268_v36, %v4267_v45  ;;  %v4165_v21 = vadd.f32 %v4091_v63, %v3977_v1  ;;  %v3979_v45 = vadd.f32 %v8200_v34, %v3788_v24  ;;  %v8376_v63 = vpop.f32.mrf.mxu3  ;;  %v3789_v2 = vadd.f32 %v8298_v18, %v3603_v29 }
 0x502   : > { %4130 = vmatmul.bf16.gmra.mxu1 %v7602_v46  ;;  %4390 = vmatmul.bf16.gmra.mxu2 %v4298_v42  ;;  %v4201_v40 = vmul.f32 %v8308_v5, %v4165_v21  ;;  %v3980_v42 = vadd.f32 %v8209_v19, %v3789_v2 }
 0x504   : > { %v4237_v12 = vadd.f32 %v8318_v48, %v4201_v40  ;;  %v3923_v54 = vpop.f32.mrf.mxu0 }
 0x506   : > { %v4269_v3 = vmax.f32 %v4237_v12, 0.0 }
 0x507   : > { %v4093_v52 = vpop.f32.mrf.mxu1 }
 0x508   : > { %v4166_v37 = vadd.f32 %v4093_v52, %v3978_v10  ;;  %v9526_v10 = vld [vmem:[#allocation35_spill] sm:$0xff] }
 0x509   : > { %v3604_v34 = vadd.f32 %v8214_v55, %v9526_v10 }
 0x50a   : > { %v4202_v46 = vmul.f32 %v8308_v5, %v4166_v37  ;;  %v3734_v37 = vpop.f32.mrf.mxu3 }
 0x50b   : > { %v3790_v60 = vadd.f32 %v8321_v0, %v3604_v34 }
 0x50c   : > { %v4238_v62 = vadd.f32 %v8318_v48, %v4202_v46  ;;  %v8390_v46 = vpop.f32.mrf.mxu2  ;;  %v3925_v11 = vpop.f32.mrf.mxu0 }
 0x50e   : > { %v4270_v35 = vmax.f32 %v4238_v62, 0.0 }
 0x50f   : > { %v4096_v50 = vpop.f32.mrf.mxu1 }
 0x510   : > { %v4299_v36 = vpack.c.bf16 %v4270_v35, %v4269_v3  ;;  %v4167_v15 = vadd.f32 %v4096_v50, %v3979_v45  ;;  %v9527_v3 = vld [vmem:[#allocation21_spill] sm:$0xff]  ;;  %v3981_v50 = vadd.f32 %v8330_v7, %v3790_v60  ;;  %v9528_v45 = vld [vmem:[#allocation28_spill] sm:$0xff]  ;;  %v9530_v60 = vld [vmem:[#allocation7_spill] sm:$0xff] }
 0x511   : > { %v3605_v35 = vadd.f32 %v8222_v57, %v9527_v3  ;;  %v9529_v57 = vld [vmem:[#allocation36_spill] sm:$0xff] }
 0x512   : > { %4135 = vmatmul.bf16.gmra.mxu1 %v9525_v39  ;;  %4395 = vmatmul.bf16.gmra.mxu2 %v4299_v36  ;;  %v4203_v1 = vmul.f32 %v8308_v5, %v4167_v15  ;;  %v3737_v0 = vpop.f32.mrf.mxu3  ;;  %v3606_v7 = vadd.f32 %v8233_v56, %v9529_v57 }
 0x513   : > { %v3791_v6 = vadd.f32 %v8336_v4, %v3605_v35  ;;  %v9531_v35 = vld [vmem:[#allocation49_spill] sm:$0xff] }
 0x514   : > { %v4239_v52 = vadd.f32 %v8318_v48, %v4203_v1  ;;  %v8399_v15 = vpop.f32.mrf.mxu2 }
 0x515   : > { %v3982_v2 = vadd.f32 %v8342_v59, %v3791_v6 }
 0x516   : > { %v4271_v24 = vmax.f32 %v4239_v52, 0.0 }
 0x517   : > { %v4098_v21 = vpop.f32.mrf.mxu1 }
 0x518   : > { %v4168_v40 = vadd.f32 %v4098_v21, %v3980_v42  ;;  %v3928_v21 = vpop.f32.mrf.mxu0 }
 0x51a   : > { %v4204_v18 = vmul.f32 %v8308_v5, %v4168_v40  ;;  %v3792_v40 = vadd.f32 %v8350_v51, %v3606_v7 }
 0x51c   : > { %v4240_v12 = vadd.f32 %v8318_v48, %v4204_v18  ;;  %v3739_v18 = vpop.f32.mrf.mxu3  ;;  %v8410_v56 = vpop.f32.mrf.mxu2 }
 0x51e   : > { %v4272_v62 = vmax.f32 %v4240_v12, 0.0  ;;  %v3607_v12 = vadd.f32 %v8240_v43, %v9530_v60 }
 0x51f   : > { %v4101_v19 = vpop.f32.mrf.mxu1 }
 0x520   : > { %v4300_v55 = vpack.c.bf16 %v4272_v62, %v4271_v24  ;;  %v4169_v29 = vadd.f32 %v4101_v19, %v3981_v50  ;;  %v3983_v24 = vadd.f32 %v8359_v41, %v3792_v40  ;;  %v3793_v19 = vadd.f32 %v8363_v47, %v3607_v12  ;;  %v3930_v51 = vpop.f32.mrf.mxu0 }
 0x522   : > { %4140 = vmatmul.bf16.gmra.mxu1 %v9528_v45  ;;  %4400 = vmatmul.bf16.gmra.mxu2 %v4300_v55  ;;  %v4205_v36 = vmul.f32 %v8308_v5, %v4169_v29  ;;  %v3984_v55 = vadd.f32 %v3920_v14, %v3793_v19 }
 0x524   : > { %v4241_v42 = vadd.f32 %v8318_v48, %v4205_v36  ;;  %v3742_v45 = vpop.f32.mrf.mxu3  ;;  %v9532_v36 = vld [vmem:[#allocation53_spill] sm:$0xff] }
 0x525   : > { %v3608_v43 = vadd.f32 %v8249_v8, %v9532_v36 }
 0x526   : > { %v4273_v34 = vmax.f32 %v4241_v42, 0.0 }
 0x527   : > { %v4103_v39 = vpop.f32.mrf.mxu1  ;;  %v3794_v47 = vadd.f32 %v8376_v63, %v3608_v43 }
 0x528   : > { %v4170_v1 = vadd.f32 %v4103_v39, %v3982_v2  ;;  %v8419_v39 = vpop.f32.mrf.mxu2  ;;  %v3933_v42 = vpop.f32.mrf.mxu0 }
 0x52a   : > { %v4206_v4 = vmul.f32 %v8308_v5, %v4170_v1 }
 0x52c   : > { %v4242_v10 = vadd.f32 %v8318_v48, %v4206_v4  ;;  %v9533_v4 = vld [vmem:[#allocation23_spill] sm:$0xff]  ;;  %v3744_v60 = vpop.f32.mrf.mxu3 }
 0x52d   : > { %v3609_v40 = vadd.f32 %v8262_v33, %v9533_v4 }
 0x52e   : > { %v4274_v52 = vmax.f32 %v4242_v10, 0.0  ;;  %v3985_v10 = vadd.f32 %v3923_v54, %v3794_v47 }
 0x52f   : > { %v4106_v59 = vpop.f32.mrf.mxu1  ;;  %v3795_v8 = vadd.f32 %v3734_v37, %v3609_v40 }
 0x530   : > { %v4301_v62 = vpack.c.bf16 %v4274_v52, %v4273_v34  ;;  %v4171_v3 = vadd.f32 %v4106_v59, %v3983_v24  ;;  %v9534_v59 = vld [vmem:[#allocation29_spill] sm:$0xff]  ;;  %v8426_v12 = vpop.f32.mrf.mxu2 }
 0x531   : > { %v3986_v24 = vadd.f32 %v3925_v11, %v3795_v8  ;;  %v9536_v11 = vld [vmem:[#allocation52_spill] sm:$0xff] }
 0x532   : > { %4145 = vmatmul.bf16.gmra.mxu1 %v9531_v35  ;;  %4405 = vmatmul.bf16.gmra.mxu2 %v4301_v62  ;;  %v4207_v50 = vmul.f32 %v8308_v5, %v4171_v3  ;;  %v3935_v3 = vpop.f32.mrf.mxu0  ;;  %v9535_v35 = vld [vmem:[#allocation9_spill] sm:$0xff] }
 0x534   : > { %v4243_v41 = vadd.f32 %v8318_v48, %v4207_v50  ;;  %v3610_v50 = vadd.f32 %v8271_v31, %v9535_v35 }
 0x536   : > { %v4275_v57 = vmax.f32 %v4243_v41, 0.0  ;;  %v3796_v37 = vadd.f32 %v3737_v0, %v3610_v50 }
 0x537   : > { %v4108_v6 = vpop.f32.mrf.mxu1 }
 0x538   : > { %v4172_v29 = vadd.f32 %v4108_v6, %v3984_v55  ;;  %v3747_v6 = vpop.f32.mrf.mxu3  ;;  %v8434_v43 = vpop.f32.mrf.mxu2  ;;  %v3987_v47 = vadd.f32 %v3928_v21, %v3796_v37 }
 0x53a   : > { %v4208_v2 = vmul.f32 %v8308_v5, %v4172_v29 }
 0x53c   : > { %v4244_v1 = vadd.f32 %v8318_v48, %v4208_v2  ;;  %v3611_v2 = vadd.f32 %v8280_v23, %v9536_v11 }
 0x53e   : > { %v4276_v7 = vmax.f32 %v4244_v1, 0.0 }
 0x53f   : > { %v4111_v14 = vpop.f32.mrf.mxu1 }
 0x540   : > { %v4302_v34 = vpack.c.bf16 %v4276_v7, %v4275_v57  ;;  %v4173_v52 = vadd.f32 %v4111_v14, %v3985_v10  ;;  %v3797_v57 = vadd.f32 %v3739_v18, %v3611_v2  ;;  %v9537_v7 = vld [vmem:[#allocation6_spill] sm:$0xff]  ;;  %v3938_v14 = vpop.f32.mrf.mxu0  ;;  %v3749_v40 = vpop.f32.mrf.mxu3 }
 0x541   : > { %v8440_v8 = vpop.f32.mrf.mxu2 }
 0x542   : > { %4150 = vmatmul.bf16.gmra.mxu1 %v9534_v59  ;;  %4410 = vmatmul.bf16.gmra.mxu2 %v4302_v34  ;;  %v4209_v63 = vmul.f32 %v8308_v5, %v4173_v52  ;;  %v3988_v4 = vadd.f32 %v3930_v51, %v3797_v57  ;;  %v9538_v52 = vld [vmem:[#allocation5_spill] sm:$0xff]  ;;  %v3613_v51 = vadd.f32 %v8303_v32, %v8177_v49  ;;  %v9539_v49 = vld [vmem:[#allocation54_spill] sm:$0xff] }
 0x543   : > { %v3612_v59 = vadd.f32 %v8292_v20, %v9538_v52  ;;  %v3614_v32 = vadd.f32 %v8327_v9, %v9539_v49  ;;  %v5733_v49 = vld [vmem:[%s9017_s11 + $0x30] sm:$0xff] }
 0x544   : > { %v4245_v33 = vadd.f32 %v8318_v48, %v4209_v63  ;;  %v3799_v37 = vadd.f32 %v3744_v60, %v3613_v51 }
 0x545   : > { %v3798_v18 = vadd.f32 %v3742_v45, %v3612_v59 }
 0x546   : > { %v4277_v29 = vmax.f32 %v4245_v33, 0.0  ;;  %v3990_v45 = vadd.f32 %v3935_v3, %v3799_v37 }
 0x547   : > { %v4113_v62 = vpop.f32.mrf.mxu1  ;;  %v3989_v50 = vadd.f32 %v3933_v42, %v3798_v18 }
 0x548   : > { %v4174_v19 = vadd.f32 %v4113_v62, %v3986_v24  ;;  %v3940_v24 = vpop.f32.mrf.mxu0 }
 0x549   : > { %v8449_v20 = vpop.f32.mrf.mxu2 }
 0x54a   : > { %v4210_v54 = vmul.f32 %v8308_v5, %v4174_v19 }
 0x54c   : > { %v4246_v55 = vadd.f32 %v8318_v48, %v4210_v54  ;;  %v3752_v54 = vpop.f32.mrf.mxu3 }
 0x54e   : > { %v4278_v36 = vmax.f32 %v4246_v55, 0.0 }
 0x54f   : > { %v4116_v41 = vpop.f32.mrf.mxu1 }
 0x550   : > { %v4303_v1 = vpack.c.bf16 %v4278_v36, %v4277_v29  ;;  %v4175_v31 = vadd.f32 %v4116_v41, %v3987_v47  ;;  %v5734_v36 = vld [vmem:[%s9017_s11 + $0x38] sm:$0xff]  ;;  %v3943_v41 = vpop.f32.mrf.mxu0 }
 0x551   : > { %4641 = vmatpush.bf16.msrb.mxu3 %v5734_v36  ;;  %v8460_v3 = vpop.f32.mrf.mxu2 }
 0x552   : > { %4155 = vmatmul.bf16.gmra.mxu1 %v9537_v7  ;;  %4415 = vmatmul.bf16.gmra.mxu2 %v4303_v1  ;;  %v4211_v0 = vmul.f32 %v8308_v5, %v4175_v31  ;;  %v3800_v1 = vadd.f32 %v3747_v6, %v3614_v32 }
 0x554   : > { %v4247_v23 = vadd.f32 %v8318_v48, %v4211_v0  ;;  %v3754_v47 = vpop.f32.mrf.mxu3 }
 0x555   : > { %4642 = vmatpush.bf16.msrb.mxu3 %v5733_v49 }
 0x556   : > { %v4279_v62 = vmax.f32 %v4247_v23, 0.0 }
 0x557   : > { %v4118_v10 = vpop.f32.mrf.mxu1 }
 0x558   : > { %v4176_v34 = vadd.f32 %v4118_v10, %v3988_v4  ;;  %v3615_v4 = vadd.f32 %v8338_v13, %v8198_v25  ;;  %v3991_v10 = vadd.f32 %v3938_v14, %v3800_v1  ;;  %v3945_v52 = vpop.f32.mrf.mxu0 }
 0x55a   : > { %v4212_v21 = vmul.f32 %v8308_v5, %v4176_v34  ;;  %v3801_v9 = vadd.f32 %v3749_v40, %v3615_v4 }
 0x55c   : > { %v4248_v63 = vadd.f32 %v8318_v48, %v4212_v21  ;;  %v3757_v23 = vpop.f32.mrf.mxu3  ;;  %v3992_v18 = vadd.f32 %v3940_v24, %v3801_v9  ;;  %v3617_v24 = vadd.f32 %v8365_v17, %v8216_v58  ;;  %v3618_v58 = vadd.f32 %v8380_v61, %v8220_v22 }
 0x55e   : > { %v4280_v19 = vmax.f32 %v4248_v63, 0.0 }
 0x55f   : > { %v4121_v35 = vpop.f32.mrf.mxu1 }
 0x560   : > { %v4304_v33 = vpack.c.bf16 %v4280_v19, %v4279_v62  ;;  %v4177_v55 = vadd.f32 %v4121_v35, %v3989_v50  ;;  %v3616_v19 = vadd.f32 %v8352_v28, %v8204_v16  ;;  %v3948_v13 = vpop.f32.mrf.mxu0  ;;  %v3803_v16 = vadd.f32 %v3754_v47, %v3617_v24 }
 0x561   : > { %v3804_v47 = vadd.f32 %v3757_v23, %v3618_v58 }
 0x562   : > { %4420 = vmatmul.bf16.gmra.mxu2 %v4304_v33  ;;  %v4213_v29 = vmul.f32 %v8308_v5, %v4177_v55  ;;  %v3802_v14 = vadd.f32 %v3752_v54, %v3616_v19  ;;  %v3620_v19 = vadd.f32 %v8399_v15, %v8237_v30 }
 0x564   : > { %v4249_v42 = vadd.f32 %v8318_v48, %v4213_v29  ;;  %v3759_v37 = vpop.f32.mrf.mxu3  ;;  %v3993_v29 = vadd.f32 %v3943_v41, %v3802_v14 }
 0x566   : > { %v4281_v31 = vmax.f32 %v4249_v42, 0.0 }
 0x567   : > { %v4123_v11 = vpop.f32.mrf.mxu1 }
 0x568   : > { %v4178_v2 = vadd.f32 %v4123_v11, %v3990_v45  ;;  %v3950_v36 = vpop.f32.mrf.mxu0 }
 0x56a   : > { %v4214_v60 = vmul.f32 %v8308_v5, %v4178_v2  ;;  %v3994_v2 = vadd.f32 %v3945_v52, %v3803_v16 }
 0x56c   : > { %v4250_v57 = vadd.f32 %v8318_v48, %v4214_v60  ;;  %v3762_v60 = vpop.f32.mrf.mxu3 }
 0x56e   : > { %v4282_v7 = vmax.f32 %v4250_v57, 0.0 }
 0x56f   : > { %v4126_v0 = vpop.f32.mrf.mxu1 }
 0x570   : > { %v4305_v34 = vpack.c.bf16 %v4282_v7, %v4281_v31  ;;  %v4179_v59 = vadd.f32 %v4126_v0, %v3991_v10  ;;  %v3953_v0 = vpop.f32.mrf.mxu0  ;;  %v3619_v10 = vadd.f32 %v8390_v46, %v8231_v53  ;;  %v3806_v46 = vadd.f32 %v3762_v60, %v3620_v19 }
 0x572   : > { %4425 = vmatmul.bf16.gmra.mxu2 %v4305_v34  ;;  %v4215_v6 = vmul.f32 %v8308_v5, %v4179_v59  ;;  %v3995_v34 = vadd.f32 %v3948_v13, %v3804_v47  ;;  %v3805_v9 = vadd.f32 %v3759_v37, %v3619_v10  ;;  %v3621_v37 = vadd.f32 %v8410_v56, %v8245_v38  ;;  %v9540_v38 = vld [vmem:[#allocation8_spill] sm:$0xff] }
 0x573   : > { %v3622_v56 = vadd.f32 %v8419_v39, %v9540_v38 }
 0x574   : > { %v4251_v35 = vadd.f32 %v8318_v48, %v4215_v6  ;;  %v3764_v61 = vpop.f32.mrf.mxu3  ;;  %v3996_v6 = vadd.f32 %v3950_v36, %v3805_v9  ;;  %v5732_v36 = vld [vmem:[%s9017_s11 + $0x28] sm:$0xff] }
 0x575   : > { %v8464_v21 = vpop.f32.mrf.mxu2  ;;  %4643 = vmatpush.bf16.msrb.mxu3 %v5732_v36 }
 0x576   : > { %v4283_v50 = vmax.f32 %v4251_v35, 0.0 }
 0x577   : > { %v4128_v63 = vpop.f32.mrf.mxu1 }
 0x578   : > { %v4180_v62 = vadd.f32 %v4128_v63, %v3992_v18 }
 0x57a   : > { %v4216_v25 = vmul.f32 %v8308_v5, %v4180_v62  ;;  %v3955_v62 = vpop.f32.mrf.mxu0 }
 0x57c   : > { %v4252_v40 = vadd.f32 %v8318_v48, %v4216_v25  ;;  %v3767_v13 = vpop.f32.mrf.mxu3 }
 0x57d   : > { %v8472_v51 = vpop.f32.mrf.mxu2  ;;  %v3808_v60 = vadd.f32 %v3767_v13, %v3622_v56 }
 0x57e   : > { %v4284_v33 = vmax.f32 %v4252_v40, 0.0 }
 0x57f   : > { %v4131_v55 = vpop.f32.mrf.mxu1 }
 0x580   : > { %v4306_v45 = vpack.c.bf16 %v4284_v33, %v4283_v50  ;;  %v4181_v28 = vadd.f32 %v4131_v55, %v3993_v29  ;;  %v3997_v55 = vadd.f32 %v3953_v0, %v3806_v46  ;;  %v3807_v29 = vadd.f32 %v3764_v61, %v3621_v37 }
 0x582   : > { %4430 = vmatmul.bf16.gmra.mxu2 %v4306_v45  ;;  %v4217_v54 = vmul.f32 %v8308_v5, %v4181_v28  ;;  %v3958_v15 = vpop.f32.mrf.mxu0  ;;  %v3998_v28 = vadd.f32 %v3955_v62, %v3807_v29 }
 0x583   : > { %v3999_v0 = vadd.f32 %v3958_v15, %v3808_v60 }
 0x584   : > { %v4253_v17 = vadd.f32 %v8318_v48, %v4217_v54  ;;  %v3769_v54 = vpop.f32.mrf.mxu3 }
 0x585   : > { %v8476_v11 = vpop.f32.mrf.mxu2 }
 0x586   : > { %v4285_v31 = vmax.f32 %v4253_v17, 0.0 }
 0x587   : > { %v4133_v32 = vpop.f32.mrf.mxu1 }
 0x588   : > { %v4182_v42 = vadd.f32 %v4133_v32, %v3994_v2 }
 0x58a   : > { %v4218_v41 = vmul.f32 %v8308_v5, %v4182_v42  ;;  %v3960_v17 = vpop.f32.mrf.mxu0 }
 0x58c   : > { %v4254_v1 = vadd.f32 %v8318_v48, %v4218_v41  ;;  %v3772_v10 = vpop.f32.mrf.mxu3 }
 0x58d   : > { %v8487_v57 = vpop.f32.mrf.mxu2 }
 0x58e   : > { %v4286_v7 = vmax.f32 %v4254_v1, 0.0 }
 0x58f   : > { %v4136_v4 = vpop.f32.mrf.mxu1 }
 0x590   : > { %v4307_v52 = vpack.c.bf16 %v4286_v7, %v4285_v31  ;;  %v4183_v22 = vadd.f32 %v4136_v4, %v3995_v34  ;;  %v3623_v7 = vadd.f32 %v8426_v12, %v8260_v44 }
 0x592   : > { %4435 = vmatmul.bf16.gmra.mxu2 %v4307_v52  ;;  %v4219_v23 = vmul.f32 %v8308_v5, %v4183_v22  ;;  %v3809_v39 = vadd.f32 %v3769_v54, %v3623_v7  ;;  %v3963_v61 = vpop.f32.mrf.mxu0 }
 0x594   : > { %v4255_v35 = vadd.f32 %v8318_v48, %v4219_v23  ;;  %v4000_v22 = vadd.f32 %v3960_v17, %v3809_v39  ;;  %v3774_v12 = vpop.f32.mrf.mxu3 }
 0x595   : > { %v8491_v59 = vpop.f32.mrf.mxu2 }
 0x596   : > { %v4287_v40 = vmax.f32 %v4255_v35, 0.0 }
 0x597   : > { %v4138_v18 = vpop.f32.mrf.mxu1 }
 0x598   : > { %v4184_v63 = vadd.f32 %v4138_v18, %v3996_v6  ;;  %v9541_v18 = vld [vmem:[#allocation56_spill] sm:$0xff] }
 0x59a   : > { %v4220_v53 = vmul.f32 %v8308_v5, %v4184_v63  ;;  %v3624_v63 = vadd.f32 %v8434_v43, %v9541_v18  ;;  %v3965_v37 = vpop.f32.mrf.mxu0 }
 0x59c   : > { %v4256_v25 = vadd.f32 %v8318_v48, %v4220_v53  ;;  %v3810_v19 = vadd.f32 %v3772_v10, %v3624_v63  ;;  %v3777_v29 = vpop.f32.mrf.mxu3  ;;  %v5730_v63 = vld [vmem:[%s9017_s11 + $0x18] sm:$0xff] }
 0x59d   : > { %v8499_v14 = vpop.f32.mrf.mxu2 }
 0x59e   : > { %v4288_v50 = vmax.f32 %v4256_v25, 0.0 }
 0x59f   : > { %v4141_v33 = vpop.f32.mrf.mxu1 }
 0x5a0   : > { %v4308_v24 = vpack.c.bf16 %v4288_v50, %v4287_v40  ;;  %v4185_v30 = vadd.f32 %v4141_v33, %v3997_v55  ;;  %v3625_v40 = vadd.f32 %v8440_v8, %v8276_v26  ;;  %v4001_v50 = vadd.f32 %v3963_v61, %v3810_v19  ;;  %v9542_v26 = vld [vmem:[#allocation39_spill] sm:$0xff] }
 0x5a1   : > { %v3626_v8 = vadd.f32 %v8449_v20, %v9542_v26 }
 0x5a2   : > { %4440 = vmatmul.bf16.gmra.mxu2 %v4308_v24  ;;  %v4221_v16 = vmul.f32 %v8308_v5, %v4185_v30  ;;  %v3811_v43 = vadd.f32 %v3774_v12, %v3625_v40  ;;  %v5731_v24 = vld [vmem:[%s9017_s11 + $0x20] sm:$0xff] }
 0x5a3   : > { %4644 = vmatpush.bf16.msrb.mxu3 %v5731_v24  ;;  %v3812_v38 = vadd.f32 %v3777_v29, %v3626_v8 }
 0x5a4   : > { %v4257_v32 = vadd.f32 %v8318_v48, %v4221_v16  ;;  %v4002_v16 = vadd.f32 %v3965_v37, %v3811_v43 }
 0x5a5   : > { %v8503_v45 = vpop.f32.mrf.mxu2 }
 0x5a6   : > { %v4289_v47 = vmax.f32 %v4257_v32, 0.0 }
 0x5a7   : > { %v4143_v2 = vpop.f32.mrf.mxu1  ;;  %4645 = vmatpush.bf16.msrb.mxu3 %v5730_v63 }
 0x5a8   : > { %v4186_v49 = vadd.f32 %v4143_v2, %v3998_v28 }
 0x5aa   : > { %v4222_v42 = vmul.f32 %v8308_v5, %v4186_v49  ;;  %v3968_v49 = vpop.f32.mrf.mxu0 }
 0x5ac   : > { %v4258_v58 = vadd.f32 %v8318_v48, %v4222_v42 }
 0x5ad   : > { %v8514_v41 = vpop.f32.mrf.mxu2 }
 0x5ae   : > { %v4290_v1 = vmax.f32 %v4258_v58, 0.0  ;;  %v3779_v58 = vpop.f32.mrf.mxu3 }
 0x5af   : > { %v4146_v31 = vpop.f32.mrf.mxu1 }
 0x5b0   : > { %v4309_v4 = vpack.c.bf16 %v4290_v1, %v4289_v47  ;;  %v4187_v34 = vadd.f32 %v4146_v31, %v3999_v0  ;;  %v3627_v47 = vadd.f32 %v8460_v3, %v8294_v27  ;;  %v4003_v1 = vadd.f32 %v3968_v49, %v3812_v38 }
 0x5b2   : > { %4445 = vmatmul.bf16.gmra.mxu2 %v4309_v4  ;;  %v4223_v9 = vmul.f32 %v8308_v5, %v4187_v34  ;;  %v3813_v20 = vadd.f32 %v3779_v58, %v3627_v47  ;;  %v3970_v0 = vpop.f32.mrf.mxu0 }
 0x5b4   : > { %v4259_v62 = vadd.f32 %v8318_v48, %v4223_v9  ;;  %v4004_v39 = vadd.f32 %v3970_v0, %v3813_v20 }
 0x5b5   : > { %v8518_v52 = vpop.f32.mrf.mxu2 }
 0x5b6   : > { %v4291_v46 = vmax.f32 %v4259_v62, 0.0 }
 0x5b7   : > { %v4148_v23 = vpop.f32.mrf.mxu1 }
 0x5b8   : > { %v4188_v6 = vadd.f32 %v4148_v23, %v4000_v22 }
 0x5ba   : > { %v4224_v44 = vmul.f32 %v8308_v5, %v4188_v6 }
 0x5bc   : > { %v4260_v35 = vadd.f32 %v8318_v48, %v4224_v44 }
 0x5bd   : > { %v8526_v53 = vpop.f32.mrf.mxu2 }
 0x5be   : > { %v4292_v25 = vmax.f32 %v4260_v35, 0.0 }
 0x5bf   : > { %v4151_v13 = vpop.f32.mrf.mxu1 }
 0x5c0   : > { %v4310_v33 = vpack.c.bf16 %v4292_v25, %v4291_v46  ;;  %v4189_v55 = vadd.f32 %v4151_v13, %v4001_v50  ;;  %v5728_v13 = vld [vmem:[%s9017_s11 + $0x8] sm:$0xff]  ;;  %v8575_v50 = vld [vmem:[%s9015_s9] ss:$0 sm:$0xff] }
 0x5c1   : > { %v4471_v37 = vmul.f32 %v8575_v50, %v8472_v51  ;;  %v4470_v43 = vmul.f32 %v8575_v50, %v8464_v21  ;;  %v4472_v24 = vmul.f32 %v8575_v50, %v8476_v11  ;;  %v4474_v21 = vmul.f32 %v8575_v50, %v8491_v59 }
 0x5c2   : > { %4450 = vmatmul.bf16.gmra.mxu2 %v4310_v33  ;;  %v4225_v15 = vmul.f32 %v8308_v5, %v4189_v55  ;;  %v8586_v55 = vld [vmem:[%s9016_s10] ss:$0 sm:$0xff]  ;;  %v4477_v49 = vmul.f32 %v8575_v50, %v8514_v41  ;;  %v4479_v58 = vmul.f32 %v8575_v50, %v8526_v53 }
 0x5c3   : > { %v8591_v29 = vadd.f32 %v8586_v55, %v4471_v37  ;;  %v8599_v51 = vadd.f32 %v8586_v55, %v4472_v24  ;;  %v8614_v8 = vadd.f32 %v8586_v55, %v4474_v21  ;;  %v5727_v53 = vld [vmem:[%s9017_s11] sm:$0xff] }
 0x5c4   : > { %v4261_v54 = vadd.f32 %v8318_v48, %v4225_v15  ;;  %v4473_v15 = vmul.f32 %v8575_v50, %v8487_v57  ;;  %v4475_v57 = vmul.f32 %v8575_v50, %v8499_v14 }
 0x5c5   : > { %v8533_v30 = vpop.f32.mrf.mxu2 }
 0x5c6   : > { %v4293_v42 = vmax.f32 %v4261_v54, 0.0  ;;  %v4476_v54 = vmul.f32 %v8575_v50, %v8503_v45  ;;  %v8632_v45 = vadd.f32 %v8586_v55, %v4477_v49  ;;  %v4480_v47 = vmul.f32 %v8575_v50, %v8533_v30 }
 0x5c7   : > { %v4153_v28 = vpop.f32.mrf.mxu1 }
 0x5c8   : > { %v4190_v36 = vadd.f32 %v4153_v28, %v4002_v16  ;;  %v8596_v16 = vadd.f32 %v8586_v55, %v4470_v43  ;;  %v8626_v14 = vadd.f32 %v8586_v55, %v4476_v54 }
 0x5ca   : > { %v4226_v2 = vmul.f32 %v8308_v5, %v4190_v36  ;;  %v4538_v11 = vadd.f32 %v8591_v29, %v8596_v16  ;;  %v8608_v36 = vadd.f32 %v8586_v55, %v4473_v15 }
 0x5cc   : > { %v4262_v56 = vadd.f32 %v8318_v48, %v4226_v2  ;;  %v4539_v26 = vadd.f32 %v4538_v11, %v8599_v51  ;;  %v8620_v2 = vadd.f32 %v8586_v55, %v4475_v57 }
 0x5cd   : > { %v8541_v32 = vpop.f32.mrf.mxu2 }
 0x5ce   : > { %v4294_v60 = vmax.f32 %v4262_v56, 0.0  ;;  %v4540_v59 = vadd.f32 %v4539_v26, %v8608_v36  ;;  %v4478_v56 = vmul.f32 %v8575_v50, %v8518_v52  ;;  %v8644_v52 = vadd.f32 %v8586_v55, %v4479_v58 }
 0x5cf   : > { %v4156_v17 = vpop.f32.mrf.mxu1 }
 0x5d0   : > { %v4311_v31 = vpack.c.bf16 %v4294_v60, %v4293_v42  ;;  %v4191_v7 = vadd.f32 %v4156_v17, %v4003_v1  ;;  %v4541_v38 = vadd.f32 %v4540_v59, %v8614_v8  ;;  %v8638_v41 = vadd.f32 %v8586_v55, %v4478_v56 }
 0x5d2   : > { %4455 = vmatmul.bf16.gmra.mxu2 %v4311_v31  ;;  %v4227_v10 = vmul.f32 %v8308_v5, %v4191_v7  ;;  %v4542_v60 = vadd.f32 %v4541_v38, %v8620_v2  ;;  %v4481_v31 = vmul.f32 %v8575_v50, %v8541_v32  ;;  %v8653_v7 = vadd.f32 %v8586_v55, %v4480_v47 }
 0x5d4   : > { %v4263_v22 = vadd.f32 %v8318_v48, %v4227_v10  ;;  %v4543_v17 = vadd.f32 %v4542_v60, %v8626_v14 }
 0x5d5   : > { %v8545_v4 = vpop.f32.mrf.mxu2 }
 0x5d6   : > { %v4295_v3 = vmax.f32 %v4263_v22, 0.0  ;;  %v4544_v1 = vadd.f32 %v4543_v17, %v8632_v45  ;;  %v4482_v30 = vmul.f32 %v8575_v50, %v8545_v4 }
 0x5d7   : > { %v4158_v34 = vpop.f32.mrf.mxu1 }
 0x5d8   : > { %v4192_v9 = vadd.f32 %v4158_v34, %v4004_v39  ;;  %v4545_v20 = vadd.f32 %v4544_v1, %v8638_v41  ;;  %v8659_v39 = vadd.f32 %v8586_v55, %v4481_v31 }
 0x5da   : > { %v4228_v61 = vmul.f32 %v8308_v5, %v4192_v9  ;;  %v5729_v5 = vld [vmem:[%s9017_s11 + $0x10] sm:$0xff]  ;;  %v4546_v10 = vadd.f32 %v4545_v20, %v8644_v52  ;;  %v8664_v9 = vadd.f32 %v8586_v55, %v4482_v30 }
 0x5db   : > { %4646 = vmatpush.bf16.msrb.mxu3 %v5729_v5 }
 0x5dc   : > { %v4264_v23 = vadd.f32 %v8318_v48, %v4228_v61  ;;  %v4547_v34 = vadd.f32 %v4546_v10, %v8653_v7 }
 0x5dd   : > { %v4418_v27 = vpop.f32.mrf.mxu2 }
 0x5de   : > { %v4296_v6 = vmax.f32 %v4264_v23, 0.0  ;;  %v4483_v32 = vmul.f32 %v8575_v50, %v4418_v27  ;;  %v4548_v61 = vadd.f32 %v4547_v34, %v8659_v39 }
 0x5df   : > { %4647 = vmatpush.bf16.msrb.mxu3 %v5728_v13 }
 0x5e0   : > { %v4312_v18 = vpack.c.bf16 %v4296_v6, %v4295_v3  ;;  %v8669_v4 = vadd.f32 %v8586_v55, %v4483_v32  ;;  %v4549_v3 = vadd.f32 %v4548_v61, %v8664_v9  ;;  %v5742_v32 = vld [vmem:[%s9018_s12 + $0x38] sm:$0xff] }
 0x5e2   : > { %4460 = vmatmul.bf16.gmra.mxu2 %v4312_v18  ;;  %v4550_v63 = vadd.f32 %v4549_v3, %v8669_v4 }
 0x5e3   : > { %4648 = vmatpush.bf16.msrb.mxu3 %v5727_v53 }
 0x5e5   : > { %v4421_v62 = vpop.f32.mrf.mxu2 }
 0x5e6   : > { %v4484_v22 = vmul.f32 %v8575_v50, %v4421_v62 }
 0x5e7   : > { %4720 = vmatpush.bf16.msra.mxu3 %v5742_v32 }
 0x5e8   : > { %v8674_v6 = vadd.f32 %v8586_v55, %v4484_v22 }
 0x5ea   : > { %v4551_v13 = vadd.f32 %v4550_v63, %v8674_v6 }
 0x5ed   : > { %v4423_v44 = vpop.f32.mrf.mxu2 }
 0x5ee   : > { %v4485_v23 = vmul.f32 %v8575_v50, %v4423_v44 }
 0x5f0   : > { %v8679_v5 = vadd.f32 %v8586_v55, %v4485_v23  ;;  %v5741_v23 = vld [vmem:[%s9018_s12 + $0x30] sm:$0xff] }
 0x5f1   : > { %4721 = vmatpush.bf16.msra.mxu3 %v5741_v23 }
 0x5f2   : > { %v4552_v43 = vadd.f32 %v4551_v13, %v8679_v5  ;;  %v5740_v13 = vld [vmem:[%s9018_s12 + $0x28] sm:$0xff] }
 0x5f5   : > { %v4426_v12 = vpop.f32.mrf.mxu2  ;;  %4722 = vmatpush.bf16.msra.mxu3 %v5740_v13 }
 0x5f6   : > { %v4486_v27 = vmul.f32 %v8575_v50, %v4426_v12 }
 0x5f8   : > { %v8685_v44 = vadd.f32 %v8586_v55, %v4486_v27 }
 0x5fa   : > { %v4553_v15 = vadd.f32 %v4552_v43, %v8685_v44 }
 0x5fd   : > { %v8554_v19 = vpop.f32.mrf.mxu2 }
 0x5fe   : > { %v4487_v62 = vmul.f32 %v8575_v50, %v8554_v19 }
 0x600   : > { %v8691_v12 = vadd.f32 %v8586_v55, %v4487_v62 }
 0x602   : > { %v4554_v57 = vadd.f32 %v4553_v15, %v8691_v12 }
 0x605   : > { %v8559_v48 = vpop.f32.mrf.mxu2 }
 0x606   : > { %v4488_v37 = vmul.f32 %v8575_v50, %v8559_v48 }
 0x608   : > { %v8697_v19 = vadd.f32 %v8586_v55, %v4488_v37 }
 0x60a   : > { %v4555_v54 = vadd.f32 %v4554_v57, %v8697_v19 }
 0x60d   : > { %v8561_v35 = vpop.f32.mrf.mxu2 }
 0x60e   : > { %v4489_v24 = vmul.f32 %v8575_v50, %v8561_v35 }
 0x610   : > { %v8703_v48 = vadd.f32 %v8586_v55, %v4489_v24 }
 0x612   : > { %v4556_v49 = vadd.f32 %v4555_v54, %v8703_v48 }
 0x615   : > { %v8563_v46 = vpop.f32.mrf.mxu2 }
 0x616   : > { %v4490_v21 = vmul.f32 %v8575_v50, %v8563_v46 }
 0x618   : > { %v8709_v35 = vadd.f32 %v8586_v55, %v4490_v21 }
 0x61a   : > { %v4557_v56 = vadd.f32 %v4556_v49, %v8709_v35 }
 0x61d   : > { %v8565_v25 = vpop.f32.mrf.mxu2 }
 0x61e   : > { %v4491_v26 = vmul.f32 %v8575_v50, %v8565_v25 }
 0x620   : > { %v8715_v46 = vadd.f32 %v8586_v55, %v4491_v26 }
 0x622   : > { %v4558_v17 = vadd.f32 %v4557_v56, %v8715_v46 }
 0x625   : > { %v8570_v40 = vpop.f32.mrf.mxu2 }
 0x626   : > { %v4492_v59 = vmul.f32 %v8575_v50, %v8570_v40 }
 0x628   : > { %v8721_v25 = vadd.f32 %v8586_v55, %v4492_v59  ;;  %v5738_v59 = vld [vmem:[%s9018_s12 + $0x18] sm:$0xff] }
 0x62a   : > { %v4559_v1 = vadd.f32 %v4558_v17, %v8721_v25 }
 0x62d   : > { %v8577_v33 = vpop.f32.mrf.mxu2 }
 0x62e   : > { %v4493_v38 = vmul.f32 %v8575_v50, %v8577_v33 }
 0x630   : > { %v8727_v40 = vadd.f32 %v8586_v55, %v4493_v38 }
 0x632   : > { %v4560_v53 = vadd.f32 %v4559_v1, %v8727_v40 }
 0x635   : > { %v8603_v28 = vpop.f32.mrf.mxu2 }
 0x636   : > { %v4494_v60 = vmul.f32 %v8575_v50, %v8603_v28 }
 0x638   : > { %v8732_v33 = vadd.f32 %v8586_v55, %v4494_v60 }
 0x63a   : > { %v4561_v30 = vadd.f32 %v4560_v53, %v8732_v33  ;;  %v5735_v53 = vld [vmem:[%s9018_s12] sm:$0xff] }
 0x63d   : > { %v4448_v42 = vpop.f32.mrf.mxu2 }
 0x63e   : > { %v4495_v47 = vmul.f32 %v8575_v50, %v4448_v42 }
 0x640   : > { %v8737_v20 = vadd.f32 %v8586_v55, %v4495_v47  ;;  %v9543_v47 = vld [vmem:[#allocation2_spill] sm:$0xff] }
 0x645   : > { %v4451_v0 = vpop.f32.mrf.mxu2 }
 0x646   : > { %v4496_v31 = vmul.f32 %v8575_v50, %v4451_v0  ;;  %v4562_v0 = vadd.f32 %v4561_v30, %v8737_v20 }
 0x648   : > { %v8742_v10 = vadd.f32 %v8586_v55, %v4496_v31 }
 0x64a   : > { %v4563_v3 = vadd.f32 %v4562_v0, %v8742_v10 }
 0x64d   : > { %v4453_v18 = vpop.f32.mrf.mxu2 }
 0x64e   : > { %v4497_v28 = vmul.f32 %v8575_v50, %v4453_v18 }
 0x650   : > { %v8750_v22 = vadd.f32 %v8586_v55, %v4497_v28 }
 0x652   : > { %v4564_v63 = vadd.f32 %v4563_v3, %v8750_v22 }
 0x655   : > { %v4456_v11 = vpop.f32.mrf.mxu2 }
 0x656   : > { %v4498_v42 = vmul.f32 %v8575_v50, %v4456_v11  ;;  %v5739_v11 = vld [vmem:[%s9018_s12 + $0x20] sm:$0xff] }
 0x657   : > { %4723 = vmatpush.bf16.msra.mxu3 %v5739_v11 }
 0x658   : > { %v8758_v27 = vadd.f32 %v8586_v55, %v4498_v42 }
 0x65a   : > { %v4565_v37 = vadd.f32 %v4564_v63, %v8758_v27 }
 0x65b   : > { %4724 = vmatpush.bf16.msra.mxu3 %v5738_v59 }
 0x65d   : > { %v4458_v58 = vpop.f32.mrf.mxu2 }
 0x65e   : > { %v4499_v61 = vmul.f32 %v8575_v50, %v4458_v58 }
 0x660   : > { %v8763_v62 = vadd.f32 %v8586_v55, %v4499_v61 }
 0x662   : > { %v4566_v15 = vadd.f32 %v4565_v37, %v8763_v62 }
 0x665   : > { %v4461_v34 = vpop.f32.mrf.mxu2 }
 0x666   : > { %v4500_v18 = vmul.f32 %v8575_v50, %v4461_v34 }
 0x668   : > { %v8770_v43 = vadd.f32 %v8586_v55, %v4500_v18 }
 0x66a   : > { %v4567_v57 = vadd.f32 %v4566_v15, %v8770_v43  ;;  %v8796_v15 = vld [vmem:[%s6014_s14] sm:$0xff]  }
 0x66d   : > { %v4463_v24 = vpop.f32.mrf.mxu2 }
 0x66e   : > { %v4501_v21 = vmul.f32 %v8575_v50, %v4463_v24  ;;  %v5737_v50 = vld [vmem:[%s9018_s12 + $0x10] sm:$0xff] }
 0x66f   : > { %4725 = vmatpush.bf16.msra.mxu3 %v5737_v50 }
 0x670   : > { %v8779_v26 = vadd.f32 %v8586_v55, %v4501_v21  ;;  %v5736_v55 = vld [vmem:[%s9018_s12 + $0x8] sm:$0xff] }
 0x671   : > { %v8799_v21 = vld [vmem:[%s6014_s14 + $0x8] sm:$0xff]  }
 0x672   : > { %v4568_v54 = vadd.f32 %v4567_v57, %v8779_v26 }
 0x673   : > { %4726 = vmatpush.bf16.msra.mxu3 %v5736_v55 }
 0x674   : > { %v4569_v49 = vrot.slane %v4568_v54, 4 }
 0x676   : > { %v4570_v38 = vadd.f32 %v4569_v49, %v4568_v54  ;;  %v8802_v54 = vld [vmem:[%s6014_s14 + $0x10] sm:$0xff]   ;;  %v8809_v49 = vld [vmem:[%s6014_s14 + $0x18] sm:$0xff]  }
 0x677   : > { %4727 = vmatpush.bf16.msra.mxu3 %v5735_v53  ;;  %v4788_v53 = vunpack.c.h.bf16 %v8799_v21 }
 0x678   : > { %v4571_v56 = vrot.slane %v4570_v38, 2 }
 0x67a   : > { %v4572_v60 = vadd.f32 %v4571_v56, %v4570_v38  ;;  %v8812_v38 = vld [vmem:[%s6014_s14 + $0x20] sm:$0xff]   ;;  %v8817_v56 = vld [vmem:[%s6014_s14 + $0x28] sm:$0xff]  }
 0x67c   : > { %v4573_v58 = vrot.slane %v4572_v60, 1 }
 0x67e   : > { %v4574_v17 = vadd.f32 %v4573_v58, %v4572_v60  ;;  %v8820_v60 = vld [vmem:[%s6014_s14 + $0x30] sm:$0xff]   ;;  %v4785_v58 = vunpack.c.l.bf16 %v8796_v15 }
 0x680   : > { %v4575_v1 = vmul.f32 %v4574_v17, %v9543_v47  ;;  %v4786_v17 = vunpack.c.h.bf16 %v8796_v15  ;;  %v4787_v47 = vunpack.c.l.bf16 %v8799_v21  ;;  %v9549_v15 = vunpack.c.l.bf16 %v8812_v38 }
 0x681   : > { %v9551_v21 = vunpack.c.l.bf16 %v8817_v56 }
 0x682   : > { %v4576_v31 = vpack.c.bf16 %v4575_v1, %v4575_v1  ;;  %v8826_v1 = vld [vmem:[%s6014_s14 + $0x38] sm:$0xff]  }
 0x684   : > { %4649 = vmatmul.bf16.vlgmr.msrb.gmra.mxu3 %v4576_v31  ;;  %v8829_v31 = vld [vmem:[%s6014_s14 + $0x40] sm:$0xff]  }
 0x707   : > { %v4650_v28 = vpop.f32.mrf.mxu3 }
 0x708   : > { %v4654_v30 = vmax.f32 %v4650_v28, 0.0  ;;  %v4789_v28 = vunpack.c.l.bf16 %v8802_v54 }
 0x70a   : > { %v4655_v42 = vpack.c.bf16 %v4654_v30, %v4654_v30 }
 0x70c   : > { %4728 = vmatmul.bf16.vlgmr.msra.gmra.mxu3 %v4655_v42  ;;  %v8835_v42 = vld [vmem:[%s6014_s14 + $0x48] sm:$0xff]  }
 0x70f   : > { %v4652_v32 = vpop.f32.mrf.mxu3 }
 0x78f   : > { %v4729_v34 = vpop.f32.mrf.mxu3 }
 0x790   : > { %v5618_v0 = vmul.f32 -1.442695, %v4729_v34 }
 0x792   : > { %5887 = vpow2.f32 %v5618_v0 }
 0x797   : > { %v4731_v61 = vpop.f32.mrf.mxu3 }
 0x798   : > { %v5888_v23 = vpop.eup %5887  ;;  %v8861_v61 = vld [vmem:[%s6014_s14 + $0x70] sm:$0xff]  }
 0x799   : > { %v4736_v3 = vadd.f32 1.0, %v5888_v23  ;;  %v8841_v23 = vld [vmem:[%s6014_s14 + $0x50] sm:$0xff]  }
 0x79b   : > { %5889 = vrcp.f32 %v4736_v3  ;;  %v4748_v24 = vand.u32 2147483648, %v4736_v3  ;;  %vm4742_vm9 = vweird.f32 %v4736_v3  ;;  %v4746_v57 = vand.u32 2147483647, %v4736_v3 }
 0x79d   : > { %v4749_v55 = vor.u32 1.1754944e-38, %v4748_v24  ;;  %vm4747_vm8 = vcmp.eq.f32.partialorder %v4746_v57, 8.507059e+37  ;;  %v8851_v24 = vld [vmem:[%s6014_s14 + $0x60] sm:$0xff]  }
 0x7a1   : > { %v5890_v18 = vpop.eup %5889 }
 0x7a2   : > { %v4738_v63 = vmul.f32 %v5890_v18, %v4736_v3  ;;  %vm4743_vm3 = vweird.f32 %v5890_v18  ;;  %v8844_v3 = vld [vmem:[%s6014_s14 + $0x58] sm:$0xff]  }
 0x7a3   : > { %vm8804_vm7 = vmor %vm4742_vm9, %vm4743_vm3 }
 0x7a4   : > { %v4739_v13 = vsub.f32 1.0, %v4738_v63 }
 0x7a6   : > { %v4740_v37 = vmul.f32 %v5890_v18, %v4739_v13 }
 0x7a8   : > { %v4741_v11 = vadd.f32 %v5890_v18, %v4740_v37 }
 0x7aa   : > { %v4745_v50 = vsel %vm8804_vm7, %v5890_v18, %v4741_v11  ;;  %v8854_v11 = vld [vmem:[%s6014_s14 + $0x68] sm:$0xff]   ;;  %v8864_v18 = vld [vmem:[%s6014_s14 + $0x78] sm:$0xff]  }
 0x7ab   : > { %v4750_v32 = vsel %vm4747_vm8, %v4749_v55, %v4745_v50 }
 0x7ac   : > { %v4752_v63 = vperm.slane %v4750_v32, 0 }
 0x7ae   : > { %v4753_v59 = vmul.f32 %v4752_v63, %v8596_v16  ;;  %v4754_v50 = vmul.f32 %v4752_v63, %v8591_v29  ;;  %v4755_v55 = vmul.f32 %v4752_v63, %v8599_v51  ;;  %v4756_v30 = vmul.f32 %v4752_v63, %v8608_v36 }
 0x7af   : > { %v4757_v32 = vmul.f32 %v4752_v63, %v8614_v8  ;;  %v4758_v13 = vmul.f32 %v4752_v63, %v8620_v2  ;;  %v4759_v37 = vmul.f32 %v4752_v63, %v8626_v14  ;;  %v4760_v0 = vmul.f32 %v4752_v63, %v8632_v45 }
 0x7b0   : > { %v4761_v34 = vmul.f32 %v4752_v63, %v8638_v41  ;;  %v4762_v57 = vmul.f32 %v4752_v63, %v8644_v52  ;;  %v4763_v16 = vmul.f32 %v4752_v63, %v8653_v7  ;;  %v4764_v29 = vmul.f32 %v4752_v63, %v8659_v39 }
 0x7b1   : > { %v4765_v51 = vmul.f32 %v4752_v63, %v8664_v9  ;;  %v4766_v36 = vmul.f32 %v4752_v63, %v8669_v4  ;;  %v4767_v8 = vmul.f32 %v4752_v63, %v8674_v6  ;;  %v4768_v2 = vmul.f32 %v4752_v63, %v8679_v5 }
 0x7b2   : > { %v4769_v14 = vmul.f32 %v4752_v63, %v8685_v44  ;;  %v4770_v45 = vmul.f32 %v4752_v63, %v8691_v12  ;;  %v4771_v41 = vmul.f32 %v4752_v63, %v8697_v19  ;;  %v4772_v52 = vmul.f32 %v4752_v63, %v8703_v48 }
 0x7b3   : > { %v4773_v7 = vmul.f32 %v4752_v63, %v8709_v35  ;;  %v4774_v39 = vmul.f32 %v4752_v63, %v8715_v46  ;;  %v4775_v9 = vmul.f32 %v4752_v63, %v8721_v25  ;;  %v4776_v4 = vmul.f32 %v4752_v63, %v8727_v40 }
 0x7b4   : > { %v4777_v6 = vmul.f32 %v4752_v63, %v8732_v33  ;;  %v4778_v5 = vmul.f32 %v4752_v63, %v8737_v20  ;;  %v4779_v44 = vmul.f32 %v4752_v63, %v8742_v10  ;;  %v4780_v12 = vmul.f32 %v4752_v63, %v8750_v22 }
 0x7b5   : > { %v4781_v19 = vmul.f32 %v4752_v63, %v8758_v27  ;;  %v4782_v48 = vmul.f32 %v4752_v63, %v8763_v62  ;;  %v4783_v35 = vmul.f32 %v4752_v63, %v8770_v43  ;;  %v8913_v46 = vmul.f32 %v4752_v63, %v8779_v26 }
 0x7b6   : > { %v4817_v25 = vadd.f32 %v4785_v58, %v4753_v59  ;;  %v4818_v40 = vadd.f32 %v4786_v17, %v4754_v50  ;;  %v4819_v33 = vadd.f32 %v4787_v47, %v4755_v55  ;;  %v4820_v20 = vadd.f32 %v4788_v53, %v4756_v30 }
 0x7b7   : > { %v4821_v10 = vadd.f32 %v4789_v28, %v4757_v32  ;;  %v9546_v22 = vunpack.c.h.bf16 %v8802_v54  ;;  %v9547_v62 = vunpack.c.l.bf16 %v8809_v49  ;;  %v9548_v26 = vunpack.c.h.bf16 %v8809_v49 }
 0x7b8   : > { %v4825_v17 = vadd.f32 %v9549_v15, %v4761_v34  ;;  %v9550_v47 = vunpack.c.h.bf16 %v8812_v38  ;;  %v4827_v53 = vadd.f32 %v9551_v21, %v4763_v16  ;;  %v9552_v28 = vunpack.c.h.bf16 %v8817_v56 }
 0x7b9   : > { %v4822_v27 = vadd.f32 %v9546_v22, %v4758_v13  ;;  %v4823_v43 = vadd.f32 %v9547_v62, %v4759_v37  ;;  %v4824_v58 = vadd.f32 %v9548_v26, %v4760_v0  ;;  %v9553_v54 = vunpack.c.l.bf16 %v8820_v60 }
 0x7ba   : > { %v4826_v63 = vadd.f32 %v9550_v47, %v4762_v57  ;;  %v4828_v30 = vadd.f32 %v9552_v28, %v4764_v29  ;;  %v9554_v37 = vunpack.c.h.bf16 %v8820_v60  ;;  %v9555_v49 = vunpack.c.l.bf16 %v8826_v1 }
 0x7bb   : > { %v4829_v13 = vadd.f32 %v9553_v54, %v4765_v51  ;;  %v9556_v34 = vunpack.c.h.bf16 %v8826_v1  ;;  %v9557_v38 = vunpack.c.l.bf16 %v8829_v31  ;;  %v9558_v55 = vunpack.c.h.bf16 %v8829_v31 }
 0x7bc   : > { %v4830_v59 = vadd.f32 %v9554_v37, %v4766_v36  ;;  %v4831_v0 = vadd.f32 %v9555_v49, %v4767_v8  ;;  %v9559_v56 = vunpack.c.l.bf16 %v8835_v42  ;;  %v9560_v29 = vunpack.c.h.bf16 %v8835_v42 }
 0x7bd   : > { %v4832_v50 = vadd.f32 %v9556_v34, %v4768_v2  ;;  %v4833_v57 = vadd.f32 %v9557_v38, %v4769_v14  ;;  %v4834_v32 = vadd.f32 %v9558_v55, %v4770_v45  ;;  %v9561_v60 = vunpack.c.l.bf16 %v8841_v23 }
 0x7be   : > { %v4835_v16 = vadd.f32 %v9559_v56, %v4771_v41  ;;  %v4836_v51 = vadd.f32 %v9560_v29, %v4772_v52  ;;  %v9562_v8 = vunpack.c.h.bf16 %v8841_v23  ;;  %v4849_v2 = vmax.f32 %v4817_v25, 0.0 }
 0x7bf   : > { %v4837_v36 = vadd.f32 %v9561_v60, %v4773_v7  ;;  %v4850_v22 = vmax.f32 %v4818_v40, 0.0  ;;  %v4851_v62 = vmax.f32 %v4819_v33, 0.0  ;;  %v4852_v14 = vmax.f32 %v4820_v20, 0.0 }
 0x7c0   : > { %v4838_v1 = vadd.f32 %v9562_v8, %v4774_v39  ;;  %v4853_v26 = vmax.f32 %v4821_v10, 0.0  ;;  %v4854_v31 = vmax.f32 %v4822_v27, 0.0  ;;  %v9563_v45 = vunpack.c.l.bf16 %v8844_v3 }
 0x7c1   : > { %v9564_v41 = vunpack.c.h.bf16 %v8844_v3  ;;  %v4855_v52 = vmax.f32 %v4823_v43, 0.0  ;;  %v4856_v47 = vmax.f32 %v4824_v58, 0.0  ;;  %v9565_v7 = vunpack.c.l.bf16 %v8851_v24 }
 0x7c2   : > { %v4839_v15 = vadd.f32 %v9563_v45, %v4775_v9  ;;  %v9566_v23 = vunpack.c.h.bf16 %v8851_v24  ;;  %v4857_v25 = vmax.f32 %v4825_v17, 0.0  ;;  %v4858_v40 = vmax.f32 %v4826_v63, 0.0 }
 0x7c3   : > { %v4840_v42 = vadd.f32 %v9564_v41, %v4776_v4  ;;  %v4841_v21 = vadd.f32 %v9565_v7, %v4777_v6  ;;  %v9567_v9 = vunpack.c.l.bf16 %v8854_v11  ;;  %v4859_v4 = vmax.f32 %v4827_v53, 0.0 }
 0x7c4   : > { %v4842_v39 = vadd.f32 %v9566_v23, %v4778_v5  ;;  %v4860_v33 = vmax.f32 %v4828_v30, 0.0  ;;  %v4861_v20 = vmax.f32 %v4829_v13, 0.0  ;;  %v4862_v10 = vmax.f32 %v4830_v59, 0.0 }
 0x7c5   : > { %v4843_v3 = vadd.f32 %v9567_v9, %v4779_v44  ;;  %v5746_v6 = vpack.c.bf16 %v4850_v22, %v4849_v2  ;;  %v5751_v24 = vpack.c.bf16 %v4852_v14, %v4851_v62  ;;  %v5756_v5 = vpack.c.bf16 %v4854_v31, %v4853_v26 }
 0x7c6   : > { %v9568_v27 = vunpack.c.h.bf16 %v8854_v11  ;;  %v4863_v58 = vmax.f32 %v4831_v0, 0.0  ;;  %v4864_v17 = vmax.f32 %v4832_v50, 0.0  ;;  %v5761_v63 = vpack.c.bf16 %v4856_v47, %v4855_v52 }
 0x7c7   : > { %v9569_v28 = vunpack.c.l.bf16 %v8861_v61  ;;  %v4865_v37 = vmax.f32 %v4833_v57, 0.0  ;;  %v4866_v44 = vmax.f32 %v4834_v32, 0.0  ;;  %5747 = vst [vmem:[%s8972_s20] sm:$0xff] %v5746_v6   ;;  %v5766_v53 = vpack.c.bf16 %v4858_v40, %v4857_v25 }
 0x7c8   : > { %v4844_v43 = vadd.f32 %v9568_v27, %v4780_v12  ;;  %v9570_v30 = vunpack.c.h.bf16 %v8861_v61  ;;  %v4867_v59 = vmax.f32 %v4835_v16, 0.0  ;;  %v4868_v49 = vmax.f32 %v4836_v51, 0.0  ;;  %5823 = vst [vmem:[%s8972_s20 + $0x8] sm:$0xff] %v5751_v24  }
 0x7c9   : > { %v4845_v54 = vadd.f32 %v9569_v28, %v4781_v19  ;;  %v5771_v11 = vpack.c.bf16 %v4860_v33, %v4859_v4  ;;  %v9571_v12 = vunpack.c.l.bf16 %v8864_v18  ;;  %v4869_v34 = vmax.f32 %v4837_v36, 0.0  ;;  %5824 = vst [vmem:[%s8972_s20 + $0x10] sm:$0xff] %v5756_v5  }
 0x7ca   : > { %v4846_v13 = vadd.f32 %v9570_v30, %v4782_v48  ;;  %v4870_v50 = vmax.f32 %v4838_v1, 0.0  ;;  %v5776_v19 = vpack.c.bf16 %v4862_v10, %v4861_v20  ;;  %v9572_v38 = vunpack.c.h.bf16 %v8864_v18  ;;  %5825 = vst [vmem:[%s8972_s20 + $0x18] sm:$0xff] %v5761_v63  }
 0x7cb   : > { %v4847_v0 = vadd.f32 %v9571_v12, %v4783_v35  ;;  %v4871_v61 = vmax.f32 %v4839_v15, 0.0  ;;  %v4872_v48 = vmax.f32 %v4840_v42, 0.0  ;;  %v5781_v55 = vpack.c.bf16 %v4864_v17, %v4863_v58  ;;  %5826 = vst [vmem:[%s8972_s20 + $0x20] sm:$0xff] %v5766_v53  }
 0x7cc   : > { %v4848_v57 = vadd.f32 %v9572_v38, %v8913_v46  ;;  %v4873_v32 = vmax.f32 %v4841_v21, 0.0  ;;  %v4874_v56 = vmax.f32 %v4842_v39, 0.0  ;;  %v5786_v35 = vpack.c.bf16 %v4866_v44, %v4865_v37  ;;  %5827 = vst [vmem:[%s8972_s20 + $0x28] sm:$0xff] %v5771_v11  }
 0x7cd   : > { %v4875_v16 = vmax.f32 %v4843_v3, 0.0  ;;  %v4876_v29 = vmax.f32 %v4844_v43, 0.0  ;;  %v5791_v51 = vpack.c.bf16 %v4868_v49, %v4867_v59  ;;  %v4877_v18 = vmax.f32 %v4845_v54, 0.0  ;;  %5828 = vst [vmem:[%s8972_s20 + $0x30] sm:$0xff] %v5776_v19  }
 0x7ce   : > { %v4878_v46 = vmax.f32 %v4846_v13, 0.0  ;;  %v5796_v60 = vpack.c.bf16 %v4870_v50, %v4869_v34  ;;  %v4879_v36 = vmax.f32 %v4847_v0, 0.0  ;;  %v4880_v8 = vmax.f32 %v4848_v57, 0.0  ;;  %5829 = vst [vmem:[%s8972_s20 + $0x38] sm:$0xff] %v5781_v55  }
 0x7cf   : > { %v5801_v1 = vpack.c.bf16 %v4872_v48, %v4871_v61  ;;  %5830 = vst [vmem:[%s8972_s20 + $0x40] sm:$0xff] %v5786_v35   ;;  %v5806_v2 = vpack.c.bf16 %v4874_v56, %v4873_v32  ;;  %v5811_v22 = vpack.c.bf16 %v4876_v29, %v4875_v16 }
 0x7d0   : > { %5831 = vst [vmem:[%s8972_s20 + $0x48] sm:$0xff] %v5791_v51   ;;  %v5816_v62 = vpack.c.bf16 %v4878_v46, %v4877_v18  ;;  %v5821_v14 = vpack.c.bf16 %v4880_v8, %v4879_v36 }
 0x7d1   : > { %5832 = vst [vmem:[%s8972_s20 + $0x50] sm:$0xff] %v5796_v60  }
 0x7d2   : > { %5833 = vst [vmem:[%s8972_s20 + $0x58] sm:$0xff] %v5801_v1  }
 0x7d3   : > { %5834 = vst [vmem:[%s8972_s20 + $0x60] sm:$0xff] %v5806_v2  }
 0x7d4   : > { %5835 = vst [vmem:[%s8972_s20 + $0x68] sm:$0xff] %v5811_v22  }
 0x7d5   : > { %5836 = vst [vmem:[%s8972_s20 + $0x70] sm:$0xff] %v5816_v62  }
 0x7d6   : > { %5837 = vst [vmem:[%s8972_s20 + $0x78] sm:$0xff] %v5821_v14  }
 0x7d7 PF: > { %s23_s25 = sadd.s32 1, %s5897_s25  }
 0x7d8   : > { %p20_p4 = scmp.ge.s32.totalorder %s23_s25, 4  }
 0x7da   :  { %22 = sbr.rel (!%p20_p4) target bundleno = 1 (0x1), region = 110 }

</bundles_post_ra>
